<compile_context>
chip_gen: v7x
topology: tpu7x:2x2x1
jax: 0.10.0
libtpu: 0.0.40
codegen_flags: <defaults>
</compile_context>

<pallas_src>
from functools import partial

import jax
import jax.numpy as jnp
from jax import lax
from jax.experimental import pallas as pl
from jax.experimental.pallas import tpu as pltpu


# ---------------------------------------------------------------------------
# Kernel: one full image (H*W rows, channels on lanes) per grid step.
# ---------------------------------------------------------------------------
def bottleneck_kernel(x_ref, w1_ref, w2_ref, w3_ref, b1_ref, b2_ref, b3_ref,
                      out_ref, patch_ref, *, H, W, compute_dtype):
    HW = H * W
    P = w1_ref.shape[1]                       # lane-padded "planes"

    # ---- conv1 (1x1, BN scale pre-folded into w1) + bias + relu ------------
    h1 = jnp.dot(x_ref[...], w1_ref[...], preferred_element_type=jnp.float32)
    h1 = jnp.maximum(h1 + b1_ref[...], 0.0)                       # f32 (HW, P)

    # ---- conv2 (3x3, pad=1, stride=1) + bias + relu -------------------------
    # Column-shifted copies (dx = -1 / +1): register-level rolls, with only the
    # single W-edge column of each shifted band masked to zero.
    col = lax.broadcasted_iota(jnp.int32, (HW, 1), 0) % W
    h1_left = jnp.where(col > 0, jnp.roll(h1, 1, axis=0), 0.0)        # h1[y, x-1]
    h1_right = jnp.where(col < W - 1, jnp.roll(h1, -1, axis=0), 0.0)  # h1[y, x+1]

    # Row-padded patch scratch:
    #   patch[W + r, :] = [ h1[y,x-1] | h1[y,x] | h1[y,x+1] ],  r = y*W + x
    # with one zero image-row of halo above and below (dy = +-1 off-image).
    # Halo rows are re-zeroed every step (cheap) so no scratch state is carried
    # across the "parallel" batch axis.  Each band is a separate lane-dense,
    # sublane-aligned store (no (HW, 3P) f32 concat temp).
    halo = jnp.zeros((W, 3 * P), compute_dtype)
    patch_ref[pl.ds(0, W), :] = halo
    patch_ref[pl.ds(W + HW, W), :] = halo
    patch_ref[pl.ds(W, HW), pl.ds(0 * P, P)] = h1_left.astype(compute_dtype)
    patch_ref[pl.ds(W, HW), pl.ds(1 * P, P)] = h1.astype(compute_dtype)
    patch_ref[pl.ds(W, HW), pl.ds(2 * P, P)] = h1_right.astype(compute_dtype)

    # Three fat matmuls (K = 3*P), one per ky.  The dy shift is a static,
    # sublane-aligned row slice of the scratch -> pure addressing, no rolls.
    acc = jnp.dot(patch_ref[pl.ds(0 * W, HW), :], w2_ref[0],
                  preferred_element_type=jnp.float32)
    acc = acc + jnp.dot(patch_ref[pl.ds(1 * W, HW), :], w2_ref[1],
                        preferred_element_type=jnp.float32)
    acc = acc + jnp.dot(patch_ref[pl.ds(2 * W, HW), :], w2_ref[2],
                        preferred_element_type=jnp.float32)
    h2 = jnp.maximum(acc + b2_ref[...], 0.0).astype(compute_dtype)

    # ---- conv3 (1x1) + bias + residual + relu -------------------------------
    h3 = jnp.dot(h2, w3_ref[...], preferred_element_type=jnp.float32)
    out_ref[...] = jnp.maximum(
        h3 + b3_ref[...] + x_ref[...].astype(jnp.float32), 0.0
    ).astype(out_ref.dtype)


# ---------------------------------------------------------------------------
# Wrapper
# ---------------------------------------------------------------------------
def fold_bn(gamma, beta, mean, var, eps=1e-5):
    scale = gamma / jnp.sqrt(var + eps)
    return scale, beta - mean * scale


def _round_up(x, m):
    return (x + m - 1) // m * m


def _pad2(a, rows, cols):
    return jnp.pad(a, ((0, rows - a.shape[0]), (0, cols - a.shape[1])))


def bottleneck_forward_nhwc(x_nhwc, params, *, compute_dtype=jnp.bfloat16,
                            lane_multiple=128, eps=1e-5):
    N, H, W, Cin = x_nhwc.shape
    planes = params["W1"].shape[0]
    Cout = 4 * planes
    assert Cin == Cout, "downsample=None requires inplanes == planes * 4"

    HW = H * W
    Cin_p = _round_up(Cin, lane_multiple)
    P_p = _round_up(planes, lane_multiple)
    Cout_p = _round_up(Cout, lane_multiple)

    # Activations streamed through HBM in the compute dtype (bf16 by default);
    # channel pad / dtype cast only when actually needed so standard bottleneck
    # widths (multiples of 128) add no extra HBM round trips.
    x3 = x_nhwc.reshape(N, HW, Cin)
    made_copy = False
    if x3.dtype != compute_dtype:
        x3 = x3.astype(compute_dtype)
        made_copy = True
    if Cin_p != Cin:
        x3 = jnp.pad(x3, ((0, 0), (0, 0), (0, Cin_p - Cin)))
        made_copy = True

    # Eval-mode BN folded to per-output-channel scale/bias; scale folded into
    # the conv weights in f32, cast to the MXU dtype afterwards.  Padded
    # channels get zero weights / zero bias and stay exactly zero throughout.
    s1, b1 = fold_bn(*params["bn1"], eps=eps)
    s2, b2 = fold_bn(*params["bn2"], eps=eps)
    s3, b3 = fold_bn(*params["bn3"], eps=eps)

    w1 = _pad2(params["W1"][:, :, 0, 0].T * s1[None, :], Cin_p, P_p)
    w1 = w1.astype(compute_dtype)
    w2_f = params["W2"] * s2[:, None, None, None]                 # fold on O axis
    w2 = jnp.stack(
        [jnp.concatenate(
            [_pad2(w2_f[:, :, ky, kx].T, P_p, P_p) for kx in range(3)], axis=0)
         for ky in range(3)], axis=0).astype(compute_dtype)       # (3, 3P_p, P_p)
    w3 = _pad2(params["W3"][:, :, 0, 0].T * s3[None, :], P_p, Cout_p)
    w3 = w3.astype(compute_dtype)

    b1p = _pad2(b1.reshape(1, -1).astype(jnp.float32), 1, P_p)
    b2p = _pad2(b2.reshape(1, -1).astype(jnp.float32), 1, P_p)
    b3p = _pad2(b3.reshape(1, -1).astype(jnp.float32), 1, Cout_p)

    # True double-buffered footprint, with headroom, capped at 75% of physical
    # VMEM (v7x: ~48 MiB of 64; v5e/v6e: ~96 MiB of 128).
    act_bytes = jnp.dtype(compute_dtype).itemsize
    weight_bytes = (Cin_p * P_p + 9 * P_p * P_p + P_p * Cout_p) * act_bytes
    bias_bytes = (2 * P_p + Cout_p) * 4
    in_block = HW * Cin_p * act_bytes
    out_block = HW * Cout_p * act_bytes
    patch_bytes = (HW + 2 * W) * 3 * P_p * act_bytes
    interm_bytes = 3 * HW * P_p * 4          # h1 / acc / h2 live f32 values
    footprint = (2 * (in_block + out_block)            # double-buffered I/O
                 + 2 * (weight_bytes + bias_bytes)     # conservatively x2
                 + patch_bytes + interm_bytes)
    try:
        vmem_cap = int(pltpu.get_tpu_info().vmem_capacity_bytes)
    except Exception:                                  # info query fallback
        vmem_cap = 128 * 1024 * 1024
    vmem_budget = (3 * vmem_cap) // 4                  # headroom for compiler scratch
    vmem_limit = int(min(vmem_budget, max(32 * 1024 * 1024, (3 * footprint) // 2)))

    cost = pl.CostEstimate(
        flops=2 * N * HW * (Cin_p * P_p + 9 * P_p * P_p + P_p * Cout_p),
        transcendentals=0,
        bytes_accessed=int(N * HW * (Cin_p + Cout_p) * act_bytes
                           + weight_bytes + bias_bytes),
    )

    const2 = lambda n: (0, 0)
    out = pl.pallas_call(
        partial(bottleneck_kernel, H=H, W=W, compute_dtype=compute_dtype),
        out_shape=jax.ShapeDtypeStruct((N, HW, Cout_p), compute_dtype),
        grid=(N,),
        in_specs=[
            pl.BlockSpec((None, HW, Cin_p), lambda n: (n, 0, 0)),    # x (streamed)
            pl.BlockSpec((Cin_p, P_p), const2),                      # w1 (resident)
            pl.BlockSpec((3, 3 * P_p, P_p), lambda n: (0, 0, 0)),    # w2 (resident)
            pl.BlockSpec((P_p, Cout_p), const2),                     # w3 (resident)
            pl.BlockSpec((1, P_p), const2),                          # b1
            pl.BlockSpec((1, P_p), const2),                          # b2
            pl.BlockSpec((1, Cout_p), const2),                       # b3
        ],
        out_specs=pl.BlockSpec((None, HW, Cout_p), lambda n: (n, 0, 0)),
        scratch_shapes=[pltpu.VMEM((HW + 2 * W, 3 * P_p), compute_dtype)],
        # Only alias when the wrapper made a fresh padded/cast copy (never
        # donate the caller's own buffer).
        input_output_aliases=({0: 0} if made_copy else {}),
        compiler_params=pltpu.CompilerParams(
            dimension_semantics=("parallel",),
            vmem_limit_bytes=vmem_limit),
        cost_estimate=cost,
    )(x3, w1, w2, w3, b1p, b2p, b3p)

    if Cout_p != Cout:
        out = out[:, :, :Cout]
    return out.reshape(N, H, W, Cout)


def bottleneck_forward_nchw(x_nchw, params, *, compute_dtype=jnp.bfloat16):
    # NOTE: in a full network keep activations NHWC (+128-padded, bf16) between
    # blocks and call bottleneck_forward_nhwc directly; these transposes only
    # adapt the torch-style NCHW interface (extra HBM traffic outside the kernel).
    y = bottleneck_forward_nhwc(jnp.transpose(x_nchw, (0, 2, 3, 1)), params,
                                compute_dtype=compute_dtype)
    return jnp.transpose(y, (0, 3, 1, 2))


# ---------------- pure-JAX reference (for correctness checks) ---------------
def bottleneck_reference(x_nchw, params, *, eps=1e-5, fold_scale=False,
                         act_dtype=None, precision=None):
    """Pure-JAX reference.

    fold_scale=False, act_dtype=None : exact eval-mode torch semantics.
    fold_scale=True                  : BN scale folded into conv weights (exact algebra).
    act_dtype=bfloat16               : weights / activations / residual stream rounded
                                       to bf16 before each conv (f32 accumulation),
                                       mirroring the kernel's bf16 streaming path.
    """
    f32 = jnp.float32
    qa = (lambda a: a.astype(act_dtype)) if act_dtype is not None else (lambda a: a)

    def conv(x, w, pad):
        return lax.conv_general_dilated(
            qa(x), qa(w), (1, 1), [(pad, pad), (pad, pad)],
            dimension_numbers=("NCHW", "OIHW", "NCHW"),
            preferred_element_type=f32, precision=precision)

    def layer(x, wkey, bnkey, pad):
        g, b, m, v = params[bnkey]
        s = g / jnp.sqrt(v + eps)
        bias = (b - m * s)[None, :, None, None]
        if fold_scale:
            w = params[wkey] * s[:, None, None, None]
            return conv(x, w, pad) + bias
        return conv(x, params[wkey], pad) * s[None, :, None, None] + bias

    x = x_nchw.astype(f32)
    residual = qa(x).astype(f32)
    h = jax.nn.relu(layer(x, "W1", "bn1", 0))
    h = jax.nn.relu(layer(h, "W2", "bn2", 1))
    h = layer(h, "W3", "bn3", 0)
    return jax.nn.relu(h + residual)


def init_params(key, inplanes, planes):
    ks = jax.random.split(key, 6)

    def bn_params(k, c):
        k1, k2, k3, k4 = jax.random.split(k, 4)
        gamma = 1.0 + 0.1 * jax.random.normal(k1, (c,), jnp.float32)
        beta = 0.1 * jax.random.normal(k2, (c,), jnp.float32)
        mean = 0.1 * jax.random.normal(k3, (c,), jnp.float32)
        var = 1.0 + 0.5 * jax.random.uniform(k4, (c,), jnp.float32)
        return (gamma, beta, mean, var)

    return {
        "W1": 0.2 * jax.random.normal(ks[0], (planes, inplanes, 1, 1), jnp.float32),
        "W2": 0.2 * jax.random.normal(ks[1], (planes, planes, 3, 3), jnp.float32),
        "W3": 0.2 * jax.random.normal(ks[2], (4 * planes, planes, 1, 1), jnp.float32),
        "bn1": bn_params(ks[3], planes),
        "bn2": bn_params(ks[4], planes),
        "bn3": bn_params(ks[5], 4 * planes),
    }


if __name__ == "__main__":
    key = jax.random.PRNGKey(0)
    k_x, k_p = jax.random.split(key)

    # small shapes: batch=2, inplanes=16, planes=4 (planes*4 == inplanes),
    # spatial 16x16, stride=1, downsample=None
    N, inplanes, planes, H, W = 2, 16, 4, 16, 16
    x = jax.random.normal(k_x, (N, inplanes, H, W), jnp.float32)
    params = init_params(k_p, inplanes, planes)

    # (a) BN-scale folding is exact algebra: folded vs plain torch-semantics
    #     reference at highest matmul precision (pure XLA, no kernel).
    hi = jax.lax.Precision.HIGHEST
    ref_plain = bottleneck_reference(x, params, precision=hi)
    ref_fold = bottleneck_reference(x, params, fold_scale=True, precision=hi)
    err_fold = float(jnp.max(jnp.abs(ref_plain - ref_fold)))
    assert err_fold < 1e-4, f"BN-fold algebra mismatch: {err_fold}"

    # (b) strict f32 kernel path vs the folded f32 reference (same math, same
    #     default MXU precision) -- tight tolerance.
    fwd_f32 = jax.jit(partial(bottleneck_forward_nchw, compute_dtype=jnp.float32))
    out32 = jax.block_until_ready(fwd_f32(x, params))
    ref32 = bottleneck_reference(x, params, fold_scale=True)
    assert out32.shape == ref32.shape == (N, 4 * planes, H, W)
    err32 = float(jnp.max(jnp.abs(out32 - ref32)))
    assert err32 < 5e-4, f"f32 path: max abs err {err32}"

    # (c) default bf16-streaming path vs a reference that mirrors the kernel's
    #     rounding (bf16 weights/activations/residual stream, f32 accumulation);
    #     tolerance additionally covers the final bf16 output store.
    fwd_bf16 = jax.jit(partial(bottleneck_forward_nchw, compute_dtype=jnp.bfloat16))
    out16 = jax.block_until_ready(fwd_bf16(x, params)).astype(jnp.float32)
    ref16 = bottleneck_reference(x, params, fold_scale=True,
                                 act_dtype=jnp.bfloat16)
    err16 = float(jnp.max(jnp.abs(out16 - ref16)))
    assert err16 < 3e-2, f"bf16 path: max abs err {err16}"

    print("KERNEL_OK")
</pallas_src>

<mosaic_0001>
module attributes {stable_mosaic.version = 11 : i64} {
  func.func @bottleneck_kernel(%arg0: i32, %arg1: memref<1x256x128xf32, #tpu.memory_space<vmem>>, %arg2: memref<128x128xf32, #tpu.memory_space<vmem>>, %arg3: memref<3x384x128xf32, #tpu.memory_space<vmem>>, %arg4: memref<128x128xf32, #tpu.memory_space<vmem>>, %arg5: memref<1x128xf32, #tpu.memory_space<vmem>>, %arg6: memref<1x128xf32, #tpu.memory_space<vmem>>, %arg7: memref<1x128xf32, #tpu.memory_space<vmem>>, %arg8: memref<1x256x128xf32, #tpu.memory_space<vmem>>, %arg9: memref<288x384xf32, #tpu.memory_space<vmem>>) attributes {dimension_semantics = [#tpu.dimension_semantics<parallel>], iteration_bounds = array<i64: 2>, scalar_prefetch = 0 : i64, scratch_operands = 1 : i64, tpu.core_type = #tpu.core_type<tc>, window_params = [{transform_indices = @transform_0, window_bounds = array<i64: 1, 256, 128>}, {pipeline_mode = #tpu.pipeline_mode<synchronous>, transform_indices = @transform_1, window_bounds = array<i64: 128, 128>}, {pipeline_mode = #tpu.pipeline_mode<synchronous>, transform_indices = @transform_2, window_bounds = array<i64: 3, 384, 128>}, {pipeline_mode = #tpu.pipeline_mode<synchronous>, transform_indices = @transform_3, window_bounds = array<i64: 128, 128>}, {pipeline_mode = #tpu.pipeline_mode<synchronous>, transform_indices = @transform_4, window_bounds = array<i64: 1, 128>}, {pipeline_mode = #tpu.pipeline_mode<synchronous>, transform_indices = @transform_5, window_bounds = array<i64: 1, 128>}, {pipeline_mode = #tpu.pipeline_mode<synchronous>, transform_indices = @transform_6, window_bounds = array<i64: 1, 128>}, {transform_indices = @transform_7, window_bounds = array<i64: 1, 256, 128>}]} {
    %c0 = arith.constant 0 : index
    %c0_0 = arith.constant 0 : index
    %c0_1 = arith.constant 0 : index
    %0 = vector.load %arg1[%c0, %c0_0, %c0_1] : memref<1x256x128xf32, #tpu.memory_space<vmem>>, vector<1x256x128xf32>
    %1 = vector.shape_cast %0 : vector<1x256x128xf32> to vector<256x128xf32>
    %c0_2 = arith.constant 0 : index
    %c0_3 = arith.constant 0 : index
    %2 = vector.load %arg2[%c0_2, %c0_3] : memref<128x128xf32, #tpu.memory_space<vmem>>, vector<128x128xf32>
    %cst = arith.constant dense<0.000000e+00> : vector<256x128xf32>
    %3 = tpu.matmul %1, %2, %cst {dimension_numbers = #tpu.dot_dimension_numbers<[1], [0], [0], [1], [0, 0, 1, 1], [], []>} : vector<256x128xf32>, vector<128x128xf32>, vector<256x128xf32> -> vector<256x128xf32>
    %c0_4 = arith.constant 0 : index
    %c0_5 = arith.constant 0 : index
    %4 = vector.load %arg5[%c0_4, %c0_5] : memref<1x128xf32, #tpu.memory_space<vmem>>, vector<1x128xf32>
    %5 = vector.broadcast %4 : vector<1x128xf32> to vector<256x128xf32>
    %6 = arith.addf %3, %5 : vector<256x128xf32>
    %cst_6 = arith.constant 0.000000e+00 : f32
    %7 = vector.broadcast %cst_6 : f32 to vector<256x128xf32>
    %8 = arith.maximumf %6, %7 : vector<256x128xf32>
    %9 = tpu.iota {dimensions = array<i32: 0>} : vector<256x1xi32>
    %c16_i32 = arith.constant 16 : i32
    %c0_i32 = arith.constant 0 : i32
    %10 = arith.cmpi eq, %c16_i32, %c0_i32 : i32
    %c1_i32 = arith.constant 1 : i32
    %11 = arith.select %10, %c1_i32, %c16_i32 : i32
    %12 = vector.broadcast %11 : i32 to vector<256x1xi32>
    %13 = arith.remsi %9, %12 : vector<256x1xi32>
    %c0_i32_7 = arith.constant 0 : i32
    %14 = vector.broadcast %c0_i32_7 : i32 to vector<256x1xi32>
    %15 = arith.cmpi ne, %13, %14 : vector<256x1xi32>
    %c0_i32_8 = arith.constant 0 : i32
    %16 = vector.broadcast %c0_i32_8 : i32 to vector<256x1xi32>
    %17 = arith.cmpi slt, %13, %16 : vector<256x1xi32>
    %c0_i32_9 = arith.constant 0 : i32
    %18 = arith.cmpi slt, %11, %c0_i32_9 : i32
    %19 = vector.broadcast %18 : i1 to vector<256x1xi1>
    %20 = vector.broadcast %19 : vector<256x1xi1> to vector<256x1xi1>
    %21 = arith.xori %17, %20 : vector<256x1xi1>
    %22 = arith.andi %21, %15 : vector<256x1xi1>
    %23 = vector.broadcast %11 : i32 to vector<256x1xi32>
    %24 = arith.addi %13, %23 : vector<256x1xi32>
    %25 = arith.select %22, %24, %13 : vector<256x1xi1>, vector<256x1xi32>
    %c0_i32_10 = arith.constant 0 : i32
    %26 = vector.broadcast %c0_i32_10 : i32 to vector<256x1xi32>
    %27 = arith.cmpi sgt, %25, %26 : vector<256x1xi32>
    %28 = vector.extract_strided_slice %8 {offsets = [255, 0], sizes = [1, 128], strides = [1, 1]} : vector<256x128xf32> to vector<1x128xf32>
    %29 = vector.extract_strided_slice %8 {offsets = [0, 0], sizes = [255, 128], strides = [1, 1]} : vector<256x128xf32> to vector<255x128xf32>
    %30 = tpu.concatenate %28, %29 in 0 : vector<1x128xf32>, vector<255x128xf32> -> vector<256x128xf32>
    %cst_11 = arith.constant 0.000000e+00 : f32
    %31 = vector.shape_cast %27 : vector<256x1xi1> to vector<256x1xi1>
    %32 = vector.broadcast %31 : vector<256x1xi1> to vector<256x128xi1>
    %33 = vector.broadcast %cst_11 : f32 to vector<256x128xf32>
    %34 = arith.select %32, %30, %33 : vector<256x128xi1>, vector<256x128xf32>
    %c15_i32 = arith.constant 15 : i32
    %35 = vector.broadcast %c15_i32 : i32 to vector<256x1xi32>
    %36 = arith.cmpi slt, %25, %35 : vector<256x1xi32>
    %37 = vector.extract_strided_slice %8 {offsets = [1, 0], sizes = [255, 128], strides = [1, 1]} : vector<256x128xf32> to vector<255x128xf32>
    %38 = vector.extract_strided_slice %8 {offsets = [0, 0], sizes = [1, 128], strides = [1, 1]} : vector<256x128xf32> to vector<1x128xf32>
    %39 = tpu.concatenate %37, %38 in 0 : vector<255x128xf32>, vector<1x128xf32> -> vector<256x128xf32>
    %cst_12 = arith.constant 0.000000e+00 : f32
    %40 = vector.shape_cast %36 : vector<256x1xi1> to vector<256x1xi1>
    %41 = vector.broadcast %40 : vector<256x1xi1> to vector<256x128xi1>
    %42 = vector.broadcast %cst_12 : f32 to vector<256x128xf32>
    %43 = arith.select %41, %39, %42 : vector<256x128xi1>, vector<256x128xf32>
    %cst_13 = arith.constant 0.000000e+00 : f32
    %44 = vector.broadcast %cst_13 : f32 to vector<16x384xf32>
    %c0_14 = arith.constant 0 : index
    %c0_15 = arith.constant 0 : index
    %45 = vector.load %arg9[%c0_14, %c0_15] : memref<288x384xf32, #tpu.memory_space<vmem>>, vector<16x384xf32>
    tpu.vector_store %arg9[%c0_14, %c0_15], %44 {strides = array<i32>} : memref<288x384xf32, #tpu.memory_space<vmem>>, vector<16x384xf32>,
    %c272 = arith.constant 272 : index
    %c0_16 = arith.constant 0 : index
    %46 = vector.load %arg9[%c272, %c0_16] : memref<288x384xf32, #tpu.memory_space<vmem>>, vector<16x384xf32>
    tpu.vector_store %arg9[%c272, %c0_16], %44 {strides = array<i32>} : memref<288x384xf32, #tpu.memory_space<vmem>>, vector<16x384xf32>,
    %c16 = arith.constant 16 : index
    %c0_17 = arith.constant 0 : index
    %47 = vector.load %arg9[%c16, %c0_17] : memref<288x384xf32, #tpu.memory_space<vmem>>, vector<256x128xf32>
    tpu.vector_store %arg9[%c16, %c0_17], %34 {strides = array<i32>} : memref<288x384xf32, #tpu.memory_space<vmem>>, vector<256x128xf32>,
    %c16_18 = arith.constant 16 : index
    %c128 = arith.constant 128 : index
    %48 = vector.load %arg9[%c16_18, %c128] : memref<288x384xf32, #tpu.memory_space<vmem>>, vector<256x128xf32>
    tpu.vector_store %arg9[%c16_18, %c128], %8 {strides = array<i32>} : memref<288x384xf32, #tpu.memory_space<vmem>>, vector<256x128xf32>,
    %c16_19 = arith.constant 16 : index
    %c256 = arith.constant 256 : index
    %49 = vector.load %arg9[%c16_19, %c256] : memref<288x384xf32, #tpu.memory_space<vmem>>, vector<256x128xf32>
    tpu.vector_store %arg9[%c16_19, %c256], %43 {strides = array<i32>} : memref<288x384xf32, #tpu.memory_space<vmem>>, vector<256x128xf32>,
    %c0_20 = arith.constant 0 : index
    %c0_21 = arith.constant 0 : index
    %50 = vector.load %arg9[%c0_20, %c0_21] : memref<288x384xf32, #tpu.memory_space<vmem>>, vector<256x384xf32>
    %c0_22 = arith.constant 0 : index
    %c0_23 = arith.constant 0 : index
    %c0_24 = arith.constant 0 : index
    %51 = vector.load %arg3[%c0_22, %c0_23, %c0_24] : memref<3x384x128xf32, #tpu.memory_space<vmem>>, vector<1x384x128xf32>
    %52 = vector.shape_cast %51 : vector<1x384x128xf32> to vector<384x128xf32>
    %cst_25 = arith.constant dense<0.000000e+00> : vector<256x128xf32>
    %53 = tpu.matmul %50, %52, %cst_25 {dimension_numbers = #tpu.dot_dimension_numbers<[1], [0], [0], [1], [0, 0, 1, 1], [], []>} : vector<256x384xf32>, vector<384x128xf32>, vector<256x128xf32> -> vector<256x128xf32>
    %c16_26 = arith.constant 16 : index
    %c0_27 = arith.constant 0 : index
    %54 = vector.load %arg9[%c16_26, %c0_27] : memref<288x384xf32, #tpu.memory_space<vmem>>, vector<256x384xf32>
    %c1 = arith.constant 1 : index
    %c0_28 = arith.constant 0 : index
    %c0_29 = arith.constant 0 : index
    %55 = vector.load %arg3[%c1, %c0_28, %c0_29] : memref<3x384x128xf32, #tpu.memory_space<vmem>>, vector<1x384x128xf32>
    %56 = vector.shape_cast %55 : vector<1x384x128xf32> to vector<384x128xf32>
    %cst_30 = arith.constant dense<0.000000e+00> : vector<256x128xf32>
    %57 = tpu.matmul %54, %56, %cst_30 {dimension_numbers = #tpu.dot_dimension_numbers<[1], [0], [0], [1], [0, 0, 1, 1], [], []>} : vector<256x384xf32>, vector<384x128xf32>, vector<256x128xf32> -> vector<256x128xf32>
    %58 = arith.addf %53, %57 : vector<256x128xf32>
    %c32 = arith.constant 32 : index
    %c0_31 = arith.constant 0 : index
    %59 = vector.load %arg9[%c32, %c0_31] : memref<288x384xf32, #tpu.memory_space<vmem>>, vector<256x384xf32>
    %c2 = arith.constant 2 : index
    %c0_32 = arith.constant 0 : index
    %c0_33 = arith.constant 0 : index
    %60 = vector.load %arg3[%c2, %c0_32, %c0_33] : memref<3x384x128xf32, #tpu.memory_space<vmem>>, vector<1x384x128xf32>
    %61 = vector.shape_cast %60 : vector<1x384x128xf32> to vector<384x128xf32>
    %cst_34 = arith.constant dense<0.000000e+00> : vector<256x128xf32>
    %62 = tpu.matmul %59, %61, %cst_34 {dimension_numbers = #tpu.dot_dimension_numbers<[1], [0], [0], [1], [0, 0, 1, 1], [], []>} : vector<256x384xf32>, vector<384x128xf32>, vector<256x128xf32> -> vector<256x128xf32>
    %63 = arith.addf %58, %62 : vector<256x128xf32>
    %c0_35 = arith.constant 0 : index
    %c0_36 = arith.constant 0 : index
    %64 = vector.load %arg6[%c0_35, %c0_36] : memref<1x128xf32, #tpu.memory_space<vmem>>, vector<1x128xf32>
    %65 = vector.broadcast %64 : vector<1x128xf32> to vector<256x128xf32>
    %66 = arith.addf %63, %65 : vector<256x128xf32>
    %cst_37 = arith.constant 0.000000e+00 : f32
    %67 = vector.broadcast %cst_37 : f32 to vector<256x128xf32>
    %68 = arith.maximumf %66, %67 : vector<256x128xf32>
    %c0_38 = arith.constant 0 : index
    %c0_39 = arith.constant 0 : index
    %69 = vector.load %arg4[%c0_38, %c0_39] : memref<128x128xf32, #tpu.memory_space<vmem>>, vector<128x128xf32>
    %cst_40 = arith.constant dense<0.000000e+00> : vector<256x128xf32>
    %70 = tpu.matmul %68, %69, %cst_40 {dimension_numbers = #tpu.dot_dimension_numbers<[1], [0], [0], [1], [0, 0, 1, 1], [], []>} : vector<256x128xf32>, vector<128x128xf32>, vector<256x128xf32> -> vector<256x128xf32>
    %c0_41 = arith.constant 0 : index
    %c0_42 = arith.constant 0 : index
    %71 = vector.load %arg7[%c0_41, %c0_42] : memref<1x128xf32, #tpu.memory_space<vmem>>, vector<1x128xf32>
    %72 = vector.broadcast %71 : vector<1x128xf32> to vector<256x128xf32>
    %73 = arith.addf %70, %72 : vector<256x128xf32>
    %c0_43 = arith.constant 0 : index
    %c0_44 = arith.constant 0 : index
    %c0_45 = arith.constant 0 : index
    %74 = vector.load %arg1[%c0_43, %c0_44, %c0_45] : memref<1x256x128xf32, #tpu.memory_space<vmem>>, vector<1x256x128xf32>
    %75 = vector.shape_cast %74 : vector<1x256x128xf32> to vector<256x128xf32>
    %76 = arith.addf %73, %75 : vector<256x128xf32>
    %cst_46 = arith.constant 0.000000e+00 : f32
    %77 = vector.broadcast %cst_46 : f32 to vector<256x128xf32>
    %78 = arith.maximumf %76, %77 : vector<256x128xf32>
    %c0_47 = arith.constant 0 : index
    %c0_48 = arith.constant 0 : index
    %c0_49 = arith.constant 0 : index
    %79 = vector.load %arg8[%c0_47, %c0_48, %c0_49] : memref<1x256x128xf32, #tpu.memory_space<vmem>>, vector<1x256x128xf32>
    %80 = vector.shape_cast %79 : vector<1x256x128xf32> to vector<256x128xf32>
    %81 = vector.shape_cast %78 : vector<256x128xf32> to vector<1x256x128xf32>
    tpu.vector_store %arg8[%c0_47, %c0_48, %c0_49], %81 {strides = array<i32>} : memref<1x256x128xf32, #tpu.memory_space<vmem>>, vector<1x256x128xf32>,
    return
  }
  func.func @transform_0(%arg0: i32) -> (i32, i32, i32) {
    %c0_i32 = arith.constant 0 : i32
    %c0_i32_0 = arith.constant 0 : i32
    %c0_i32_1 = arith.constant 0 : i32
    return %arg0, %c0_i32, %c0_i32_0 : i32, i32, i32
  }
  func.func @transform_1(%arg0: i32) -> (i32, i32) {
    %c0_i32 = arith.constant 0 : i32
    %c0_i32_0 = arith.constant 0 : i32
    %c0_i32_1 = arith.constant 0 : i32
    return %c0_i32, %c0_i32_0 : i32, i32
  }
  func.func @transform_2(%arg0: i32) -> (i32, i32, i32) {
    %c0_i32 = arith.constant 0 : i32
    %c0_i32_0 = arith.constant 0 : i32
    %c0_i32_1 = arith.constant 0 : i32
    %c0_i32_2 = arith.constant 0 : i32
    return %c0_i32, %c0_i32_0, %c0_i32_1 : i32, i32, i32
  }
  func.func @transform_3(%arg0: i32) -> (i32, i32) {
    %c0_i32 = arith.constant 0 : i32
    %c0_i32_0 = arith.constant 0 : i32
    %c0_i32_1 = arith.constant 0 : i32
    return %c0_i32, %c0_i32_0 : i32, i32
  }
  func.func @transform_4(%arg0: i32) -> (i32, i32) {
    %c0_i32 = arith.constant 0 : i32
    %c0_i32_0 = arith.constant 0 : i32
    %c0_i32_1 = arith.constant 0 : i32
    return %c0_i32, %c0_i32_0 : i32, i32
  }
  func.func @transform_5(%arg0: i32) -> (i32, i32) {
    %c0_i32 = arith.constant 0 : i32
    %c0_i32_0 = arith.constant 0 : i32
    %c0_i32_1 = arith.constant 0 : i32
    return %c0_i32, %c0_i32_0 : i32, i32
  }
  func.func @transform_6(%arg0: i32) -> (i32, i32) {
    %c0_i32 = arith.constant 0 : i32
    %c0_i32_0 = arith.constant 0 : i32
    %c0_i32_1 = arith.constant 0 : i32
    return %c0_i32, %c0_i32_0 : i32, i32
  }
  func.func @transform_7(%arg0: i32) -> (i32, i32, i32) {
    %c0_i32 = arith.constant 0 : i32
    %c0_i32_0 = arith.constant 0 : i32
    %c0_i32_1 = arith.constant 0 : i32
    return %arg0, %c0_i32, %c0_i32_0 : i32, i32, i32
  }
}

</mosaic_0001>

<bundles_post_ra>
// kernel: bottleneck_forward_nchw.1
= control target key start
LH: loop header
LB: loop body
LE: loop exit
PB: predicated region body
PF: predicated region fallthrough
CT: control target
= control target key end

     0   :  { %s5052_s24 = smov 0   ;;  %s7309_s0 = inlined_call_operand.vmem [shape: f32[2,256,128], index: 0, kind: input, shape index: {}, may-alias: {0,7}]   ;;  %s7310_s1 = inlined_call_operand.vmem [shape: f32[128,128], index: 1, kind: input, shape index: {}]   ;;  %s7311_s2 = inlined_call_operand.vmem [shape: f32[3,384,128], index: 2, kind: input, shape index: {}]   ;;  %s7312_s3 = inlined_call_operand.vmem [shape: f32[128,128], index: 3, kind: input, shape index: {}]   ;;  %s7313_s4 = inlined_call_operand.vmem [shape: f32[1,128], index: 4, kind: input, shape index: {}]   ;;  %s7314_s5 = inlined_call_operand.vmem [shape: f32[1,128], index: 5, kind: input, shape index: {}]   ;;  %s7315_s6 = inlined_call_operand.vmem [shape: f32[1,128], index: 6, kind: input, shape index: {}]   ;;  %s7316_s7 = inlined_call_operand.vmem [shape: f32[2,256,128], index: 7, kind: output, shape index: {}, may-alias: {0,7}]  }
   0x1 LB: > { %s3828_s25 = sadd.s32 4294967295, %s5008_s24   ;;  %p3832_p0 = scmp.ge.s32.totalorder %s5008_s24, 1  ;;  %s5008_s24 = sphi %s5052_s24, %s17_s24  }
   0x2   : > { %p237_p1 = scmp.lt.s32.totalorder %s5008_s24, 3 }
   0x4   : > { %p238_p2 = pnand %p3832_p0, %p237_p1 }
   0x6   : > { %241 = sbr.rel (%p238_p2) target bundleno = 1102 (0x44e), region = 48 }
   0xd   : > { %v311_v0 = vld [vmem:[%s7310_s1] sm:$0xff]  ;;  %v312_v1 = vld [vmem:[%s7310_s1 + $0x8] sm:$0xff]  ;;  %v313_v2 = vld [vmem:[%s7310_s1 + $0x10] sm:$0xff]  ;;  %p269_p3 = scmp.lt.s32.totalorder %s3828_s25, 1  ;;  %vm7384_vm0 = vcmask 1046528  }
   0xe   : > { %v4672_v3 = vpack.c.bf16 %v312_v1, %v311_v0  ;;  %v314_v4 = vld [vmem:[%s7310_s1 + $0x18] sm:$0xff]  ;;  %v315_v6 = vld [vmem:[%s7310_s1 + $0x20] sm:$0xff]  ;;  %v316_v7 = vld [vmem:[%s7310_s1 + $0x28] sm:$0xff] }
   0xf   : > { %v4676_v5 = vpack.c.bf16 %v314_v4, %v313_v2  ;;  %s7784_s25 = smov (!%p269_p3, %s3828_s25), 1  ;;  %v4680_v8 = vpack.c.bf16 %v316_v7, %v315_v6  ;;  %v317_v9 = vld [vmem:[%s7310_s1 + $0x30] sm:$0xff]  ;;  %v318_v10 = vld [vmem:[%s7310_s1 + $0x38] sm:$0xff]  ;;  %v319_v13 = vld [vmem:[%s7310_s1 + $0x40] sm:$0xff] }
  0x10   : > { %4673 = vmatprep.subr.bf16.mxu0 %v4672_v3  ;;  %s3938_s15 = sshll.u32 %s7784_s25, 8  ;;  %v4684_v12 = vpack.c.bf16 %v318_v10, %v317_v9  ;;  %v320_v14 = vld [vmem:[%s7310_s1 + $0x48] sm:$0xff]  ;;  %v321_v16 = vld [vmem:[%s7310_s1 + $0x50] sm:$0xff]  ;;  %v322_v17 = vld [vmem:[%s7310_s1 + $0x58] sm:$0xff] }
  0x11   : > { %4675 = vmatpush3.bf16.msra.mxu0 %v4672_v3  ;;  %s5086_s18 = scalar_lea.vmem %s7309_s0, %s3938_s15  ;;  %v4688_v15 = vpack.c.bf16 %v320_v14, %v319_v13  ;;  %v4692_v18 = vpack.c.bf16 %v322_v17, %v321_v16  ;;  %v323_v19 = vld [vmem:[%s7310_s1 + $0x60] sm:$0xff]  ;;  %v324_v20 = vld [vmem:[%s7310_s1 + $0x68] sm:$0xff]  ;;  %v325_v22 = vld [vmem:[%s7310_s1 + $0x70] sm:$0xff]  ;;  %s7209_s27 = scalar_lea.vmem %s7316_s7, %s3938_s15 }
  0x12   : > { %4677 = vmatprep.subr.bf16.mxu0 %v4676_v5  ;;  %v279_v11 = vld [vmem:[%s5086_s18] sm:$0xff]  ;;  %v4696_v21 = vpack.c.bf16 %v324_v20, %v323_v19  ;;  %v326_v23 = vld [vmem:[%s7310_s1 + $0x78] sm:$0xff]  ;;  %v3871_v26 = vld [vmem:[%s7311_s2 + $0x288] sm:$0xff] }
  0x13   : > { %4304 = vmatprep.mubr.f32.mxu0 %v279_v11  ;;  %v4700_v24 = vpack.c.bf16 %v326_v23, %v325_v22  ;;  %v3870_v25 = vld [vmem:[%s7311_s2 + $0x280] sm:$0xff]  ;;  %v3872_v28 = vld [vmem:[%s7311_s2 + $0x290] sm:$0xff]  ;;  %v3873_v29 = vld [vmem:[%s7311_s2 + $0x298] sm:$0xff] }
  0x14   : > { %v4752_v27 = vpack.c.bf16 %v3871_v26, %v3870_v25  ;;  %v280_v30 = vld [vmem:[%s5086_s18 + $0x8] sm:$0xff]  ;;  %v281_v31 = vld [vmem:[%s5086_s18 + $0x10] sm:$0xff]  ;;  %v4756_v32 = vpack.c.bf16 %v3873_v29, %v3872_v28  ;;  %v3874_v33 = vld [vmem:[%s7311_s2 + $0x2a0] sm:$0xff] }
  0x15   : > { %4679 = vmatpush3.bf16.msra.mxu0 %v4676_v5  ;;  %v3875_v34 = vld [vmem:[%s7311_s2 + $0x2a8] sm:$0xff]  ;;  %v282_v35 = vld [vmem:[%s5086_s18 + $0x18] sm:$0xff]  ;;  %v283_v36 = vld [vmem:[%s5086_s18 + $0x20] sm:$0xff] }
  0x16   : > { %4681 = vmatprep.subr.bf16.mxu0 %v4680_v8  ;;  %v4760_v37 = vpack.c.bf16 %v3875_v34, %v3874_v33  ;;  %v3876_v38 = vld [vmem:[%s7311_s2 + $0x2b0] sm:$0xff]  ;;  %v3877_v39 = vld [vmem:[%s7311_s2 + $0x2b8] sm:$0xff]  ;;  %v284_v40 = vld [vmem:[%s5086_s18 + $0x28] sm:$0xff] }
  0x17   : > { %v285_v41 = vld [vmem:[%s5086_s18 + $0x30] sm:$0xff]  ;;  %v4764_v42 = vpack.c.bf16 %v3877_v39, %v3876_v38  ;;  %v3878_v43 = vld [vmem:[%s7311_s2 + $0x2c0] sm:$0xff]  ;;  %v3879_v44 = vld [vmem:[%s7311_s2 + $0x2c8] sm:$0xff] }
  0x18   : > { %v286_v45 = vld [vmem:[%s5086_s18 + $0x38] sm:$0xff]  ;;  %v287_v46 = vld [vmem:[%s5086_s18 + $0x40] sm:$0xff]  ;;  %v4768_v47 = vpack.c.bf16 %v3879_v44, %v3878_v43  ;;  %v288_v48 = vld [vmem:[%s5086_s18 + $0x48] sm:$0xff] }
  0x19   : > { %4683 = vmatpush3.bf16.msra.mxu0 %v4680_v8  ;;  %v289_v49 = vld [vmem:[%s5086_s18 + $0x50] sm:$0xff]  ;;  %v290_v50 = vld [vmem:[%s5086_s18 + $0x58] sm:$0xff]  ;;  %v291_v51 = vld [vmem:[%s5086_s18 + $0x60] sm:$0xff] }
  0x1a   : > { %4685 = vmatprep.subr.bf16.mxu0 %v4684_v12  ;;  %v292_v52 = vld [vmem:[%s5086_s18 + $0x68] sm:$0xff]  ;;  %v293_v53 = vld [vmem:[%s5086_s18 + $0x70] sm:$0xff]  ;;  %v294_v54 = vld [vmem:[%s5086_s18 + $0x78] sm:$0xff] }
  0x1b   : > { %v295_v55 = vld [vmem:[%s5086_s18 + $0x80] sm:$0xff]  ;;  %v296_v56 = vld [vmem:[%s5086_s18 + $0x88] sm:$0xff]  ;;  %v297_v57 = vld [vmem:[%s5086_s18 + $0x90] sm:$0xff] }
  0x1c   : > { %v298_v58 = vld [vmem:[%s5086_s18 + $0x98] sm:$0xff]  ;;  %v299_v59 = vld [vmem:[%s5086_s18 + $0xa0] sm:$0xff]  ;;  %v300_v60 = vld [vmem:[%s5086_s18 + $0xa8] sm:$0xff] }
  0x1d   : > { %4687 = vmatpush3.bf16.msra.mxu0 %v4684_v12  ;;  %v301_v61 = vld [vmem:[%s5086_s18 + $0xb0] sm:$0xff]  ;;  %v302_v62 = vld [vmem:[%s5086_s18 + $0xb8] sm:$0xff]  ;;  %v303_v63 = vld [vmem:[%s5086_s18 + $0xc0] sm:$0xff] }
  0x1e   : > { %4689 = vmatprep.subr.bf16.mxu0 %v4688_v15  ;;  %v304_v0 = vld [vmem:[%s5086_s18 + $0xc8] sm:$0xff]  ;;  %v305_v1 = vld [vmem:[%s5086_s18 + $0xd0] sm:$0xff]  ;;  %v306_v2 = vld [vmem:[%s5086_s18 + $0xd8] sm:$0xff] }
  0x1f   : > { %v307_v3 = vld [vmem:[%s5086_s18 + $0xe0] sm:$0xff]  ;;  %v308_v4 = vld [vmem:[%s5086_s18 + $0xe8] sm:$0xff]  ;;  %v309_v5 = vld [vmem:[%s5086_s18 + $0xf0] sm:$0xff] }
  0x20   : > { %v310_v6 = vld [vmem:[%s5086_s18 + $0xf8] sm:$0xff]  ;;  %v3880_v7 = vld [vmem:[%s7311_s2 + $0x2d0] sm:$0xff]  ;;  %v3838_v10 = vld [vmem:[%s7311_s2 + $0x180] sm:$0xff] }
  0x21   : > { %4691 = vmatpush3.bf16.msra.mxu0 %v4688_v15  ;;  %v3881_v8 = vld [vmem:[%s7311_s2 + $0x2d8] sm:$0xff]  ;;  %v3839_v11 = vld [vmem:[%s7311_s2 + $0x188] sm:$0xff]  ;;  %v3882_v12 = vld [vmem:[%s7311_s2 + $0x2e0] sm:$0xff]  ;;  %v7318_v15 = vmov 0.0|0.0  }
  0x22   : > { %4693 = vmatprep.subr.bf16.mxu0 %v4692_v18  ;;  %v4772_v9 = vpack.c.bf16 %v3881_v8, %v3880_v7  ;;  %v4705_v13 = vpack.c.bf16 %v3839_v11, %v3838_v10  ;;  %v3883_v14 = vld [vmem:[%s7311_s2 + $0x2e8] sm:$0xff]  ;;  %4704 = vmatprep.subr.bf16.mxu1 %v7318_v15  ;;  %v3840_v17 = vld [vmem:[%s7311_s2 + $0x190] sm:$0xff]  ;;  %v3842_v23 = vld [vmem:[%s7311_s2 + $0x1a0] sm:$0xff] }
  0x23   : > { %v4776_v16 = vpack.c.bf16 %v3883_v14, %v3882_v12  ;;  %v3884_v19 = vld [vmem:[%s7311_s2 + $0x2f0] sm:$0xff]  ;;  %v3846_v29 = vld [vmem:[%s7311_s2 + $0x1c0] sm:$0xff]  ;;  %v3849_v33 = vld [vmem:[%s7311_s2 + $0x1d8] sm:$0xff] }
  0x24   : > { %4706 = vmatpush1.bf16.msra.mxu1 %v4705_v13  ;;  %v3844_v26 = vld [vmem:[%s7311_s2 + $0x1b0] sm:$0xff]  ;;  %v3853_v39 = vld [vmem:[%s7311_s2 + $0x1f8] sm:$0xff] }
  0x25   : > { %4695 = vmatpush3.bf16.msra.mxu0 %v4692_v18  ;;  %4707 = vmatprep.subr.bf16.mxu1 %v7318_v15  ;;  %v3841_v18 = vld [vmem:[%s7311_s2 + $0x198] sm:$0xff]  ;;  %v3852_v38 = vld [vmem:[%s7311_s2 + $0x1f0] sm:$0xff] }
  0x26   : > { %4697 = vmatprep.subr.bf16.mxu0 %v4696_v21  ;;  %v4708_v20 = vpack.c.bf16 %v3841_v18, %v3840_v17  ;;  %v3856_v44 = vld [vmem:[%s7311_s2 + $0x210] sm:$0xff] }
  0x28   : > { %4709 = vmatpush1.bf16.msra.mxu1 %v4708_v20 }
  0x29   : > { %4699 = vmatpush3.bf16.msra.mxu0 %v4696_v21  ;;  %v3885_v21 = vld [vmem:[%s7311_s2 + $0x2f8] sm:$0xff]  ;;  %4710 = vmatprep.subr.bf16.mxu1 %v7318_v15 }
  0x2a   : > { %4701 = vmatprep.subr.bf16.mxu0 %v4700_v24  ;;  %v4780_v22 = vpack.c.bf16 %v3885_v21, %v3884_v19 }
  0x2d   : > { %4703 = vmatpush3.bf16.msra.mxu0 %v4700_v24  ;;  %v3843_v24 = vld [vmem:[%s7311_s2 + $0x1a8] sm:$0xff] }
  0x2e   : > { %4753 = vmatprep.subr.bf16.mxu0 %v4752_v27  ;;  %v4711_v25 = vpack.c.bf16 %v3843_v24, %v3842_v23  ;;  %v1696_v24 = vld [vmem:[%s7311_s2] sm:$0xff] }
  0x30   : > { %4305 = vmatmul.mubr.f32.vlgmr.msra.gmra.mrb[0].mxu0 %v280_v30  ;;  %4712 = vmatpush1.bf16.msra.mxu1 %v4711_v25  ;;  %v3847_v30 = vld [vmem:[%s7311_s2 + $0x1c8] sm:$0xff] }
  0x31   : > { %4307 = vmatprep.mubr.f32.mxu0 %v281_v31  ;;  %4755 = vmatpush3.bf16.msra.mxu0 %v4752_v27  ;;  %v3845_v27 = vld [vmem:[%s7311_s2 + $0x1b8] sm:$0xff]  ;;  %v4717_v31 = vpack.c.bf16 %v3847_v30, %v3846_v29  ;;  %v1697_v25 = vld [vmem:[%s7311_s2 + $0x8] sm:$0xff] }
  0x32   : > { %4757 = vmatprep.subr.bf16.mxu0 %v4756_v32  ;;  %4713 = vmatprep.subr.bf16.mxu1 %v7318_v15  ;;  %v4714_v28 = vpack.c.bf16 %v3845_v27, %v3844_v26 }
  0x34   : > { %4308 = vmatmul.mubr.f32.gmra.mrb[2].mxu0 %v282_v35  ;;  %4715 = vmatpush1.bf16.msra.mxu1 %v4714_v28  ;;  %v3850_v35 = vld [vmem:[%s7311_s2 + $0x1e0] sm:$0xff] }
  0x35   : > { %4310 = vmatprep.mubr.f32.mxu0 %v283_v36  ;;  %4759 = vmatpush3.bf16.msra.mxu0 %v4756_v32  ;;  %v3848_v32 = vld [vmem:[%s7311_s2 + $0x1d0] sm:$0xff]  ;;  %v3851_v36 = vld [vmem:[%s7311_s2 + $0x1e8] sm:$0xff] }
  0x36   : > { %4761 = vmatprep.subr.bf16.mxu0 %v4760_v37  ;;  %4716 = vmatprep.subr.bf16.mxu1 %v7318_v15  ;;  %v4720_v34 = vpack.c.bf16 %v3849_v33, %v3848_v32 }
  0x38   : > { %4311 = vmatmul.mubr.f32.gmra.mrb[4].mxu0 %v284_v40  ;;  %4718 = vmatpush1.bf16.msra.mxu1 %v4717_v31  ;;  %v4726_v40 = vpack.c.bf16 %v3853_v39, %v3852_v38  ;;  %v1698_v39 = vld [vmem:[%s7311_s2 + $0x10] sm:$0xff] }
  0x39   : > { %4313 = vmatprep.mubr.f32.mxu0 %v285_v41  ;;  %4763 = vmatpush3.bf16.msra.mxu0 %v4760_v37  ;;  %v4723_v37 = vpack.c.bf16 %v3851_v36, %v3850_v35  ;;  %v3854_v41 = vld [vmem:[%s7311_s2 + $0x200] sm:$0xff]  ;;  %v4785_v36 = vpack.c.bf16 %v1697_v25, %v1696_v24 }
  0x3a   : > { %4765 = vmatprep.subr.bf16.mxu0 %v4764_v42  ;;  %4719 = vmatprep.subr.bf16.mxu1 %v7318_v15 }
  0x3c   : > { %4314 = vmatmul.mubr.f32.gmra.mrb[6].mxu0 %v286_v45  ;;  %4721 = vmatpush1.bf16.msra.mxu1 %v4720_v34  ;;  %v3857_v45 = vld [vmem:[%s7311_s2 + $0x218] sm:$0xff] }
  0x3d   : > { %4316 = vmatprep.mubr.f32.mxu0 %v287_v46  ;;  %4767 = vmatpush3.bf16.msra.mxu0 %v4764_v42  ;;  %v3855_v42 = vld [vmem:[%s7311_s2 + $0x208] sm:$0xff]  ;;  %v4732_v46 = vpack.c.bf16 %v3857_v45, %v3856_v44 }
  0x3e   : > { %4769 = vmatprep.subr.bf16.mxu0 %v4768_v47  ;;  %4722 = vmatprep.subr.bf16.mxu1 %v7318_v15  ;;  %v4729_v43 = vpack.c.bf16 %v3855_v42, %v3854_v41 }
  0x40   : > { %4317 = vmatmul.mubr.f32.gmra.mrb[8].mxu0 %v288_v48  ;;  %4724 = vmatpush1.bf16.msra.mxu1 %v4723_v37  ;;  %v3859_v48 = vld [vmem:[%s7311_s2 + $0x228] sm:$0xff] }
  0x41   : > { %4319 = vmatprep.mubr.f32.mxu0 %v289_v49  ;;  %4771 = vmatpush3.bf16.msra.mxu0 %v4768_v47  ;;  %v3858_v47 = vld [vmem:[%s7311_s2 + $0x220] sm:$0xff] }
  0x42   : > { %4773 = vmatprep.subr.bf16.mxu0 %v4772_v9  ;;  %4725 = vmatprep.subr.bf16.mxu1 %v7318_v15  ;;  %v4735_v49 = vpack.c.bf16 %v3859_v48, %v3858_v47 }
  0x44   : > { %4320 = vmatmul.mubr.f32.gmra.mrb[10].mxu0 %v290_v50  ;;  %4727 = vmatpush1.bf16.msra.mxu1 %v4726_v40  ;;  %v3860_v50 = vld [vmem:[%s7311_s2 + $0x230] sm:$0xff]  ;;  %v1699_v40 = vld [vmem:[%s7311_s2 + $0x18] sm:$0xff] }
  0x45   : > { %4322 = vmatprep.mubr.f32.mxu0 %v291_v51  ;;  %4775 = vmatpush3.bf16.msra.mxu0 %v4772_v9  ;;  %v3861_v51 = vld [vmem:[%s7311_s2 + $0x238] sm:$0xff] }
  0x46   : > { %4777 = vmatprep.subr.bf16.mxu0 %v4776_v16  ;;  %4728 = vmatprep.subr.bf16.mxu1 %v7318_v15 }
  0x48   : > { %4323 = vmatmul.mubr.f32.gmra.mrb[12].mxu0 %v292_v52  ;;  %4730 = vmatpush1.bf16.msra.mxu1 %v4729_v43  ;;  %v4738_v52 = vpack.c.bf16 %v3861_v51, %v3860_v50 }
  0x49   : > { %4325 = vmatprep.mubr.f32.mxu0 %v293_v53  ;;  %4779 = vmatpush3.bf16.msra.mxu0 %v4776_v16  ;;  %v3862_v53 = vld [vmem:[%s7311_s2 + $0x240] sm:$0xff] }
  0x4a   : > { %4781 = vmatprep.subr.bf16.mxu0 %v4780_v22  ;;  %4731 = vmatprep.subr.bf16.mxu1 %v7318_v15 }
  0x4c   : > { %4326 = vmatmul.mubr.f32.gmra.mrb[14].mxu0 %v294_v54  ;;  %4733 = vmatpush1.bf16.msra.mxu1 %v4732_v46  ;;  %v3863_v54 = vld [vmem:[%s7311_s2 + $0x248] sm:$0xff] }
  0x4d   : > { %4328 = vmatprep.mubr.f32.mxu0 %v295_v55  ;;  %4783 = vmatpush3.bf16.msra.mxu0 %v4780_v22  ;;  %v4741_v55 = vpack.c.bf16 %v3863_v54, %v3862_v53  ;;  %v4788_v53 = vpack.c.bf16 %v1699_v40, %v1698_v39 }
  0x4e   : > { %4784 = vmatprep.subr.bf16.mxu0 %v7318_v15  ;;  %4734 = vmatprep.subr.bf16.mxu1 %v7318_v15 }
  0x50   : > { %4329 = vmatmul.mubr.f32.gmra.mrb[16].mxu0 %v296_v56  ;;  %4736 = vmatpush1.bf16.msra.mxu1 %v4735_v49  ;;  %v3864_v56 = vld [vmem:[%s7311_s2 + $0x250] sm:$0xff] }
  0x51   : > { %4331 = vmatprep.mubr.f32.mxu0 %v297_v57  ;;  %4737 = vmatprep.subr.bf16.mxu1 %v7318_v15  ;;  %v3865_v57 = vld [vmem:[%s7311_s2 + $0x258] sm:$0xff] }
  0x54   : > { %4332 = vmatmul.mubr.f32.gmra.mrb[18].mxu0 %v298_v58  ;;  %4739 = vmatpush1.bf16.msra.mxu1 %v4738_v52  ;;  %v4744_v58 = vpack.c.bf16 %v3865_v57, %v3864_v56  ;;  %v1701_v56 = vld [vmem:[%s7311_s2 + $0x28] sm:$0xff] }
  0x55   : > { %4334 = vmatprep.mubr.f32.mxu0 %v299_v59  ;;  %4740 = vmatprep.subr.bf16.mxu1 %v7318_v15  ;;  %v3866_v59 = vld [vmem:[%s7311_s2 + $0x260] sm:$0xff] }
  0x58   : > { %4335 = vmatmul.mubr.f32.gmra.mrb[20].mxu0 %v300_v60  ;;  %4742 = vmatpush1.bf16.msra.mxu1 %v4741_v55  ;;  %v3867_v60 = vld [vmem:[%s7311_s2 + $0x268] sm:$0xff]  ;;  %v1700_v55 = vld [vmem:[%s7311_s2 + $0x20] sm:$0xff] }
  0x59   : > { %4337 = vmatprep.mubr.f32.mxu0 %v301_v61  ;;  %4743 = vmatprep.subr.bf16.mxu1 %v7318_v15  ;;  %v4747_v61 = vpack.c.bf16 %v3867_v60, %v3866_v59 }
  0x5c   : > { %4338 = vmatmul.mubr.f32.gmra.mrb[22].mxu0 %v302_v62  ;;  %4745 = vmatpush1.bf16.msra.mxu1 %v4744_v58  ;;  %v3868_v62 = vld [vmem:[%s7311_s2 + $0x270] sm:$0xff] }
  0x5d   : > { %4340 = vmatprep.mubr.f32.mxu0 %v303_v63  ;;  %4746 = vmatprep.subr.bf16.mxu1 %v7318_v15  ;;  %v3869_v63 = vld [vmem:[%s7311_s2 + $0x278] sm:$0xff] }
  0x60   : > { %4341 = vmatmul.mubr.f32.gmra.mrb[24].mxu0 %v304_v0  ;;  %4748 = vmatpush1.bf16.msra.mxu1 %v4747_v61  ;;  %v4750_v0 = vpack.c.bf16 %v3869_v63, %v3868_v62  ;;  %v7485_v63 = vmov 0 }
  0x61   : > { %4343 = vmatprep.mubr.f32.mxu0 %v305_v1  ;;  %4749 = vmatprep.subr.bf16.mxu1 %v7318_v15  ;;  %v1728_v1 = vld [vmem:[%s7311_s2 + $0x100] sm:$0xff] }
  0x64   : > { %4344 = vmatmul.mubr.f32.gmra.mrb[26].mxu0 %v306_v2  ;;  %4751 = vmatpush1.bf16.msra.mxu1 %v4750_v0  ;;  %v1729_v2 = vld [vmem:[%s7311_s2 + $0x108] sm:$0xff] }
  0x65   : > { %4346 = vmatprep.mubr.f32.mxu0 %v307_v3  ;;  %v5317_v3 = vpack.c.bf16 %v1729_v2, %v1728_v1 }
  0x67   : > { %4833 = vmatprep.subr.bf16.mxu1 %v5317_v3 }
  0x68   : > { %4347 = vmatmul.mubr.f32.gmra.mrb[28].mxu0 %v308_v4  ;;  %v591_v4 = vlaneseq }
  0x69   : > { %4349 = vmatprep.mubr.f32.mxu0 %v309_v5 }
  0x6a   : > { %v5320_v5 = vshrl.u32 %v591_v4, 7 }
  0x6c   : > { %4350 = vmatmul.mubr.f32.gmra.mrb[30].mxu0 %v310_v6  ;;  %v5325_v6 = vld [vmem:[%s7313_s4] ss:$0 sm:$0xff]  ;;  %v593_v10 = vadd.s32 8, %v5320_v5  ;;  %v595_v22 = vadd.s32 24, %v5320_v5  ;;  %v597_v33 = vadd.s32 40, %v5320_v5  ;;  %v599_v49 = vadd.s32 56, %v5320_v5 }
  0x6d   : > { %v603_v25 = vadd.s32 88, %v5320_v5 }
  0x6e   : > { %v635_v19 = vand.u32 15, %v593_v10  ;;  %v649_v37 = vand.u32 15, %v595_v22  ;;  %v663_v48 = vand.u32 15, %v597_v33  ;;  %v677_v1 = vand.u32 15, %v599_v49  ;;  %v1702_v10 = vld [vmem:[%s7311_s2 + $0x30] sm:$0xff] }
  0x6f   : > { %v7492_v22 = vmov 0 }
  0x70   : > { %vm5357_vm1 = vcmp.lt.s32.totalorder %v635_v19, 15  ;;  %vm5389_vm2 = vcmp.lt.s32.totalorder %v649_v37, 15  ;;  %vm5415_vm3 = vcmp.lt.s32.totalorder %v663_v48, 15  ;;  %vm5445_vm4 = vcmp.lt.s32.totalorder %v677_v1, 15 }
  0x71   : > { %v7486_v63 = vsel %vm5415_vm3, 4294967295, %v7485_v63  ;;  %v7493_v22 = vsel %vm5445_vm4, 4294967295, %v7492_v22  ;;  %v605_v48 = vadd.s32 104, %v5320_v5 }
  0x72   : > { %7487 = vst [vmem:[#allocation5_spill] sm:$0xff] %v7486_v63  ;;  %7494 = vst [vmem:[#allocation10_spill] sm:$0xff] %v7493_v22 }
 0x103   : > { %v4306_v7 = vpop.f32.mrb[0].mxu0 }
 0x104   : > { %v406_v8 = vadd.f32 %v4306_v7, %v5325_v6  ;;  %v400_v9 = vpop.f32.mrb[1].mxu0  ;;  %v4791_v7 = vpack.c.bf16 %v1701_v56, %v1700_v55  ;;  %v1706_v56 = vld [vmem:[%s7311_s2 + $0x50] sm:$0xff] }
 0x105   : > { %v401_v11 = vadd.f32 %v5325_v6, %v400_v9 }
 0x106   : > { %v5330_v12 = vmax.f32 %v406_v8, 0.0  ;;  %v601_v8 = vadd.s32 72, %v5320_v5 }
 0x107   : > { %v5332_v13 = vmax.f32 %v401_v11, 0.0  ;;  %v4309_v14 = vpop.f32.mrb[2].mxu0  ;;  %v1703_v11 = vld [vmem:[%s7311_s2 + $0x38] sm:$0xff] }
 0x108   : > { %v416_v16 = vadd.f32 %v4309_v14, %v5325_v6  ;;  %v410_v17 = vpop.f32.mrb[3].mxu0  ;;  %v1300_v18 = vrot.slane %v5330_v12, 1 }
 0x109   : > { %v411_v20 = vadd.f32 %v5325_v6, %v410_v17  ;;  %1863 = vmatprep.mubr.f32.mxu1 %v5332_v13  ;;  %v7317_v21 = vrot.slane %v5332_v13, 1  ;;  %v1075_v22 = vrot.slane %v5332_v13, 7 }
 0x10a   : > { %v5340_v23 = vmax.f32 %v416_v16, 0.0 }
 0x10b   : > { %v5348_v26 = vmax.f32 %v411_v20, 0.0  ;;  %v4312_v27 = vpop.f32.mrb[4].mxu0  ;;  %v5353_v28 = vsel %vm7384_vm0, %v7317_v21, %v1300_v18  ;;  %v613_v21 = vadd.s32 168, %v5320_v5 }
 0x10c   : > { %v426_v29 = vadd.f32 %v4312_v27, %v5325_v6  ;;  %v420_v30 = vpop.f32.mrb[5].mxu0  ;;  %4384 = vmatprep.mubr.f32.mxu0 %v5353_v28  ;;  %v1304_v32 = vrot.slane %v5340_v23, 1 }
 0x10d   : > { %v421_v34 = vadd.f32 %v5325_v6, %v420_v30  ;;  %v1302_v35 = vrot.slane %v5348_v26, 1  ;;  %v4794_v30 = vpack.c.bf16 %v1703_v11, %v1702_v10  ;;  %v719_v10 = vand.u32 15, %v605_v48 }
 0x10e   : > { %v5365_v38 = vmax.f32 %v426_v29, 0.0 }
 0x10f   : > { %v5373_v41 = vmax.f32 %v421_v34, 0.0  ;;  %v4315_v42 = vpop.f32.mrb[6].mxu0  ;;  %v5376_v43 = vsel %vm7384_vm0, %v1300_v18, %v1302_v35  ;;  %v5379_v44 = vsel %vm7384_vm0, %v1302_v35, %v1304_v32  ;;  %v1704_v34 = vld [vmem:[%s7311_s2 + $0x40] sm:$0xff]  ;;  %v1705_v35 = vld [vmem:[%s7311_s2 + $0x48] sm:$0xff]  ;;  %vm5535_vm7 = vcmp.lt.s32.totalorder %v719_v10, 15 }
 0x110   : > { %v436_v45 = vadd.f32 %v4315_v42, %v5325_v6  ;;  %v430_v46 = vpop.f32.mrb[7].mxu0  ;;  %4385 = vmatmul.mubr.msk.f32.vlgmr.msra.gmra.mrb[32].mxu0 %vm5357_vm1, %v5376_v43  ;;  %v1308_v47 = vrot.slane %v5365_v38, 1 }
 0x111   : > { %v431_v50 = vadd.f32 %v5325_v6, %v430_v46  ;;  %4387 = vmatprep.mubr.f32.mxu0 %v5379_v44  ;;  %4786 = vmatpush1.bf16.msra.mxu0 %v4785_v36  ;;  %v1306_v52 = vrot.slane %v5373_v41, 1 }
 0x112   : > { %v5394_v54 = vmax.f32 %v436_v45, 0.0  ;;  %4787 = vmatprep.subr.bf16.mxu0 %v7318_v15 }
 0x113   : > { %v5403_v57 = vmax.f32 %v431_v50, 0.0  ;;  %v4318_v58 = vpop.f32.mrb[8].mxu0  ;;  %v5406_v59 = vsel %vm7384_vm0, %v1304_v32, %v1306_v52  ;;  %v5409_v60 = vsel %vm7384_vm0, %v1306_v52, %v1308_v47  ;;  %v691_v32 = vand.u32 15, %v601_v8 }
 0x114   : > { %7483 = vst [vmem:[#allocation3_spill] sm:$0xff] %v5394_v54  ;;  %7484 = vst [vmem:[#allocation4_spill] sm:$0xff] %v5409_v60  ;;  %v446_v61 = vadd.f32 %v4318_v58, %v5325_v6  ;;  %v440_v62 = vpop.f32.mrb[9].mxu0  ;;  %4388 = vmatmul.mubr.msk.f32.gmra.mrb[34].mxu0 %vm5389_vm2, %v5406_v59  ;;  %v1312_v0 = vrot.slane %v5394_v54, 1  ;;  %v7499_v50 = vmov 0  ;;  %v1707_v58 = vld [vmem:[%s7311_s2 + $0x58] sm:$0xff] }
 0x115   : > { %v441_v2 = vadd.f32 %v5325_v6, %v440_v62  ;;  %4390 = vmatprep.mubr.f32.mxu0 %v5409_v60  ;;  %4789 = vmatpush1.bf16.msra.mxu0 %v4788_v53  ;;  %v1310_v4 = vrot.slane %v5403_v57, 1  ;;  %vm5479_vm5 = vcmp.lt.s32.totalorder %v691_v32, 15  ;;  %v4797_v53 = vpack.c.bf16 %v1705_v35, %v1704_v34 }
 0x116   : > { %v5424_v9 = vmax.f32 %v446_v61, 0.0  ;;  %4790 = vmatprep.subr.bf16.mxu0 %v7318_v15  ;;  %v7500_v50 = vsel %vm5479_vm5, 4294967295, %v7499_v50 }
 0x117   : > { %v5433_v14 = vmax.f32 %v441_v2, 0.0  ;;  %v4321_v16 = vpop.f32.mrb[10].mxu0  ;;  %v5436_v17 = vsel %vm7384_vm0, %v1308_v47, %v1310_v4  ;;  %v5439_v18 = vsel %vm7384_vm0, %v1310_v4, %v1312_v0  ;;  %v705_v47 = vand.u32 15, %v603_v25  ;;  %7501 = vst [vmem:[#allocation15_spill] sm:$0xff] %v7500_v50  ;;  %v1708_v25 = vld [vmem:[%s7311_s2 + $0x60] sm:$0xff] }
 0x118   : > { %7488 = vst [vmem:[#allocation6_spill] sm:$0xff] %v5424_v9  ;;  %7490 = vst [vmem:[#allocation8_spill] sm:$0xff] %v5436_v17  ;;  %v456_v19 = vadd.f32 %v4321_v16, %v5325_v6  ;;  %v450_v20 = vpop.f32.mrb[11].mxu0  ;;  %4391 = vmatmul.mubr.msk.f32.gmra.mrb[36].mxu0 %vm5415_vm3, %v5436_v17  ;;  %v1316_v24 = vrot.slane %v5424_v9, 1  ;;  %v7574_v17 = vrot.slane %v5332_v13, 1 }
 0x119   : > { %7489 = vst [vmem:[#allocation7_spill] sm:$0xff] %v5433_v14  ;;  %7491 = vst [vmem:[#allocation9_spill] sm:$0xff] %v5439_v18  ;;  %v451_v27 = vadd.f32 %v5325_v6, %v450_v20  ;;  %4393 = vmatprep.mubr.f32.mxu0 %v5439_v18  ;;  %4792 = vmatpush1.bf16.msra.mxu0 %v4791_v7  ;;  %v1314_v29 = vrot.slane %v5433_v14, 1  ;;  %vm5505_vm6 = vcmp.lt.s32.totalorder %v705_v47, 15  ;;  %v7506_v7 = vmov 0 }
 0x11a   : > { %v5454_v33 = vmax.f32 %v456_v19, 0.0  ;;  %4793 = vmatprep.subr.bf16.mxu0 %v7318_v15  ;;  %v7507_v7 = vsel %vm5505_vm6, 4294967295, %v7506_v7  ;;  %v4800_v19 = vpack.c.bf16 %v1707_v58, %v1706_v56  ;;  %v607_v20 = vadd.s32 120, %v5320_v5  ;;  %v1710_v56 = vld [vmem:[%s7311_s2 + $0x70] sm:$0xff]  ;;  %v1711_v58 = vld [vmem:[%s7311_s2 + $0x78] sm:$0xff] }
 0x11b   : > { %v5463_v36 = vmax.f32 %v451_v27, 0.0  ;;  %v4324_v37 = vpop.f32.mrb[12].mxu0  ;;  %v5466_v39 = vsel %vm7384_vm0, %v1312_v0, %v1314_v29  ;;  %v5469_v40 = vsel %vm7384_vm0, %v1314_v29, %v1316_v24  ;;  %7508 = vst [vmem:[#allocation20_spill] sm:$0xff] %v7507_v7  ;;  %v1709_v27 = vld [vmem:[%s7311_s2 + $0x68] sm:$0xff]  ;;  %v609_v47 = vadd.s32 136, %v5320_v5 }
 0x11c   : > { %7495 = vst [vmem:[#allocation11_spill] sm:$0xff] %v5454_v33  ;;  %7497 = vst [vmem:[#allocation13_spill] sm:$0xff] %v5466_v39  ;;  %v466_v42 = vadd.f32 %v4324_v37, %v5325_v6  ;;  %v460_v45 = vpop.f32.mrb[13].mxu0  ;;  %4394 = vmatmul.mubr.msk.f32.gmra.mrb[38].mxu0 %vm5445_vm4, %v5466_v39  ;;  %v1320_v46 = vrot.slane %v5454_v33, 1  ;;  %v7656_v31 = vld [vmem:[#allocation4_spill] sm:$0xff] }
 0x11d   : > { %7496 = vst [vmem:[#allocation12_spill] sm:$0xff] %v5463_v36  ;;  %7498 = vst [vmem:[#allocation14_spill] sm:$0xff] %v5469_v40  ;;  %v461_v49 = vadd.f32 %v5325_v6, %v460_v45  ;;  %4396 = vmatprep.mubr.f32.mxu0 %v5469_v40  ;;  %4795 = vmatpush1.bf16.msra.mxu0 %v4794_v30  ;;  %v1318_v52 = vrot.slane %v5463_v36, 1 }
 0x11e   : > { %v5484_v55 = vmax.f32 %v466_v42, 0.0  ;;  %4796 = vmatprep.subr.bf16.mxu0 %v7318_v15  ;;  %v7513_v42 = vmov 0 }
 0x11f   : > { %v5493_v61 = vmax.f32 %v461_v49, 0.0  ;;  %v4327_v62 = vpop.f32.mrb[14].mxu0  ;;  %v5496_v0 = vsel %vm7384_vm0, %v1316_v24, %v1318_v52  ;;  %v5499_v1 = vsel %vm7384_vm0, %v1318_v52, %v1320_v46  ;;  %v7514_v42 = vsel %vm5535_vm7, 4294967295, %v7513_v42 }
 0x120   : > { %7502 = vst [vmem:[#allocation16_spill] sm:$0xff] %v5484_v55  ;;  %7504 = vst [vmem:[#allocation18_spill] sm:$0xff] %v5496_v0  ;;  %v476_v2 = vadd.f32 %v4327_v62, %v5325_v6  ;;  %v470_v4 = vpop.f32.mrb[15].mxu0  ;;  %4397 = vmatmul.mubr.msk.f32.gmra.mrb[40].mxu0 %vm5479_vm5, %v5496_v0  ;;  %v1324_v8 = vrot.slane %v5484_v55, 1  ;;  %v4803_v49 = vpack.c.bf16 %v1709_v27, %v1708_v25  ;;  %v733_v52 = vand.u32 15, %v607_v20 }
 0x121   : > { %7503 = vst [vmem:[#allocation17_spill] sm:$0xff] %v5493_v61  ;;  %7505 = vst [vmem:[#allocation19_spill] sm:$0xff] %v5499_v1  ;;  %v471_v11 = vadd.f32 %v5325_v6, %v470_v4  ;;  %4399 = vmatprep.mubr.f32.mxu0 %v5499_v1  ;;  %4798 = vmatpush1.bf16.msra.mxu0 %v4797_v53  ;;  %v1322_v16 = vrot.slane %v5493_v61, 1  ;;  %v747_v20 = vand.u32 15, %v609_v47  ;;  %v611_v25 = vadd.s32 152, %v5320_v5  ;;  %v1712_v47 = vld [vmem:[%s7311_s2 + $0x80] sm:$0xff] }
 0x122   : > { %v5514_v24 = vmax.f32 %v476_v2, 0.0  ;;  %4799 = vmatprep.subr.bf16.mxu0 %v7318_v15  ;;  %7515 = vst [vmem:[#allocation25_spill] sm:$0xff] %v7514_v42  ;;  %vm5569_vm8 = vcmp.lt.s32.totalorder %v733_v52, 15  ;;  %v775_v42 = vand.u32 15, %v613_v21 }
 0x123   : > { %v5523_v29 = vmax.f32 %v471_v11, 0.0  ;;  %v4330_v30 = vpop.f32.mrb[16].mxu0  ;;  %v5526_v32 = vsel %vm7384_vm0, %v1320_v46, %v1322_v16  ;;  %v5529_v34 = vsel %vm7384_vm0, %v1322_v16, %v1324_v8  ;;  %vm5595_vm9 = vcmp.lt.s32.totalorder %v747_v20, 15  ;;  %v1714_v20 = vld [vmem:[%s7311_s2 + $0x90] sm:$0xff] }
 0x124   : > { %7509 = vst [vmem:[#allocation21_spill] sm:$0xff] %v5514_v24  ;;  %7511 = vst [vmem:[#allocation23_spill] sm:$0xff] %v5526_v32  ;;  %v486_v35 = vadd.f32 %v4330_v30, %v5325_v6  ;;  %v480_v37 = vpop.f32.mrb[17].mxu0  ;;  %4400 = vmatmul.mubr.msk.f32.gmra.mrb[42].mxu0 %vm5505_vm6, %v5526_v32  ;;  %v1328_v45 = vrot.slane %v5514_v24, 1  ;;  %vm5659_vm11 = vcmp.lt.s32.totalorder %v775_v42, 15  ;;  %v619_v32 = vadd.s32 216, %v5320_v5 }
 0x125   : > { %7510 = vst [vmem:[#allocation22_spill] sm:$0xff] %v5523_v29  ;;  %7512 = vst [vmem:[#allocation24_spill] sm:$0xff] %v5529_v34  ;;  %v481_v46 = vadd.f32 %v5325_v6, %v480_v37  ;;  %4402 = vmatprep.mubr.f32.mxu0 %v5529_v34  ;;  %4801 = vmatpush1.bf16.msra.mxu0 %v4800_v19  ;;  %v1326_v48 = vrot.slane %v5523_v29, 1 }
 0x126   : > { %v5544_v53 = vmax.f32 %v486_v35, 0.0  ;;  %4802 = vmatprep.subr.bf16.mxu0 %v7318_v15  ;;  %v4806_v35 = vpack.c.bf16 %v1711_v58, %v1710_v56 }
 0x127   : > { %v5553_v62 = vmax.f32 %v481_v46, 0.0  ;;  %v4333_v2 = vpop.f32.mrb[18].mxu0  ;;  %v5556_v4 = vsel %vm7384_vm0, %v1324_v8, %v1326_v48  ;;  %v5559_v10 = vsel %vm7384_vm0, %v1326_v48, %v1328_v45  ;;  %v7520_v8 = vmov 0  ;;  %v1713_v46 = vld [vmem:[%s7311_s2 + $0x88] sm:$0xff] }
 0x128   : > { %7516 = vst [vmem:[#allocation26_spill] sm:$0xff] %v5544_v53  ;;  %7518 = vst [vmem:[#allocation28_spill] sm:$0xff] %v5556_v4  ;;  %v496_v11 = vadd.f32 %v4333_v2, %v5325_v6  ;;  %v490_v16 = vpop.f32.mrb[19].mxu0  ;;  %4403 = vmatmul.mubr.msk.f32.gmra.mrb[44].mxu0 %vm5535_vm7, %v5556_v4  ;;  %v1332_v19 = vrot.slane %v5544_v53, 1  ;;  %v7521_v8 = vsel %vm5569_vm8, 4294967295, %v7520_v8 }
 0x129   : > { %7517 = vst [vmem:[#allocation27_spill] sm:$0xff] %v5553_v62  ;;  %7519 = vst [vmem:[#allocation29_spill] sm:$0xff] %v5559_v10  ;;  %v491_v27 = vadd.f32 %v5325_v6, %v490_v16  ;;  %4405 = vmatprep.mubr.f32.mxu0 %v5559_v10  ;;  %4804 = vmatpush1.bf16.msra.mxu0 %v4803_v49  ;;  %v1330_v30 = vrot.slane %v5553_v62, 1  ;;  %v615_v10 = vadd.s32 184, %v5320_v5 }
 0x12a   : > { %7522 = vst [vmem:[#allocation30_spill] sm:$0xff] %v7521_v8  ;;  %v5574_v37 = vmax.f32 %v496_v11, 0.0  ;;  %4805 = vmatprep.subr.bf16.mxu0 %v7318_v15  ;;  %v7527_v11 = vmov 0  ;;  %v7531_v8 = vmov 0.0|0.0  }
 0x12b   : > { %v5583_v48 = vmax.f32 %v491_v27, 0.0  ;;  %v4336_v49 = vpop.f32.mrb[20].mxu0  ;;  %v5586_v52 = vsel %vm7384_vm0, %v1328_v45, %v1330_v30  ;;  %v5589_v56 = vsel %vm7384_vm0, %v1330_v30, %v1332_v19  ;;  %v7528_v11 = vsel %vm5595_vm9, 4294967295, %v7527_v11 }
 0x12c   : > { %7523 = vst [vmem:[#allocation31_spill] sm:$0xff] %v5574_v37  ;;  %7525 = vst [vmem:[#allocation33_spill] sm:$0xff] %v5586_v52  ;;  %v506_v58 = vadd.f32 %v4336_v49, %v5325_v6  ;;  %v500_v2 = vpop.f32.mrb[21].mxu0  ;;  %4406 = vmatmul.mubr.msk.f32.gmra.mrb[46].mxu0 %vm5569_vm8, %v5586_v52  ;;  %v1336_v16 = vrot.slane %v5574_v37, 1  ;;  %v761_v27 = vand.u32 15, %v611_v25  ;;  %v4809_v49 = vpack.c.bf16 %v1713_v46, %v1712_v47  ;;  %v1715_v25 = vld [vmem:[%s7311_s2 + $0x98] sm:$0xff] }
 0x12d   : > { %7524 = vst [vmem:[#allocation32_spill] sm:$0xff] %v5583_v48  ;;  %7526 = vst [vmem:[#allocation34_spill] sm:$0xff] %v5589_v56  ;;  %v501_v45 = vadd.f32 %v5325_v6, %v500_v2  ;;  %4408 = vmatprep.mubr.f32.mxu0 %v5589_v56  ;;  %4807 = vmatpush1.bf16.msra.mxu0 %v4806_v35  ;;  %v1334_v30 = vrot.slane %v5583_v48, 1  ;;  %v7535_v52 = vmov 0 }
 0x12e   : > { %7529 = vst [vmem:[#allocation35_spill] sm:$0xff] %v7528_v11  ;;  %v5604_v15 = vmax.f32 %v506_v58, 0.0  ;;  %4808 = vmatprep.subr.bf16.mxu0 %v7531_v8  ;;  %vm5625_vm10 = vcmp.lt.s32.totalorder %v761_v27, 15  ;;  %v1716_v27 = vld [vmem:[%s7311_s2 + $0xa0] sm:$0xff]  ;;  %v1717_v11 = vld [vmem:[%s7311_s2 + $0xa8] sm:$0xff] }
 0x12f   : > { %v5613_v2 = vmax.f32 %v501_v45, 0.0  ;;  %v4339_v35 = vpop.f32.mrb[22].mxu0  ;;  %v5616_v56 = vsel %vm7384_vm0, %v1332_v19, %v1334_v30  ;;  %v5619_v47 = vsel %vm7384_vm0, %v1334_v30, %v1336_v16  ;;  %v7536_v52 = vsel %vm5625_vm10, 4294967295, %v7535_v52 }
 0x130   : > { %7530 = vst [vmem:[#allocation36_spill] sm:$0xff] %v5604_v15  ;;  %7533 = vst [vmem:[#allocation38_spill] sm:$0xff] %v5616_v56  ;;  %v516_v46 = vadd.f32 %v4339_v35, %v5325_v6  ;;  %v510_v58 = vpop.f32.mrb[23].mxu0  ;;  %4409 = vmatmul.mubr.msk.f32.gmra.mrb[48].mxu0 %vm5595_vm9, %v5616_v56  ;;  %v1340_v45 = vrot.slane %v5604_v15, 1  ;;  %v4812_v35 = vpack.c.bf16 %v1715_v25, %v1714_v20  ;;  %v789_v56 = vand.u32 15, %v615_v10  ;;  %v1718_v10 = vld [vmem:[%s7311_s2 + $0xb0] sm:$0xff] }
 0x131   : > { %7532 = vst [vmem:[#allocation37_spill] sm:$0xff] %v5613_v2  ;;  %7534 = vst [vmem:[#allocation39_spill] sm:$0xff] %v5619_v47  ;;  %v511_v19 = vadd.f32 %v5325_v6, %v510_v58  ;;  %4411 = vmatprep.mubr.f32.mxu0 %v5619_v47  ;;  %4810 = vmatpush1.bf16.msra.mxu0 %v4809_v49  ;;  %v1338_v30 = vrot.slane %v5613_v2, 1 }
 0x132   : > { %7537 = vst [vmem:[#allocation40_spill] sm:$0xff] %v7536_v52  ;;  %v5634_v4 = vmax.f32 %v516_v46, 0.0  ;;  %4811 = vmatprep.subr.bf16.mxu0 %v7531_v8  ;;  %vm5685_vm12 = vcmp.lt.s32.totalorder %v789_v56, 15  ;;  %v7547_v52 = vmov 0  ;;  %v1720_v56 = vld [vmem:[%s7311_s2 + $0xc0] sm:$0xff] }
 0x133   : > { %v5643_v58 = vmax.f32 %v511_v19, 0.0  ;;  %v4342_v47 = vpop.f32.mrb[24].mxu0  ;;  %v5646_v49 = vsel %vm7384_vm0, %v1336_v16, %v1338_v30  ;;  %v5649_v21 = vsel %vm7384_vm0, %v1338_v30, %v1340_v45  ;;  %v617_v19 = vadd.s32 200, %v5320_v5 }
 0x134   : > { %7538 = vst [vmem:[#allocation41_spill] sm:$0xff] %v5634_v4  ;;  %7540 = vst [vmem:[#allocation43_spill] sm:$0xff] %v5646_v49  ;;  %v526_v20 = vadd.f32 %v4342_v47, %v5325_v6  ;;  %v520_v25 = vpop.f32.mrb[25].mxu0  ;;  %4412 = vmatmul.mubr.msk.f32.gmra.mrb[50].mxu0 %vm5625_vm10, %v5646_v49  ;;  %v1344_v46 = vrot.slane %v5634_v4, 1  ;;  %v7542_v16 = vmov 0  ;;  %v4815_v30 = vpack.c.bf16 %v1717_v11, %v1716_v27 }
 0x135   : > { %7539 = vst [vmem:[#allocation42_spill] sm:$0xff] %v5643_v58  ;;  %7541 = vst [vmem:[#allocation44_spill] sm:$0xff] %v5649_v21  ;;  %v521_v34 = vadd.f32 %v5325_v6, %v520_v25  ;;  %4414 = vmatprep.mubr.f32.mxu0 %v5649_v21  ;;  %4813 = vmatpush1.bf16.msra.mxu0 %v4812_v35  ;;  %v7543_v16 = vsel %vm5659_vm11, 4294967295, %v7542_v16  ;;  %v1342_v47 = vrot.slane %v5643_v58, 1  ;;  %v1719_v25 = vld [vmem:[%s7311_s2 + $0xb8] sm:$0xff]  ;;  %v7548_v52 = vsel %vm5685_vm12, 4294967295, %v7547_v52 }
 0x136   : > { %7544 = vst [vmem:[#allocation45_spill] sm:$0xff] %v7543_v16  ;;  %v5664_v7 = vmax.f32 %v526_v20, 0.0  ;;  %4814 = vmatprep.subr.bf16.mxu0 %v7531_v8  ;;  %7549 = vst [vmem:[#allocation48_spill] sm:$0xff] %v7548_v52  ;;  %v803_v49 = vand.u32 15, %v617_v19  ;;  %v1721_v19 = vld [vmem:[%s7311_s2 + $0xc8] sm:$0xff]  ;;  %v1723_v52 = vld [vmem:[%s7311_s2 + $0xd8] sm:$0xff] }
 0x137   : > { %v5673_v35 = vmax.f32 %v521_v34, 0.0  ;;  %v4345_v42 = vpop.f32.mrb[26].mxu0  ;;  %v5676_v21 = vsel %vm7384_vm0, %v1340_v45, %v1342_v47  ;;  %v5679_v11 = vsel %vm7384_vm0, %v1342_v47, %v1344_v46  ;;  %v4821_v50 = vpack.c.bf16 %v1721_v19, %v1720_v56 }
 0x138   : > { %7545 = vst [vmem:[#allocation46_spill] sm:$0xff] %v5676_v21  ;;  %7546 = vst [vmem:[#allocation47_spill] sm:$0xff] %v5679_v11  ;;  %v536_v27 = vadd.f32 %v4345_v42, %v5325_v6  ;;  %v530_v20 = vpop.f32.mrb[27].mxu0  ;;  %4415 = vmatmul.mubr.msk.f32.gmra.mrb[52].mxu0 %vm5659_vm11, %v5676_v21  ;;  %v1348_v34 = vrot.slane %v5664_v7, 1  ;;  %v4818_v42 = vpack.c.bf16 %v1719_v25, %v1718_v10  ;;  %v621_v25 = vadd.s32 232, %v5320_v5 }
 0x139   : > { %v531_v45 = vadd.f32 %v5325_v6, %v530_v20  ;;  %4417 = vmatprep.mubr.f32.mxu0 %v5679_v11  ;;  %4816 = vmatpush1.bf16.msra.mxu0 %v4815_v30  ;;  %v1346_v47 = vrot.slane %v5673_v35, 1  ;;  %vm5716_vm13 = vcmp.lt.s32.totalorder %v803_v49, 15  ;;  %v7554_v21 = vmov 0  ;;  %v1722_v49 = vld [vmem:[%s7311_s2 + $0xd0] sm:$0xff] }
 0x13a   : > { %v5694_v1 = vmax.f32 %v536_v27, 0.0  ;;  %4817 = vmatprep.subr.bf16.mxu0 %v7531_v8  ;;  %v7555_v21 = vsel %vm5716_vm13, 4294967295, %v7554_v21  ;;  %v831_v19 = vand.u32 15, %v621_v25 }
 0x13b   : > { %v5703_v20 = vmax.f32 %v531_v45, 0.0  ;;  %v4348_v30 = vpop.f32.mrb[28].mxu0  ;;  %v5706_v11 = vsel %vm7384_vm0, %v1344_v46, %v1346_v47  ;;  %v5709_v10 = vsel %vm7384_vm0, %v1346_v47, %v1348_v34  ;;  %7556 = vst [vmem:[#allocation53_spill] sm:$0xff] %v7555_v21 }
 0x13c   : > { %7550 = vst [vmem:[#allocation49_spill] sm:$0xff] %v5694_v1  ;;  %7552 = vst [vmem:[#allocation51_spill] sm:$0xff] %v5706_v11  ;;  %v546_v27 = vadd.f32 %v4348_v30, %v5325_v6  ;;  %v540_v16 = vpop.f32.mrb[29].mxu0  ;;  %4418 = vmatmul.mubr.msk.f32.gmra.mrb[54].mxu0 %vm5685_vm12, %v5706_v11  ;;  %v1352_v45 = vrot.slane %v5694_v1, 1  ;;  %v817_v30 = vand.u32 15, %v619_v32 }
 0x13d   : > { %7551 = vst [vmem:[#allocation50_spill] sm:$0xff] %v5703_v20  ;;  %7553 = vst [vmem:[#allocation52_spill] sm:$0xff] %v5709_v10  ;;  %v541_v46 = vadd.f32 %v5325_v6, %v540_v16  ;;  %4420 = vmatprep.mubr.f32.mxu0 %v5709_v10  ;;  %4819 = vmatpush1.bf16.msra.mxu0 %v4818_v42  ;;  %v1350_v47 = vrot.slane %v5703_v20, 1  ;;  %v628_v16 = vand.u32 15, %v5320_v5 }
 0x13e   : > { %v5724_v0 = vmax.f32 %v546_v27, 0.0  ;;  %4820 = vmatprep.subr.bf16.mxu0 %v7531_v8  ;;  %vm5749_vm15 = vcmp.lt.s32.totalorder %v817_v30, 15  ;;  %v1731_v30 = vld [vmem:[%s7311_s2 + $0x118] sm:$0xff] }
 0x13f   : > { %v5734_v10 = vmax.f32 %v541_v46, 0.0  ;;  %v4351_v42 = vpop.f32.mrb[30].mxu0  ;;  %v5737_v56 = vsel %vm7384_vm0, %v1348_v34, %v1350_v47  ;;  %v5740_v32 = vsel %vm7384_vm0, %v1350_v47, %v1352_v45  ;;  %v7561_v34 = vmov 0 }
 0x140   : > { %7557 = vst [vmem:[#allocation54_spill] sm:$0xff] %v5724_v0  ;;  %7559 = vst [vmem:[#allocation56_spill] sm:$0xff] %v5737_v56  ;;  %v556_v27 = vadd.f32 %v4351_v42, %v5325_v6  ;;  %v550_v11 = vpop.f32.mrb[31].mxu0  ;;  %4421 = vmatmul.mubr.msk.f32.gmra.mrb[56].mxu0 %vm5716_vm13, %v5737_v56  ;;  %v1356_v40 = vrot.slane %v5724_v0, 1  ;;  %v7562_v34 = vsel %vm5749_vm15, 4294967295, %v7561_v34  ;;  %v4824_v47 = vpack.c.bf16 %v1723_v52, %v1722_v49  ;;  %v1724_v42 = vld [vmem:[%s7311_s2 + $0xe0] sm:$0xff] }
 0x141   : > { %7558 = vst [vmem:[#allocation55_spill] sm:$0xff] %v5734_v10  ;;  %7560 = vst [vmem:[#allocation57_spill] sm:$0xff] %v5740_v32  ;;  %v551_v46 = vadd.f32 %v5325_v6, %v550_v11  ;;  %4423 = vmatprep.mubr.f32.mxu0 %v5740_v32  ;;  %4822 = vmatpush1.bf16.msra.mxu0 %v4821_v50  ;;  %v1354_v25 = vrot.slane %v5734_v10, 1  ;;  %vm5760_vm14 = vcmp.gt.s32.totalorder %v628_v16, 0  ;;  %v1725_v50 = vld [vmem:[%s7311_s2 + $0xe8] sm:$0xff]  ;;  %v623_v11 = vadd.s32 248, %v5320_v5 }
 0x142   : > { %7563 = vst [vmem:[#allocation58_spill] sm:$0xff] %v7562_v34  ;;  %v5757_v21 = vmax.f32 %v556_v27, 0.0  ;;  %4823 = vmatprep.subr.bf16.mxu0 %v7531_v8  ;;  %v1730_v52 = vld [vmem:[%s7311_s2 + $0x110] sm:$0xff]  ;;  %vm5782_vm13 = vcmp.lt.s32.totalorder %v831_v19, 15  ;;  %v7570_v32 = vmov 0  ;;  %v600_v6 = vadd.s32 64, %v5320_v5 }
 0x143   : > { %v5774_v49 = vmax.f32 %v551_v46, 0.0  ;;  %v5777_v16 = vsel %vm7384_vm0, %v1352_v45, %v1354_v25  ;;  %v5780_v27 = vsel %vm7384_vm0, %v1354_v25, %v1356_v40  ;;  %v7571_v32 = vsel %vm5782_vm13, 4294967295, %v7570_v32 }
 0x144   : > { %7564 = vst [vmem:[#allocation59_spill] sm:$0xff] %v5757_v21  ;;  %7568 = vst [vmem:[#allocation61_spill] sm:$0xff] %v5777_v16  ;;  %4424 = vmatmul.mubr.msk.f32.gmra.mrb[58].mxu0 %vm5749_vm15, %v5777_v16  ;;  %v1041_v56 = vrot.slane %v5757_v21, 7  ;;  %v1360_v46 = vrot.slane %v5757_v21, 1  ;;  %v594_v45 = vadd.s32 16, %v5320_v5  ;;  %v4827_v25 = vpack.c.bf16 %v1725_v50, %v1724_v42  ;;  %v1733_v42 = vld [vmem:[%s7311_s2 + $0x128] sm:$0xff] }
 0x145   : > { %7567 = vst [vmem:[#allocation60_spill] sm:$0xff] %v5774_v49  ;;  %7569 = vst [vmem:[#allocation62_spill] sm:$0xff] %v5780_v27  ;;  %4426 = vmatprep.mubr.f32.mxu0 %v5780_v27  ;;  %4825 = vmatpush1.bf16.msra.mxu0 %v4824_v47  ;;  %v1358_v19 = vrot.slane %v5774_v49, 1  ;;  %v4836_v39 = vpack.c.bf16 %v1731_v30, %v1730_v52  ;;  %v7399_v18 = vrot.slane %v5774_v49, 7  ;;  %vm7573_vm0 = vcmask 1040384   ;;  %v1732_v47 = vld [vmem:[%s7311_s2 + $0x120] sm:$0xff] }
 0x146   : > { %7572 = vst [vmem:[#allocation63_spill] sm:$0xff] %v7571_v32  ;;  %v5797_v34 = vsel %vm7573_vm0, %v1041_v56, %v1075_v22  ;;  %4826 = vmatprep.subr.bf16.mxu0 %v7531_v8  ;;  %v1076_v16 = vrot.slane %v5330_v12, 7  ;;  %v845_v63 = vand.u32 15, %v623_v11  ;;  %vm7575_vm15 = vcmask 1046528   ;;  %v1727_v52 = vld [vmem:[%s7311_s2 + $0xf8] sm:$0xff]  ;;  %v1734_v32 = vld [vmem:[%s7311_s2 + $0x130] sm:$0xff] }
 0x147   : > { %v5804_v60 = vsel %vm7575_vm15, %v1360_v46, %v7574_v17  ;;  %3940 = vmatmul.mubr.msk.f32.vlgmr.msra.gmra.mrb[0].mxu1 %vm5760_vm14, %v5797_v34  ;;  %vm7577_vm0 = vmmov %vm7575_vm15  ;;  %v1726_v17 = vld [vmem:[%s7311_s2 + $0xf0] sm:$0xff]  ;;  %vm7581_vm15 = vcmask 1040384   ;;  %v1078_v27 = vrot.slane %v5348_v26, 7 }
 0x148   : > { %7576 = vst [vmem:[#allocation64_spill] sm:$0xff] %v5804_v60  ;;  %v5816_v50 = vsel %vm7577_vm0, %v1356_v40, %v1358_v19  ;;  %vm7579_vm12 = vmmov %vm7577_vm0  ;;  %v5830_v30 = vsel %vm7581_vm15, %v7399_v18, %v1041_v56  ;;  %4835 = vmatpush3.bf16.msra.mxu1 %v5317_v3  ;;  %1868 = vmatprep.mubr.f32.mxu1 %v5330_v12  ;;  %v642_v40 = vand.u32 15, %v594_v45  ;;  %vm5847_vm0 = vcmp.lt.s32.totalorder %v845_v63, 15 }
 0x149   : > { %7578 = vst [vmem:[#allocation65_spill] sm:$0xff] %v5816_v50  ;;  %v5819_v11 = vsel %vm7579_vm12, %v1358_v19, %v1360_v46  ;;  %7582 = vst [vmem:[#allocation67_spill] sm:$0xff] %v5830_v30  ;;  %v3918_v46 = vld [vmem:[%s7311_s2 + $0x400] sm:$0xff]  ;;  %v3919_v19 = vld [vmem:[%s7311_s2 + $0x408] sm:$0xff]  ;;  %4427 = vmatmul.mubr.msk.f32.gmra.mrb[60].mxu0 %vm5782_vm13, %v5816_v50  ;;  %4837 = vmatprep.subr.bf16.mxu1 %v4836_v39  ;;  %v4840_v56 = vpack.c.bf16 %v1733_v42, %v1732_v47  ;;  %v7584_v45 = vmov 0  ;;  %v7588_v63 = vmov 0 }
 0x14a   : > { %7580 = vst [vmem:[#allocation66_spill] sm:$0xff] %v5819_v11  ;;  %4429 = vmatprep.mubr.f32.mxu0 %v5819_v11  ;;  %4828 = vmatpush1.bf16.msra.mxu0 %v4827_v25  ;;  %vm7583_vm12 = vmmov %vm7581_vm15  ;;  %v7585_v45 = vsel %vm5847_vm0, 4294967295, %v7584_v45  ;;  %v4830_v18 = vpack.c.bf16 %v1727_v52, %v1726_v17  ;;  %v1735_v47 = vld [vmem:[%s7311_s2 + $0x138] sm:$0xff]  ;;  %vm5863_vm15 = vcmp.gt.s32.totalorder %v642_v40, 0  ;;  %v596_v25 = vadd.s32 32, %v5320_v5  ;;  %v3920_v42 = vld [vmem:[%s7311_s2 + $0x410] sm:$0xff] }
 0x14b   : > { %v5845_v3 = vsel %vm7583_vm12, %v1075_v22, %v1076_v16  ;;  %7586 = vst [vmem:[#allocation68_spill] sm:$0xff] %v7585_v45  ;;  %4829 = vmatprep.subr.bf16.mxu0 %v7531_v8  ;;  %v5860_v22 = vpack.c.bf16 %v3919_v19, %v3918_v46  ;;  %v7589_v63 = vsel %vm5863_vm15, 4294967295, %v7588_v63  ;;  %v3921_v17 = vld [vmem:[%s7311_s2 + $0x418] sm:$0xff]  ;;  %v4844_v52 = vpack.c.bf16 %v1735_v47, %v1734_v32  ;;  %v1736_v19 = vld [vmem:[%s7311_s2 + $0x140] sm:$0xff]  ;;  %v1737_v45 = vld [vmem:[%s7311_s2 + $0x148] sm:$0xff] }
 0x14c   : > { %1869 = vmatmul.mubr.f32.gmra.mrb[2].mxu1 %v5845_v3  ;;  %v5878_v40 = vsel %vm7583_vm12, %v1076_v16, %v1078_v27  ;;  %v7407_v46 = vmov 0.0   ;;  %v656_v32 = vand.u32 15, %v596_v25  ;;  %v3922_v16 = vld [vmem:[%s7311_s2 + $0x420] sm:$0xff]  ;;  %v3923_v47 = vld [vmem:[%s7311_s2 + $0x428] sm:$0xff]  ;;  %v1082_v25 = vrot.slane %v5373_v41, 7 }
 0x14d   : > { %7587 = vst [vmem:[#allocation69_spill] sm:$0xff] %v5860_v22  ;;  %1873 = vmatprep.mubr.f32.mxu1 %v5348_v26  ;;  %4839 = vmatpush3.bf16.msra.mxu1 %v4836_v39  ;;  %v1080_v39 = vrot.slane %v5340_v23, 7  ;;  %v1741_v50 = vld [vmem:[%s7311_s2 + $0x168] sm:$0xff] }
 0x14e   : > { %4430 = vmatmul.mubr.msk.f32.gmra.mrb[62].mxu0 %vm5847_vm0, %v5804_v60  ;;  %4841 = vmatprep.subr.bf16.mxu1 %v4840_v56  ;;  %v4848_v60 = vpack.c.bf16 %v1737_v45, %v1736_v19  ;;  %v7591_v45 = vmov 0  ;;  %v3924_v19 = vld [vmem:[%s7311_s2 + $0x430] sm:$0xff]  ;;  %vm7594_vm0 = vcmask 1040384  }
 0x14f   : > { %4831 = vmatpush1.bf16.msra.mxu0 %v4830_v18  ;;  %2313 = vmatprep.mubr.f32.mxu0 %v7407_v46  ;;  %v5892_v18 = vpack.c.bf16 %v3921_v17, %v3920_v42  ;;  %v5903_v11 = vsel %vm7583_vm12, %v1078_v27, %v1080_v39  ;;  %v1739_v42 = vld [vmem:[%s7311_s2 + $0x158] sm:$0xff]  ;;  %v5916_v27 = vpack.c.bf16 %v3923_v47, %v3922_v16  ;;  %vm5919_vm12 = vcmp.gt.s32.totalorder %v656_v32, 0 }
 0x150   : > { %3941 = vmatmul.mubr.msk.f32.gmra.mrb[4].mxu1 %vm5863_vm15, %v5878_v40  ;;  %4913 = vmatprep.subr.bf16.mxu0 %v5860_v22  ;;  %v7592_v45 = vsel %vm5919_vm12, 4294967295, %v7591_v45  ;;  %v598_v17 = vadd.s32 48, %v5320_v5  ;;  %v5933_v32 = vsel %vm7594_vm0, %v1080_v39, %v1082_v25  ;;  %v1084_v47 = vrot.slane %v5365_v38, 7 }
 0x151   : > { %7590 = vst [vmem:[#allocation70_spill] sm:$0xff] %v5892_v18  ;;  %1878 = vmatprep.mubr.f32.mxu1 %v5340_v23  ;;  %4843 = vmatpush3.bf16.msra.mxu1 %v4840_v56  ;;  %v1738_v56 = vld [vmem:[%s7311_s2 + $0x150] sm:$0xff] }
 0x152   : > { %2314 = vmatmul.mubr.f32.vlgmr.msra.gmra.mrb[64].mxu0 %v7407_v46  ;;  %4845 = vmatprep.subr.bf16.mxu1 %v4844_v52  ;;  %v4852_v16 = vpack.c.bf16 %v1739_v42, %v1738_v56  ;;  %v670_v39 = vand.u32 15, %v598_v17  ;;  %v3926_v56 = vld [vmem:[%s7311_s2 + $0x440] sm:$0xff]  ;;  %v3927_v42 = vld [vmem:[%s7311_s2 + $0x448] sm:$0xff]  ;;  %v1742_v17 = vld [vmem:[%s7311_s2 + $0x170] sm:$0xff] }
 0x153   : > { %2318 = vmatprep.mubr.f32.mxu0 %v7407_v46  ;;  %4915 = vmatpush3.bf16.msra.mxu0 %v5860_v22  ;;  %v3925_v46 = vld [vmem:[%s7311_s2 + $0x438] sm:$0xff]  ;;  %v7593_v22 = vmov 0.0  }
 0x154   : > { %1879 = vmatmul.mubr.f32.gmra.mrb[6].mxu1 %v5903_v11  ;;  %4917 = vmatprep.subr.bf16.mxu0 %v5892_v18 }
 0x155   : > { %1883 = vmatprep.mubr.f32.mxu1 %v5373_v41  ;;  %4847 = vmatpush3.bf16.msra.mxu1 %v4844_v52  ;;  %v1740_v52 = vld [vmem:[%s7311_s2 + $0x160] sm:$0xff] }
 0x156   : > { %2319 = vmatmul.mubr.f32.gmra.mrb[66].mxu0 %v7593_v22  ;;  %4849 = vmatprep.subr.bf16.mxu1 %v4848_v60 }
 0x157   : > { %2323 = vmatprep.mubr.f32.mxu0 %v5332_v13  ;;  %4919 = vmatpush3.bf16.msra.mxu0 %v5892_v18  ;;  %v5947_v13 = vpack.c.bf16 %v3925_v46, %v3924_v19  ;;  %v4856_v18 = vpack.c.bf16 %v1741_v50, %v1740_v52  ;;  %v5961_v46 = vsel %vm7594_vm0, %v1082_v25, %v1084_v47  ;;  %v1743_v19 = vld [vmem:[%s7311_s2 + $0x178] sm:$0xff]  ;;  %v3928_v50 = vld [vmem:[%s7311_s2 + $0x450] sm:$0xff] }
 0x158   : > { %3942 = vmatmul.mubr.msk.f32.gmra.mrb[8].mxu1 %vm5919_vm12, %v5933_v32  ;;  %4921 = vmatprep.subr.bf16.mxu0 %v5916_v27  ;;  %v3929_v25 = vld [vmem:[%s7311_s2 + $0x458] sm:$0xff]  ;;  %v4860_v52 = vpack.c.bf16 %v1743_v19, %v1742_v17 }
 0x159   : > { %1888 = vmatprep.mubr.f32.mxu1 %v5365_v38  ;;  %4851 = vmatpush3.bf16.msra.mxu1 %v4848_v60  ;;  %v1086_v60 = vrot.slane %v5403_v57, 7 }
 0x15a   : > { %3972 = vmatmul.mubr.msk.f32.gmra.mrb[68].mxu0 %vm5760_vm14, %v5797_v34  ;;  %4853 = vmatprep.subr.bf16.mxu1 %v4852_v16  ;;  %vm5976_vm14 = vcmp.gt.s32.totalorder %v670_v39, 0  ;;  %v7595_v34 = vmov 0 }
 0x15b   : > { %2328 = vmatprep.mubr.f32.mxu0 %v5330_v12  ;;  %4923 = vmatpush3.bf16.msra.mxu0 %v5916_v27  ;;  %v5973_v12 = vpack.c.bf16 %v3927_v42, %v3926_v56  ;;  %v7596_v34 = vsel %vm5976_vm14, 4294967295, %v7595_v34  ;;  %v5990_v39 = vsel %vm7594_vm0, %v1084_v47, %v1086_v60  ;;  %v1088_v56 = vrot.slane %v5394_v54, 7  ;;  %v3930_v47 = vld [vmem:[%s7311_s2 + $0x460] sm:$0xff]  ;;  %v3931_v42 = vld [vmem:[%s7311_s2 + $0x468] sm:$0xff] }
 0x15c   : > { %1889 = vmatmul.mubr.f32.gmra.mrb[10].mxu1 %v5961_v46  ;;  %4925 = vmatprep.subr.bf16.mxu0 %v5947_v13  ;;  %v6018_v19 = vpack.c.bf16 %v3931_v42, %v3930_v47  ;;  %v1092_v47 = vrot.slane %v5424_v9, 7 }
 0x15d   : > { %1893 = vmatprep.mubr.f32.mxu1 %v5403_v57  ;;  %4855 = vmatpush3.bf16.msra.mxu1 %v4852_v16  ;;  %v5998_v16 = vpack.c.bf16 %v3929_v25, %v3928_v50  ;;  %v6012_v17 = vsel %vm7594_vm0, %v1086_v60, %v1088_v56  ;;  %v602_v50 = vadd.s32 80, %v5320_v5  ;;  %v3932_v60 = vld [vmem:[%s7311_s2 + $0x470] sm:$0xff]  ;;  %v3933_v25 = vld [vmem:[%s7311_s2 + $0x478] sm:$0xff] }
 0x15e   : > { %2329 = vmatmul.mubr.f32.gmra.mrb[70].mxu0 %v5845_v3  ;;  %4857 = vmatprep.subr.bf16.mxu1 %v4856_v18  ;;  %v684_v3 = vand.u32 15, %v600_v6  ;;  %7598 = vst [vmem:[#allocation72_spill] sm:$0xff] %v6012_v17  ;;  %7599 = vst [vmem:[#allocation73_spill] sm:$0xff] %v6018_v19  ;;  %v7600_v6 = vmov 0 }
 0x15f   : > { %2333 = vmatprep.mubr.f32.mxu0 %v5348_v26  ;;  %4927 = vmatpush3.bf16.msra.mxu0 %v5947_v13  ;;  %7597 = vst [vmem:[#allocation71_spill] sm:$0xff] %v5998_v16  ;;  %v698_v42 = vand.u32 15, %v602_v50  ;;  %v7604_v50 = vmov 0 }
 0x160   : > { %3943 = vmatmul.mubr.msk.f32.gmra.mrb[12].mxu1 %vm5976_vm14, %v5990_v39  ;;  %4929 = vmatprep.subr.bf16.mxu0 %v5973_v12  ;;  %vm6021_vm13 = vcmp.gt.s32.totalorder %v684_v3, 0 }
 0x161   : > { %1898 = vmatprep.mubr.f32.mxu1 %v5394_v54  ;;  %4859 = vmatpush3.bf16.msra.mxu1 %v4856_v18  ;;  %v1090_v18 = vrot.slane %v5433_v14, 7  ;;  %v7601_v6 = vsel %vm6021_vm13, 4294967295, %v7600_v6 }
 0x162   : > { %3973 = vmatmul.mubr.msk.f32.gmra.mrb[72].mxu0 %vm5863_vm15, %v5878_v40  ;;  %4861 = vmatprep.subr.bf16.mxu1 %v4860_v52  ;;  %vm6059_vm15 = vcmp.gt.s32.totalorder %v698_v42, 0 }
 0x163   : > { %2338 = vmatprep.mubr.f32.mxu0 %v5340_v23  ;;  %4931 = vmatpush3.bf16.msra.mxu0 %v5973_v12  ;;  %v6036_v3 = vsel %vm7594_vm0, %v1088_v56, %v1090_v18  ;;  %v6052_v56 = vsel %vm7594_vm0, %v1090_v18, %v1092_v47  ;;  %v7605_v50 = vsel %vm6059_vm15, 4294967295, %v7604_v50 }
 0x164   : > { %1899 = vmatmul.mubr.f32.gmra.mrb[14].mxu1 %v6012_v17  ;;  %4933 = vmatprep.subr.bf16.mxu0 %v5998_v16  ;;  %7603 = vst [vmem:[#allocation75_spill] sm:$0xff] %v6052_v56 }
 0x165   : > { %1903 = vmatprep.mubr.f32.mxu1 %v5433_v14  ;;  %4863 = vmatpush3.bf16.msra.mxu1 %v4860_v52  ;;  %v6044_v52 = vpack.c.bf16 %v3933_v25, %v3932_v60  ;;  %v604_v60 = vadd.s32 96, %v5320_v5  ;;  %v1096_v25 = vrot.slane %v5454_v33, 7 }
 0x166   : > { %2339 = vmatmul.mubr.f32.gmra.mrb[74].mxu0 %v5903_v11  ;;  %4864 = vmatprep.subr.bf16.mxu1 %v7531_v8 }
 0x167   : > { %2343 = vmatprep.mubr.f32.mxu0 %v5373_v41  ;;  %4935 = vmatpush3.bf16.msra.mxu0 %v5998_v16  ;;  %7602 = vst [vmem:[#allocation74_spill] sm:$0xff] %v6044_v52  ;;  %v1094_v16 = vrot.slane %v5463_v36, 7  ;;  %v712_v42 = vand.u32 15, %v604_v60  ;;  %v606_v60 = vadd.s32 112, %v5320_v5 }
 0x168   : > { %3944 = vmatmul.mubr.msk.f32.gmra.mrb[16].mxu1 %vm6021_vm13, %v6036_v3  ;;  %4937 = vmatprep.subr.bf16.mxu0 %v6018_v19 }
 0x169   : > { %1908 = vmatprep.mubr.f32.mxu1 %v5424_v9  ;;  %v6067_v18 = vsel %vm7594_vm0, %v1092_v47, %v1094_v16 }
 0x16a   : > { %3974 = vmatmul.mubr.msk.f32.gmra.mrb[76].mxu0 %vm5919_vm12, %v5933_v32  ;;  %vm7606_vm12 = vmmov %vm7594_vm0  ;;  %vm6085_vm0 = vcmp.gt.s32.totalorder %v712_v42, 0  ;;  %v726_v42 = vand.u32 15, %v606_v60  ;;  %v608_v60 = vadd.s32 128, %v5320_v5 }
 0x16b   : > { %2348 = vmatprep.mubr.f32.mxu0 %v5365_v38  ;;  %4939 = vmatpush3.bf16.msra.mxu0 %v6018_v19  ;;  %v6080_v47 = vsel %vm7606_vm12, %v1094_v16, %v1096_v25  ;;  %v1098_v19 = vrot.slane %v5493_v61, 7  ;;  %v1100_v16 = vrot.slane %v5484_v55, 7 }
 0x16c   : > { %1909 = vmatmul.mubr.f32.gmra.mrb[18].mxu1 %v6052_v56  ;;  %4941 = vmatprep.subr.bf16.mxu0 %v6044_v52  ;;  %7607 = vst [vmem:[#allocation76_spill] sm:$0xff] %v6080_v47 }
 0x16d   : > { %1913 = vmatprep.mubr.f32.mxu1 %v5463_v36 }
 0x16e   : > { %2349 = vmatmul.mubr.f32.gmra.mrb[78].mxu0 %v5961_v46 }
 0x16f   : > { %2353 = vmatprep.mubr.f32.mxu0 %v5403_v57  ;;  %4943 = vmatpush3.bf16.msra.mxu0 %v6044_v52  ;;  %v7608_v52 = vmov 0 }
 0x170   : > { %3945 = vmatmul.mubr.msk.f32.gmra.mrb[20].mxu1 %vm6059_vm15, %v6067_v18  ;;  %v7609_v52 = vsel %vm6085_vm0, 4294967295, %v7608_v52 }
 0x171   : > { %1918 = vmatprep.mubr.f32.mxu1 %v5454_v33 }
 0x172   : > { %3975 = vmatmul.mubr.msk.f32.gmra.mrb[80].mxu0 %vm5976_vm14, %v5990_v39  ;;  %vm7610_vm14 = vmmov %vm7606_vm12 }
 0x173   : > { %2358 = vmatprep.mubr.f32.mxu0 %v5394_v54  ;;  %v6093_v54 = vsel %vm7610_vm14, %v1096_v25, %v1098_v19  ;;  %v1102_v25 = vrot.slane %v5523_v29, 7  ;;  %vm6110_vm14 = vcmp.gt.s32.totalorder %v726_v42, 0  ;;  %v740_v42 = vand.u32 15, %v608_v60 }
 0x174   : > { %1919 = vmatmul.mubr.f32.gmra.mrb[22].mxu1 %v6080_v47  ;;  %v610_v60 = vadd.s32 144, %v5320_v5 }
 0x175   : > { %1923 = vmatprep.mubr.f32.mxu1 %v5493_v61 }
 0x176   : > { %2359 = vmatmul.mubr.f32.gmra.mrb[82].mxu0 %v6012_v17  ;;  %v7612_v17 = vmov 0 }
 0x177   : > { %2363 = vmatprep.mubr.f32.mxu0 %v5433_v14  ;;  %v6105_v14 = vsel %vm7606_vm12, %v1098_v19, %v1100_v16  ;;  %v7613_v17 = vsel %vm6110_vm14, 4294967295, %v7612_v17  ;;  %v1104_v19 = vrot.slane %v5514_v24, 7 }
 0x178   : > { %3946 = vmatmul.mubr.msk.f32.gmra.mrb[24].mxu1 %vm6085_vm0, %v6093_v54  ;;  %7611 = vst [vmem:[#allocation77_spill] sm:$0xff] %v6105_v14 }
 0x179   : > { %1928 = vmatprep.mubr.f32.mxu1 %v5484_v55 }
 0x17a   : > { %3976 = vmatmul.mubr.msk.f32.gmra.mrb[84].mxu0 %vm6021_vm13, %v6036_v3  ;;  %vm7614_vm13 = vmmov %vm7606_vm12 }
 0x17b   : > { %2368 = vmatprep.mubr.f32.mxu0 %v5424_v9  ;;  %v6118_v9 = vsel %vm7614_vm13, %v1100_v16, %v1102_v25  ;;  %v1106_v16 = vrot.slane %v5553_v62, 7  ;;  %vm6135_vm13 = vcmp.gt.s32.totalorder %v740_v42, 0  ;;  %v754_v42 = vand.u32 15, %v610_v60 }
 0x17c   : > { %1929 = vmatmul.mubr.f32.gmra.mrb[26].mxu1 %v6105_v14  ;;  %v612_v60 = vadd.s32 160, %v5320_v5 }
 0x17d   : > { %1933 = vmatprep.mubr.f32.mxu1 %v5523_v29 }
 0x17e   : > { %2369 = vmatmul.mubr.f32.gmra.mrb[86].mxu0 %v6052_v56  ;;  %v7616_v56 = vmov 0 }
 0x17f   : > { %2373 = vmatprep.mubr.f32.mxu0 %v5463_v36  ;;  %v6130_v36 = vsel %vm7606_vm12, %v1102_v25, %v1104_v19  ;;  %v7617_v56 = vsel %vm6135_vm13, 4294967295, %v7616_v56  ;;  %v1108_v25 = vrot.slane %v5544_v53, 7 }
 0x180   : > { %3947 = vmatmul.mubr.msk.f32.gmra.mrb[28].mxu1 %vm6110_vm14, %v6118_v9  ;;  %7615 = vst [vmem:[#allocation78_spill] sm:$0xff] %v6130_v36 }
 0x181   : > { %1938 = vmatprep.mubr.f32.mxu1 %v5514_v24 }
 0x182   : > { %3977 = vmatmul.mubr.msk.f32.gmra.mrb[88].mxu0 %vm6059_vm15, %v6067_v18  ;;  %vm7618_vm15 = vmmov %vm7606_vm12 }
 0x183   : > { %2378 = vmatprep.mubr.f32.mxu0 %v5454_v33  ;;  %v6143_v33 = vsel %vm7618_vm15, %v1104_v19, %v1106_v16  ;;  %v1110_v19 = vrot.slane %v5583_v48, 7  ;;  %vm6160_vm15 = vcmp.gt.s32.totalorder %v754_v42, 0  ;;  %v768_v42 = vand.u32 15, %v612_v60 }
 0x184   : > { %1939 = vmatmul.mubr.f32.gmra.mrb[30].mxu1 %v6130_v36  ;;  %v614_v60 = vadd.s32 176, %v5320_v5 }
 0x185   : > { %1943 = vmatprep.mubr.f32.mxu1 %v5553_v62 }
 0x186   : > { %2379 = vmatmul.mubr.f32.gmra.mrb[90].mxu0 %v6080_v47  ;;  %v7620_v47 = vmov 0 }
 0x187   : > { %2383 = vmatprep.mubr.f32.mxu0 %v5493_v61  ;;  %v6155_v61 = vsel %vm7606_vm12, %v1106_v16, %v1108_v25  ;;  %v7621_v47 = vsel %vm6160_vm15, 4294967295, %v7620_v47  ;;  %v1112_v16 = vrot.slane %v5574_v37, 7 }
 0x188   : > { %3948 = vmatmul.mubr.msk.f32.gmra.mrb[32].mxu1 %vm6135_vm13, %v6143_v33  ;;  %7619 = vst [vmem:[#allocation79_spill] sm:$0xff] %v6155_v61 }
 0x189   : > { %1948 = vmatprep.mubr.f32.mxu1 %v5544_v53 }
 0x18a   : > { %3978 = vmatmul.mubr.msk.f32.gmra.mrb[92].mxu0 %vm6085_vm0, %v6093_v54  ;;  %vm7622_vm0 = vmmov %vm7606_vm12 }
 0x18b   : > { %2388 = vmatprep.mubr.f32.mxu0 %v5484_v55  ;;  %v6168_v55 = vsel %vm7622_vm0, %v1108_v25, %v1110_v19  ;;  %vm7623_vm12 = vmmov %vm7622_vm0  ;;  %v1114_v25 = vrot.slane %v5613_v2, 7  ;;  %vm6185_vm0 = vcmp.gt.s32.totalorder %v768_v42, 0  ;;  %v782_v42 = vand.u32 15, %v614_v60 }
 0x18c   : > { %1949 = vmatmul.mubr.f32.gmra.mrb[34].mxu1 %v6155_v61  ;;  %v616_v60 = vadd.s32 192, %v5320_v5 }
 0x18d   : > { %1953 = vmatprep.mubr.f32.mxu1 %v5583_v48 }
 0x18e   : > { %2389 = vmatmul.mubr.f32.gmra.mrb[94].mxu0 %v6105_v14  ;;  %v7625_v14 = vmov 0 }
 0x18f   : > { %2393 = vmatprep.mubr.f32.mxu0 %v5523_v29  ;;  %v6180_v29 = vsel %vm7623_vm12, %v1110_v19, %v1112_v16  ;;  %v7626_v14 = vsel %vm6185_vm0, 4294967295, %v7625_v14  ;;  %v1116_v19 = vrot.slane %v5604_v15, 7 }
 0x190   : > { %3949 = vmatmul.mubr.msk.f32.gmra.mrb[36].mxu1 %vm6160_vm15, %v6168_v55  ;;  %7624 = vst [vmem:[#allocation80_spill] sm:$0xff] %v6180_v29 }
 0x191   : > { %1958 = vmatprep.mubr.f32.mxu1 %v5574_v37 }
 0x192   : > { %3979 = vmatmul.mubr.msk.f32.gmra.mrb[96].mxu0 %vm6110_vm14, %v6118_v9  ;;  %vm7627_vm14 = vmmov %vm7623_vm12 }
 0x193   : > { %2398 = vmatprep.mubr.f32.mxu0 %v5514_v24  ;;  %v6193_v24 = vsel %vm7627_vm14, %v1112_v16, %v1114_v25  ;;  %v1118_v16 = vrot.slane %v5643_v58, 7  ;;  %vm6210_vm14 = vcmp.gt.s32.totalorder %v782_v42, 0  ;;  %v796_v42 = vand.u32 15, %v616_v60 }
 0x194   : > { %1959 = vmatmul.mubr.f32.gmra.mrb[38].mxu1 %v6180_v29  ;;  %v618_v60 = vadd.s32 208, %v5320_v5 }
 0x195   : > { %1963 = vmatprep.mubr.f32.mxu1 %v5613_v2 }
 0x196   : > { %2399 = vmatmul.mubr.f32.gmra.mrb[98].mxu0 %v6130_v36  ;;  %v7629_v36 = vmov 0 }
 0x197   : > { %2403 = vmatprep.mubr.f32.mxu0 %v5553_v62  ;;  %v6205_v62 = vsel %vm7623_vm12, %v1114_v25, %v1116_v19  ;;  %v7630_v36 = vsel %vm6210_vm14, 4294967295, %v7629_v36  ;;  %v1120_v25 = vrot.slane %v5634_v4, 7 }
 0x198   : > { %3950 = vmatmul.mubr.msk.f32.gmra.mrb[40].mxu1 %vm6185_vm0, %v6193_v24  ;;  %7628 = vst [vmem:[#allocation81_spill] sm:$0xff] %v6205_v62 }
 0x199   : > { %1968 = vmatprep.mubr.f32.mxu1 %v5604_v15 }
 0x19a   : > { %3980 = vmatmul.mubr.msk.f32.gmra.mrb[100].mxu0 %vm6135_vm13, %v6143_v33  ;;  %vm7631_vm13 = vmmov %vm7623_vm12 }
 0x19b   : > { %2408 = vmatprep.mubr.f32.mxu0 %v5544_v53  ;;  %v6218_v53 = vsel %vm7631_vm13, %v1116_v19, %v1118_v16  ;;  %v1122_v19 = vrot.slane %v5673_v35, 7  ;;  %vm6235_vm13 = vcmp.gt.s32.totalorder %v796_v42, 0  ;;  %v810_v42 = vand.u32 15, %v618_v60 }
 0x19c   : > { %1969 = vmatmul.mubr.f32.gmra.mrb[42].mxu1 %v6205_v62  ;;  %v620_v60 = vadd.s32 224, %v5320_v5 }
 0x19d   : > { %1973 = vmatprep.mubr.f32.mxu1 %v5643_v58 }
 0x19e   : > { %2409 = vmatmul.mubr.f32.gmra.mrb[102].mxu0 %v6155_v61  ;;  %v7632_v61 = vmov 0 }
 0x19f   : > { %2413 = vmatprep.mubr.f32.mxu0 %v5583_v48  ;;  %v6230_v48 = vsel %vm7623_vm12, %v1118_v16, %v1120_v25  ;;  %v7633_v61 = vsel %vm6235_vm13, 4294967295, %v7632_v61  ;;  %v1124_v16 = vrot.slane %v5664_v7, 7 }
 0x1a0   : > { %3951 = vmatmul.mubr.msk.f32.gmra.mrb[44].mxu1 %vm6210_vm14, %v6218_v53  ;;  %7634 = vst [vmem:[#allocation82_spill] sm:$0xff] %v7633_v61 }
 0x1a1   : > { %1978 = vmatprep.mubr.f32.mxu1 %v5634_v4 }
 0x1a2   : > { %3981 = vmatmul.mubr.msk.f32.gmra.mrb[104].mxu0 %vm6160_vm15, %v6168_v55  ;;  %vm7635_vm15 = vmmov %vm7623_vm12 }
 0x1a3   : > { %2418 = vmatprep.mubr.f32.mxu0 %v5574_v37  ;;  %v6243_v37 = vsel %vm7635_vm15, %v1120_v25, %v1122_v19  ;;  %v1126_v25 = vrot.slane %v5703_v20, 7  ;;  %vm6260_vm15 = vcmp.gt.s32.totalorder %v810_v42, 0  ;;  %v824_v42 = vand.u32 15, %v620_v60 }
 0x1a4   : > { %1979 = vmatmul.mubr.f32.gmra.mrb[46].mxu1 %v6230_v48  ;;  %v622_v60 = vadd.s32 240, %v5320_v5 }
 0x1a5   : > { %1983 = vmatprep.mubr.f32.mxu1 %v5673_v35 }
 0x1a6   : > { %2419 = vmatmul.mubr.f32.gmra.mrb[106].mxu0 %v6180_v29  ;;  %v7637_v29 = vmov 0 }
 0x1a7   : > { %2423 = vmatprep.mubr.f32.mxu0 %v5613_v2  ;;  %v6255_v2 = vsel %vm7623_vm12, %v1122_v19, %v1124_v16  ;;  %v7638_v29 = vsel %vm6260_vm15, 4294967295, %v7637_v29  ;;  %v1128_v19 = vrot.slane %v5694_v1, 7 }
 0x1a8   : > { %3952 = vmatmul.mubr.msk.f32.gmra.mrb[48].mxu1 %vm6235_vm13, %v6243_v37  ;;  %7636 = vst [vmem:[#allocation83_spill] sm:$0xff] %v6255_v2  ;;  %7639 = vst [vmem:[#allocation84_spill] sm:$0xff] %v7638_v29  ;;  %v7692_v29 = vld [vmem:[#allocation61_spill] sm:$0xff] }
 0x1a9   : > { %1988 = vmatprep.mubr.f32.mxu1 %v5664_v7 }
 0x1aa   : > { %3982 = vmatmul.mubr.msk.f32.gmra.mrb[108].mxu0 %vm6185_vm0, %v6193_v24  ;;  %vm7640_vm0 = vmmov %vm7623_vm12 }
 0x1ab   : > { %2428 = vmatprep.mubr.f32.mxu0 %v5604_v15  ;;  %v6268_v15 = vsel %vm7640_vm0, %v1124_v16, %v1126_v25  ;;  %vm7642_vm12 = vmmov %vm7640_vm0  ;;  %v1130_v16 = vrot.slane %v5734_v10, 7  ;;  %vm6285_vm0 = vcmp.gt.s32.totalorder %v824_v42, 0  ;;  %v838_v42 = vand.u32 15, %v622_v60 }
 0x1ac   : > { %1989 = vmatmul.mubr.f32.gmra.mrb[50].mxu1 %v6255_v2  ;;  %7641 = vst [vmem:[#allocation85_spill] sm:$0xff] %v6268_v15  ;;  %v7653_v60 = vrot.slane %v5774_v49, 7 }
 0x1ad   : > { %1993 = vmatprep.mubr.f32.mxu1 %v5703_v20 }
 0x1ae   : > { %2429 = vmatmul.mubr.f32.gmra.mrb[110].mxu0 %v6205_v62  ;;  %v7644_v62 = vmov 0 }
 0x1af   : > { %2433 = vmatprep.mubr.f32.mxu0 %v5643_v58  ;;  %v6280_v58 = vsel %vm7642_vm12, %v1126_v25, %v1128_v19  ;;  %v7645_v62 = vsel %vm6285_vm0, 4294967295, %v7644_v62  ;;  %v1132_v25 = vrot.slane %v5724_v0, 7 }
 0x1b0   : > { %3953 = vmatmul.mubr.msk.f32.gmra.mrb[52].mxu1 %vm6260_vm15, %v6268_v15  ;;  %7643 = vst [vmem:[#allocation86_spill] sm:$0xff] %v6280_v58  ;;  %7646 = vst [vmem:[#allocation87_spill] sm:$0xff] %v7645_v62  ;;  %v3913_v62 = vld [vmem:[%s7311_s2 + $0x3d8] sm:$0xff] }
 0x1b1   : > { %1998 = vmatprep.mubr.f32.mxu1 %v5694_v1  ;;  %v6305_v5 = vsel %vm7642_vm12, %v1130_v16, %v1132_v25 }
 0x1b2   : > { %3983 = vmatmul.mubr.msk.f32.gmra.mrb[112].mxu0 %vm6210_vm14, %v6218_v53  ;;  %vm7647_vm14 = vmmov %vm7642_vm12  ;;  %7649 = vst [vmem:[#allocation89_spill] sm:$0xff] %v6305_v5 }
 0x1b3   : > { %2438 = vmatprep.mubr.f32.mxu0 %v5634_v4  ;;  %v6293_v4 = vsel %vm7647_vm14, %v1128_v19, %v1130_v16  ;;  %vm6309_vm14 = vcmp.gt.s32.totalorder %v838_v42, 0  ;;  %v7650_v19 = vmov 0  ;;  %v3886_v16 = vld [vmem:[%s7311_s2 + $0x300] sm:$0xff]  ;;  %v3887_v42 = vld [vmem:[%s7311_s2 + $0x308] sm:$0xff] }
 0x1b4   : > { %1999 = vmatmul.mubr.f32.gmra.mrb[54].mxu1 %v6280_v58  ;;  %7648 = vst [vmem:[#allocation88_spill] sm:$0xff] %v6293_v4  ;;  %v7651_v19 = vsel %vm6309_vm14, 4294967295, %v7650_v19 }
 0x1b5   : > { %2003 = vmatprep.mubr.f32.mxu1 %v5734_v10  ;;  %7652 = vst [vmem:[#allocation90_spill] sm:$0xff] %v7651_v19  ;;  %v7675_v19 = vld [vmem:[#allocation38_spill] sm:$0xff] }
 0x1b6   : > { %2439 = vmatmul.mubr.f32.gmra.mrb[114].mxu0 %v6230_v48 }
 0x1b7   : > { %2443 = vmatprep.mubr.f32.mxu0 %v5673_v35 }
 0x1b8   : > { %3954 = vmatmul.mubr.msk.f32.gmra.mrb[56].mxu1 %vm6285_vm0, %v6293_v4 }
 0x1b9   : > { %2008 = vmatprep.mubr.f32.mxu1 %v5724_v0 }
 0x1ba   : > { %3984 = vmatmul.mubr.msk.f32.gmra.mrb[116].mxu0 %vm6235_vm13, %v6243_v37  ;;  %vm7654_vm13 = vmmov %vm7642_vm12  ;;  %vm7733_vm12 = vnez %v7621_v47 }
 0x1bb   : > { %2448 = vmatprep.mubr.f32.mxu0 %v5664_v7  ;;  %v6318_v61 = vsel %vm7654_vm13, %v1132_v25, %v7653_v60  ;;  %v4865_v25 = vpack.c.bf16 %v3887_v42, %v3886_v16  ;;  %v3888_v60 = vld [vmem:[%s7311_s2 + $0x310] sm:$0xff]  ;;  %v3890_v16 = vld [vmem:[%s7311_s2 + $0x320] sm:$0xff]  ;;  %v3891_v42 = vld [vmem:[%s7311_s2 + $0x328] sm:$0xff]  ;;  %vm7729_vm13 = vnez %v7617_v56 }
 0x1bc   : > { %2009 = vmatmul.mubr.f32.gmra.mrb[58].mxu1 %v6305_v5  ;;  %7655 = vst [vmem:[#allocation91_spill] sm:$0xff] %v6318_v61  ;;  %v3398_v56 = vld [vmem:[%s7312_s3 + $0x8] sm:$0xff] }
 0x1bd   : > { %2013 = vmatprep.mubr.f32.mxu1 %v5774_v49  ;;  %v7678_v49 = vld [vmem:[#allocation43_spill] sm:$0xff] }
 0x1be   : > { %2449 = vmatmul.mubr.f32.gmra.mrb[118].mxu0 %v6255_v2 }
 0x1bf   : > { %2453 = vmatprep.mubr.f32.mxu0 %v5703_v20  ;;  %v7697_v20 = vld [vmem:[#allocation63_spill] sm:$0xff] }
 0x1c0   : > { %3955 = vmatmul.mubr.msk.f32.gmra.mrb[60].mxu1 %vm6309_vm14, %v6318_v61  ;;  %v3909_v61 = vld [vmem:[%s7311_s2 + $0x3b8] sm:$0xff] }
 0x1c1   : > { %2018 = vmatprep.mubr.f32.mxu1 %v5757_v21  ;;  %v3889_v21 = vld [vmem:[%s7311_s2 + $0x318] sm:$0xff] }
 0x1c2   : > { %3985 = vmatmul.mubr.msk.f32.gmra.mrb[120].mxu0 %vm6260_vm15, %v6268_v15  ;;  %v7693_v15 = vld [vmem:[#allocation58_spill] sm:$0xff] }
 0x1c3   : > { %2458 = vmatprep.mubr.f32.mxu0 %v5694_v1  ;;  %v3917_v1 = vld [vmem:[%s7311_s2 + $0x3f8] sm:$0xff] }
 0x1c4   : > { %2019 = vmatmul.mubr.f32.gmra.mrb[62].mxu1 %v5830_v30  ;;  %v4868_v30 = vpack.c.bf16 %v3889_v21, %v3888_v60  ;;  %v3892_v21 = vld [vmem:[%s7311_s2 + $0x330] sm:$0xff]  ;;  %v7657_v60 = vld [vmem:[#allocation8_spill] sm:$0xff] }
 0x1c5   : > { %4464 = vmatprep.mubr.f32.mxu1 %v7593_v22 }
 0x1c6   : > { %2459 = vmatmul.mubr.f32.gmra.mrb[122].mxu0 %v6280_v58  ;;  %v7688_v58 = vld [vmem:[#allocation56_spill] sm:$0xff] }
 0x1c7   : > { %2463 = vmatprep.mubr.f32.mxu0 %v5734_v10  ;;  %v3915_v10 = vld [vmem:[%s7311_s2 + $0x3e8] sm:$0xff] }
 0x1c8   : > { %4465 = vmatmul.mubr.f32.vlgmr.msra.gmra.mrb[64].mxu1 %v7593_v22  ;;  %v3907_v22 = vld [vmem:[%s7311_s2 + $0x3a8] sm:$0xff] }
 0x1c9   : > { %4866 = vmatpush1.bf16.msra.mxu1 %v4865_v25  ;;  %4467 = vmatprep.mubr.f32.mxu1 %v5353_v28  ;;  %v4871_v28 = vpack.c.bf16 %v3891_v42, %v3890_v16  ;;  %v3893_v25 = vld [vmem:[%s7311_s2 + $0x338] sm:$0xff]  ;;  %v7659_v42 = vld [vmem:[#allocation9_spill] sm:$0xff]  ;;  %v7669_v16 = vld [vmem:[#allocation28_spill] sm:$0xff] }
 0x1ca   : > { %3986 = vmatmul.mubr.msk.f32.gmra.mrb[124].mxu0 %vm6285_vm0, %v6293_v4  ;;  %4867 = vmatprep.subr.bf16.mxu1 %v7531_v8  ;;  %v7684_v4 = vld [vmem:[#allocation51_spill] sm:$0xff] }
 0x1cb   : > { %2468 = vmatprep.mubr.f32.mxu0 %v5724_v0  ;;  %v7681_v0 = vld [vmem:[#allocation46_spill] sm:$0xff] }
 0x1cc   : > { %4468 = vmatmul.mubr.msk.f32.gmra.mrb[66].mxu1 %vm5357_vm1, %v5376_v43  ;;  %v4874_v43 = vpack.c.bf16 %v3893_v25, %v3892_v21  ;;  %v7660_v21 = vld [vmem:[#allocation13_spill] sm:$0xff]  ;;  %v3905_v25 = vld [vmem:[%s7311_s2 + $0x398] sm:$0xff] }
 0x1cd   : > { %4869 = vmatpush1.bf16.msra.mxu1 %v4868_v30  ;;  %4470 = vmatprep.mubr.f32.mxu1 %v5379_v44  ;;  %v3894_v30 = vld [vmem:[%s7311_s2 + $0x340] sm:$0xff] }
 0x1ce   : > { %2469 = vmatmul.mubr.f32.gmra.mrb[126].mxu0 %v6305_v5  ;;  %4870 = vmatprep.subr.bf16.mxu1 %v7531_v8  ;;  %v3911_v5 = vld [vmem:[%s7311_s2 + $0x3c8] sm:$0xff] }
 0x1cf   : > { %4544 = vmatprep.mubr.f32.mxu0 %v5379_v44  ;;  %v3895_v44 = vld [vmem:[%s7311_s2 + $0x348] sm:$0xff] }
 0x1d0   : > { %4471 = vmatmul.mubr.msk.f32.gmra.mrb[68].mxu1 %vm5389_vm2, %v5406_v59  ;;  %v4877_v51 = vpack.c.bf16 %v3895_v44, %v3894_v30  ;;  %v3898_v30 = vld [vmem:[%s7311_s2 + $0x360] sm:$0xff]  ;;  %v3899_v44 = vld [vmem:[%s7311_s2 + $0x368] sm:$0xff] }
 0x1d1   : > { %4872 = vmatpush1.bf16.msra.mxu1 %v4871_v28  ;;  %4473 = vmatprep.mubr.f32.mxu1 %v7656_v31  ;;  %v3897_v28 = vld [vmem:[%s7311_s2 + $0x358] sm:$0xff] }
 0x1d2   : > { %4545 = vmatmul.mubr.msk.f32.vlgmr.msra.gmra.mrb[128].mxu0 %vm5389_vm2, %v5406_v59  ;;  %4873 = vmatprep.subr.bf16.mxu1 %v7531_v8  ;;  %v3896_v59 = vld [vmem:[%s7311_s2 + $0x350] sm:$0xff] }
 0x1d3   : > { %4547 = vmatprep.mubr.f32.mxu0 %v7656_v31  ;;  %v7662_v31 = vld [vmem:[#allocation14_spill] sm:$0xff] }
 0x1d4   : > { %4474 = vmatmul.mubr.msk.f32.gmra.mrb[70].mxu1 %vm5415_vm3, %v7657_v60 }
 0x1d5   : > { %4875 = vmatpush1.bf16.msra.mxu1 %v4874_v43  ;;  %4476 = vmatprep.mubr.f32.mxu1 %v7659_v42  ;;  %v4880_v43 = vpack.c.bf16 %v3897_v28, %v3896_v59  ;;  %v3900_v59 = vld [vmem:[%s7311_s2 + $0x370] sm:$0xff]  ;;  %v3901_v28 = vld [vmem:[%s7311_s2 + $0x378] sm:$0xff] }
 0x1d6   : > { %4548 = vmatmul.mubr.msk.f32.gmra.mrb[130].mxu0 %vm5415_vm3, %v7657_v60  ;;  %4876 = vmatprep.subr.bf16.mxu1 %v7531_v8  ;;  %v7663_v60 = vld [vmem:[#allocation18_spill] sm:$0xff]  ;;  %vm7694_vm3 = vnez %v7693_v15  ;;  %v7699_v15 = vld [vmem:[#allocation69_spill] sm:$0xff] }
 0x1d7   : > { %4550 = vmatprep.mubr.f32.mxu0 %v7659_v42  ;;  %v7665_v42 = vld [vmem:[#allocation19_spill] sm:$0xff] }
 0x1d8   : > { %4477 = vmatmul.mubr.msk.f32.gmra.mrb[72].mxu1 %vm5445_vm4, %v7660_v21 }
 0x1d9   : > { %4878 = vmatpush1.bf16.msra.mxu1 %v4877_v51  ;;  %4479 = vmatprep.mubr.f32.mxu1 %v7662_v31  ;;  %v4883_v51 = vpack.c.bf16 %v3899_v44, %v3898_v30  ;;  %v3902_v30 = vld [vmem:[%s7311_s2 + $0x380] sm:$0xff]  ;;  %v3903_v44 = vld [vmem:[%s7311_s2 + $0x388] sm:$0xff] }
 0x1da   : > { %4551 = vmatmul.mubr.msk.f32.gmra.mrb[132].mxu0 %vm5445_vm4, %v7660_v21  ;;  %4879 = vmatprep.subr.bf16.mxu1 %v7531_v8  ;;  %v7666_v21 = vld [vmem:[#allocation23_spill] sm:$0xff]  ;;  %vm7698_vm4 = vnez %v7697_v20 }
 0x1db   : > { %4553 = vmatprep.mubr.f32.mxu0 %v7662_v31  ;;  %v7668_v31 = vld [vmem:[#allocation24_spill] sm:$0xff] }
 0x1dc   : > { %4480 = vmatmul.mubr.msk.f32.gmra.mrb[74].mxu1 %vm5479_vm5, %v7663_v60 }
 0x1dd   : > { %4881 = vmatpush1.bf16.msra.mxu1 %v4880_v43  ;;  %4482 = vmatprep.mubr.f32.mxu1 %v7665_v42  ;;  %v4886_v43 = vpack.c.bf16 %v3901_v28, %v3900_v59  ;;  %v7671_v59 = vld [vmem:[#allocation29_spill] sm:$0xff]  ;;  %v4889_v28 = vpack.c.bf16 %v3903_v44, %v3902_v30 }
 0x1de   : > { %4554 = vmatmul.mubr.msk.f32.gmra.mrb[134].mxu0 %vm5479_vm5, %v7663_v60  ;;  %4882 = vmatprep.subr.bf16.mxu1 %v7531_v8  ;;  %vm7700_vm5 = vnez %v7589_v63 }
 0x1df   : > { %4556 = vmatprep.mubr.f32.mxu0 %v7665_v42 }
 0x1e0   : > { %4483 = vmatmul.mubr.msk.f32.gmra.mrb[76].mxu1 %vm5505_vm6, %v7666_v21 }
 0x1e1   : > { %4884 = vmatpush1.bf16.msra.mxu1 %v4883_v51  ;;  %4485 = vmatprep.mubr.f32.mxu1 %v7668_v31 }
 0x1e2   : > { %4557 = vmatmul.mubr.msk.f32.gmra.mrb[136].mxu0 %vm5505_vm6, %v7666_v21  ;;  %4885 = vmatprep.subr.bf16.mxu1 %v7531_v8  ;;  %v3904_v21 = vld [vmem:[%s7311_s2 + $0x390] sm:$0xff]  ;;  %vm7702_vm6 = vnez %v7592_v45 }
 0x1e3   : > { %4559 = vmatprep.mubr.f32.mxu0 %v7668_v31  ;;  %v6445_v60 = vpop.f32.mrb[32].mxu0  ;;  %v4892_v42 = vpack.c.bf16 %v3905_v25, %v3904_v21 }
 0x1e4   : > { %4486 = vmatmul.mubr.msk.f32.gmra.mrb[78].mxu1 %vm5535_vm7, %v7669_v16  ;;  %v6450_v51 = vpop.f32.mrb[33].mxu0 }
 0x1e5   : > { %4887 = vmatpush1.bf16.msra.mxu1 %v4886_v43  ;;  %4488 = vmatprep.mubr.f32.mxu1 %v7671_v59  ;;  %v7672_v43 = vld [vmem:[#allocation33_spill] sm:$0xff] }
 0x1e6   : > { %4560 = vmatmul.mubr.msk.f32.gmra.mrb[138].mxu0 %vm5535_vm7, %v7669_v16  ;;  %4888 = vmatprep.subr.bf16.mxu1 %v7531_v8  ;;  %v7674_v16 = vld [vmem:[#allocation34_spill] sm:$0xff]  ;;  %vm7703_vm7 = vnez %v7596_v34 }
 0x1e7   : > { %4562 = vmatprep.mubr.f32.mxu0 %v7671_v59  ;;  %v6464_v31 = vpop.f32.mrb[34].mxu0  ;;  %v3906_v59 = vld [vmem:[%s7311_s2 + $0x3a0] sm:$0xff] }
 0x1e8   : > { %4489 = vmatmul.mubr.msk.f32.gmra.mrb[80].mxu1 %vm5569_vm8, %v7672_v43  ;;  %v6469_v44 = vpop.f32.mrb[35].mxu0  ;;  %v4895_v30 = vpack.c.bf16 %v3907_v22, %v3906_v59  ;;  %v7680_v59 = vld [vmem:[#allocation44_spill] sm:$0xff] }
 0x1e9   : > { %4890 = vmatpush1.bf16.msra.mxu1 %v4889_v28  ;;  %4491 = vmatprep.mubr.f32.mxu1 %v7674_v16 }
 0x1ea   : > { %4563 = vmatmul.mubr.msk.f32.gmra.mrb[140].mxu0 %vm5569_vm8, %v7672_v43  ;;  %4891 = vmatprep.subr.bf16.mxu1 %v7531_v8  ;;  %v7677_v43 = vld [vmem:[#allocation39_spill] sm:$0xff]  ;;  %vm7710_vm8 = vnez %v7601_v6 }
 0x1eb   : > { %4565 = vmatprep.mubr.f32.mxu0 %v7674_v16  ;;  %v6483_v28 = vpop.f32.mrb[36].mxu0  ;;  %v3908_v16 = vld [vmem:[%s7311_s2 + $0x3b0] sm:$0xff] }
 0x1ec   : > { %4492 = vmatmul.mubr.msk.f32.gmra.mrb[82].mxu1 %vm5595_vm9, %v7675_v19  ;;  %v6488_v25 = vpop.f32.mrb[37].mxu0  ;;  %v4898_v21 = vpack.c.bf16 %v3909_v61, %v3908_v16  ;;  %v7683_v16 = vld [vmem:[#allocation47_spill] sm:$0xff] }
 0x1ed   : > { %4893 = vmatpush1.bf16.msra.mxu1 %v4892_v42  ;;  %4494 = vmatprep.mubr.f32.mxu1 %v7677_v43 }
 0x1ee   : > { %4566 = vmatmul.mubr.msk.f32.gmra.mrb[142].mxu0 %vm5595_vm9, %v7675_v19  ;;  %4894 = vmatprep.subr.bf16.mxu1 %v7531_v8  ;;  %vm7717_vm9 = vnez %v7605_v50 }
 0x1ef   : > { %4568 = vmatprep.mubr.f32.mxu0 %v7677_v43  ;;  %v6502_v42 = vpop.f32.mrb[38].mxu0  ;;  %v3910_v43 = vld [vmem:[%s7311_s2 + $0x3c0] sm:$0xff] }
 0x1f0   : > { %4495 = vmatmul.mubr.msk.f32.gmra.mrb[84].mxu1 %vm5625_vm10, %v7678_v49  ;;  %v6507_v19 = vpop.f32.mrb[39].mxu0  ;;  %v4901_v22 = vpack.c.bf16 %v3911_v5, %v3910_v43  ;;  %v7685_v5 = vld [vmem:[#allocation48_spill] sm:$0xff] }
 0x1f1   : > { %4896 = vmatpush1.bf16.msra.mxu1 %v4895_v30  ;;  %4497 = vmatprep.mubr.f32.mxu1 %v7680_v59  ;;  %vm7686_vm1 = vnez %v7685_v5  ;;  %v7687_v43 = vld [vmem:[#allocation52_spill] sm:$0xff] }
 0x1f2   : > { %4569 = vmatmul.mubr.msk.f32.gmra.mrb[144].mxu0 %vm5625_vm10, %v7678_v49  ;;  %4897 = vmatprep.subr.bf16.mxu1 %v7531_v8  ;;  %vm7721_vm10 = vnez %v7609_v52 }
 0x1f3   : > { %4571 = vmatprep.mubr.f32.mxu0 %v7680_v59  ;;  %v6521_v30 = vpop.f32.mrb[40].mxu0  ;;  %v3912_v59 = vld [vmem:[%s7311_s2 + $0x3d0] sm:$0xff] }
 0x1f4   : > { %4498 = vmatmul.mubr.msk.f32.gmra.mrb[86].mxu1 %vm5659_vm11, %v7681_v0  ;;  %v6526_v49 = vpop.f32.mrb[41].mxu0  ;;  %v4904_v61 = vpack.c.bf16 %v3913_v62, %v3912_v59  ;;  %v7689_v62 = vld [vmem:[#allocation53_spill] sm:$0xff] }
 0x1f5   : > { %4899 = vmatpush1.bf16.msra.mxu1 %v4898_v21  ;;  %4500 = vmatprep.mubr.f32.mxu1 %v7683_v16  ;;  %vm7690_vm2 = vnez %v7689_v62  ;;  %v7691_v59 = vld [vmem:[#allocation57_spill] sm:$0xff] }
 0x1f6   : > { %4572 = vmatmul.mubr.msk.f32.gmra.mrb[146].mxu0 %vm5659_vm11, %v7681_v0  ;;  %4900 = vmatprep.subr.bf16.mxu1 %v7531_v8  ;;  %vm7725_vm11 = vnez %v7613_v17 }
 0x1f7   : > { %4574 = vmatprep.mubr.f32.mxu0 %v7683_v16  ;;  %v6540_v21 = vpop.f32.mrb[42].mxu0  ;;  %v3914_v16 = vld [vmem:[%s7311_s2 + $0x3e0] sm:$0xff] }
 0x1f8   : > { %4501 = vmatmul.mubr.msk.f32.gmra.mrb[88].mxu1 %vm7686_vm1, %v7684_v4  ;;  %v6545_v0 = vpop.f32.mrb[43].mxu0  ;;  %v4907_v5 = vpack.c.bf16 %v3915_v10, %v3914_v16 }
 0x1f9   : > { %4902 = vmatpush1.bf16.msra.mxu1 %v4901_v22  ;;  %4503 = vmatprep.mubr.f32.mxu1 %v7687_v43 }
 0x1fa   : > { %4575 = vmatmul.mubr.msk.f32.gmra.mrb[148].mxu0 %vm7686_vm1, %v7684_v4  ;;  %4903 = vmatprep.subr.bf16.mxu1 %v7531_v8  ;;  %vm7737_vm1 = vnez %v7626_v14 }
 0x1fb   : > { %4577 = vmatprep.mubr.f32.mxu0 %v7687_v43  ;;  %v6559_v22 = vpop.f32.mrb[44].mxu0  ;;  %v3916_v43 = vld [vmem:[%s7311_s2 + $0x3f0] sm:$0xff] }
 0x1fc   : > { %4504 = vmatmul.mubr.msk.f32.gmra.mrb[90].mxu1 %vm7690_vm2, %v7688_v58  ;;  %v6564_v4 = vpop.f32.mrb[45].mxu0  ;;  %v4910_v16 = vpack.c.bf16 %v3917_v1, %v3916_v43 }
 0x1fd   : > { %4905 = vmatpush1.bf16.msra.mxu1 %v4904_v61  ;;  %4506 = vmatprep.mubr.f32.mxu1 %v7691_v59  ;;  %v7696_v59 = vld [vmem:[#allocation65_spill] sm:$0xff] }
 0x1fe   : > { %4578 = vmatmul.mubr.msk.f32.gmra.mrb[150].mxu0 %vm7690_vm2, %v7688_v58  ;;  %4906 = vmatprep.subr.bf16.mxu1 %v7531_v8  ;;  %v7695_v58 = vld [vmem:[#allocation62_spill] sm:$0xff]  ;;  %vm7741_vm2 = vnez %v7630_v36 }
 0x1ff   : > { %v6577_v61 = vpop.f32.mrb[46].mxu0 }
 0x200   : > { %4507 = vmatmul.mubr.msk.f32.gmra.mrb[92].mxu1 %vm7694_vm3, %v7692_v29  ;;  %v6582_v10 = vpop.f32.mrb[47].mxu0 }
 0x201   : > { %4908 = vmatpush1.bf16.msra.mxu1 %v4907_v5  ;;  %4509 = vmatprep.mubr.f32.mxu1 %v7695_v58 }
 0x202   : > { %4909 = vmatprep.subr.bf16.mxu1 %v7531_v8  ;;  %v7701_v8 = vld [vmem:[#allocation70_spill] sm:$0xff] }
 0x203   : > { %v6586_v62 = vpop.f32.mrb[48].mxu0 }
 0x204   : > { %4510 = vmatmul.mubr.msk.f32.gmra.mrb[94].mxu1 %vm7698_vm4, %v7696_v59  ;;  %v6591_v2 = vpop.f32.mrb[49].mxu0 }
 0x205   : > { %4911 = vmatpush1.bf16.msra.mxu1 %v4910_v16  ;;  %2908 = vmatprep.mubr.f32.mxu1 %v5348_v26  ;;  %v7708_v16 = vld [vmem:[#allocation7_spill] sm:$0xff] }
 0x206   : > { %4976 = vmatprep.subr.bf16.mxu1 %v7699_v15 }
 0x207   : > { %v6595_v5 = vpop.f32.mrb[50].mxu0 }
 0x208   : > { %4002 = vmatmul.mubr.msk.f32.vlgmr.msra.gmra.mrb[96].mxu1 %vm7700_vm5, %v5878_v40  ;;  %v6601_v1 = vpop.f32.mrb[51].mxu0  ;;  %v7704_v40 = vld [vmem:[#allocation3_spill] sm:$0xff] }
 0x209   : > { %4984 = vmatpush3.bf16.msra.mxu1 %v7699_v15  ;;  %2913 = vmatprep.mubr.f32.mxu1 %v5340_v23 }
 0x20a   : > { %4977 = vmatprep.subr.bf16.mxu1 %v7701_v8 }
 0x20b   : > { %v6605_v43 = vpop.f32.mrb[52].mxu0 }
 0x20c   : > { %2914 = vmatmul.mubr.f32.gmra.mrb[98].mxu1 %v5903_v11  ;;  %v6608_v26 = vpop.f32.mrb[53].mxu0 }
 0x20d   : > { %2918 = vmatprep.mubr.f32.mxu1 %v5373_v41  ;;  %4985 = vmatpush3.bf16.msra.mxu1 %v7701_v8 }
 0x20e   : > { %4978 = vmatprep.subr.bf16.mxu1 %v5916_v27 }
 0x20f   : > { %v6613_v63 = vpop.f32.mrb[54].mxu0 }
 0x210   : > { %4003 = vmatmul.mubr.msk.f32.gmra.mrb[100].mxu1 %vm7702_vm6, %v5933_v32  ;;  %v6618_v15 = vpop.f32.mrb[55].mxu0 }
 0x211   : > { %2923 = vmatprep.mubr.f32.mxu1 %v5365_v38  ;;  %4986 = vmatpush3.bf16.msra.mxu1 %v5916_v27  ;;  %v7705_v27 = vld [vmem:[#allocation71_spill] sm:$0xff] }
 0x212   : > { %4979 = vmatprep.subr.bf16.mxu1 %v5947_v13 }
 0x213   : > { %v6623_v23 = vpop.f32.mrb[56].mxu0 }
 0x214   : > { %2924 = vmatmul.mubr.f32.gmra.mrb[102].mxu1 %v5961_v46  ;;  %v6626_v41 = vpop.f32.mrb[57].mxu0 }
 0x215   : > { %2928 = vmatprep.mubr.f32.mxu1 %v5403_v57  ;;  %4987 = vmatpush3.bf16.msra.mxu1 %v5947_v13  ;;  %v7706_v13 = vld [vmem:[#allocation72_spill] sm:$0xff] }
 0x216   : > { %4980 = vmatprep.subr.bf16.mxu1 %v5973_v12 }
 0x217   : > { %v6631_v11 = vpop.f32.mrb[58].mxu0 }
 0x218   : > { %4004 = vmatmul.mubr.msk.f32.gmra.mrb[104].mxu1 %vm7703_vm7, %v5990_v39  ;;  %v6636_v38 = vpop.f32.mrb[59].mxu0  ;;  %v7709_v39 = vld [vmem:[#allocation73_spill] sm:$0xff] }
 0x219   : > { %2933 = vmatprep.mubr.f32.mxu1 %v7704_v40  ;;  %4988 = vmatpush3.bf16.msra.mxu1 %v5973_v12 }
 0x21a   : > { %4981 = vmatprep.subr.bf16.mxu1 %v7705_v27  ;;  %v1865_v45 = vpop.f32.mrb[0].mxu1 }
 0x21b   : > { %v2091_v57 = vadd.f32 %v6450_v51, %v1865_v45  ;;  %v1867_v32 = vpop.f32.mrb[1].mxu1  ;;  %v7712_v45 = vld [vmem:[#allocation6_spill] sm:$0xff] }
 0x21c   : > { %2934 = vmatmul.mubr.f32.gmra.mrb[106].mxu1 %v7706_v13  ;;  %v6643_v46 = vpop.f32.mrb[60].mxu0 }
 0x21d   : > { %7707 = vst [vmem:[#allocation4_spill] sm:$0xff] %v6643_v46  ;;  %2938 = vmatprep.mubr.f32.mxu1 %v7708_v16  ;;  %4989 = vmatpush3.bf16.msra.mxu1 %v7705_v27  ;;  %v6647_v34 = vpop.f32.mrb[61].mxu0  ;;  %v7713_v27 = vld [vmem:[#allocation74_spill] sm:$0xff] }
 0x21e   : > { %4982 = vmatprep.subr.bf16.mxu1 %v7709_v39 }
 0x21f   : > { %v1870_v8 = vpop.f32.mrb[2].mxu1 }
 0x220   : > { %v2096_v12 = vadd.f32 %v6445_v60, %v1870_v8  ;;  %v1872_v40 = vpop.f32.mrb[3].mxu1  ;;  %4005 = vmatmul.mubr.msk.f32.gmra.mrb[108].mxu1 %vm7710_vm8, %v6036_v3  ;;  %v7714_v60 = vld [vmem:[#allocation75_spill] sm:$0xff] }
 0x221   : > { %v6654_v51 = vpop.f32.mrb[62].mxu0  ;;  %2943 = vmatprep.mubr.f32.mxu1 %v7712_v45  ;;  %4990 = vmatpush3.bf16.msra.mxu1 %v7709_v39  ;;  %v7715_v40 = vld [vmem:[#allocation12_spill] sm:$0xff] }
 0x222   : > { %7711 = vst [vmem:[#allocation8_spill] sm:$0xff] %v6654_v51  ;;  %v6658_v32 = vpop.f32.mrb[63].mxu0  ;;  %4983 = vmatprep.subr.bf16.mxu1 %v7713_v27 }
 0x223   : > { %v1875_v13 = vpop.f32.mrb[4].mxu1 }
 0x224   : > { %v2101_v16 = vadd.f32 %v6469_v44, %v1875_v13  ;;  %v1877_v46 = vpop.f32.mrb[5].mxu1  ;;  %2944 = vmatmul.mubr.f32.gmra.mrb[110].mxu1 %v7714_v60 }
 0x225   : > { %v2315_v8 = vpop.f32.mrb[64].mxu0  ;;  %2948 = vmatprep.mubr.f32.mxu1 %v7715_v40  ;;  %4991 = vmatpush3.bf16.msra.mxu1 %v7713_v27  ;;  %v7718_v46 = vld [vmem:[#allocation11_spill] sm:$0xff] }
 0x226   : > { %v6665_v6 = vadd.f32 %v2315_v8, %v2091_v57  ;;  %v2317_v3 = vpop.f32.mrb[65].mxu0  ;;  %v7719_v8 = vld [vmem:[#allocation76_spill] sm:$0xff] }
 0x227   : > { %v1880_v45 = vpop.f32.mrb[6].mxu1 }
 0x228   : > { %7716 = vst [vmem:[#allocation5_spill] sm:$0xff] %v6665_v6  ;;  %v2106_v39 = vadd.f32 %v6464_v31, %v1880_v45  ;;  %v1882_v51 = vpop.f32.mrb[7].mxu1  ;;  %4006 = vmatmul.mubr.msk.f32.gmra.mrb[112].mxu1 %vm7717_vm9, %v6067_v18  ;;  %v7720_v6 = vld [vmem:[#allocation17_spill] sm:$0xff] }
 0x229   : > { %v2320_v44 = vpop.f32.mrb[66].mxu0  ;;  %2953 = vmatprep.mubr.f32.mxu1 %v7718_v46 }
 0x22a   : > { %v6672_v13 = vadd.f32 %v2320_v44, %v2096_v12  ;;  %v2322_v60 = vpop.f32.mrb[67].mxu0  ;;  %v7722_v44 = vld [vmem:[#allocation16_spill] sm:$0xff] }
 0x22b   : > { %v1885_v40 = vpop.f32.mrb[8].mxu1 }
 0x22c   : > { %v2111_v27 = vadd.f32 %v6488_v25, %v1885_v40  ;;  %v1887_v57 = vpop.f32.mrb[9].mxu1  ;;  %2954 = vmatmul.mubr.f32.gmra.mrb[114].mxu1 %v7719_v8  ;;  %v7723_v40 = vld [vmem:[#allocation77_spill] sm:$0xff]  ;;  %v7724_v8 = vld [vmem:[#allocation22_spill] sm:$0xff] }
 0x22d   : > { %v2325_v3 = vpop.f32.mrb[68].mxu0  ;;  %2958 = vmatprep.mubr.f32.mxu1 %v7720_v6 }
 0x22e   : > { %v6677_v31 = vadd.f32 %v2325_v3, %v2101_v16  ;;  %v2327_v51 = vpop.f32.mrb[69].mxu0 }
 0x22f   : > { %v1890_v50 = vpop.f32.mrb[10].mxu1 }
 0x230   : > { %v2116_v18 = vadd.f32 %v6483_v28, %v1890_v50  ;;  %v1892_v45 = vpop.f32.mrb[11].mxu1  ;;  %4007 = vmatmul.mubr.msk.f32.gmra.mrb[116].mxu1 %vm7721_vm10, %v6093_v54  ;;  %v7726_v50 = vld [vmem:[#allocation21_spill] sm:$0xff] }
 0x231   : > { %v2330_v12 = vpop.f32.mrb[70].mxu0  ;;  %2963 = vmatprep.mubr.f32.mxu1 %v7722_v44 }
 0x232   : > { %v6684_v25 = vadd.f32 %v2330_v12, %v2106_v39  ;;  %v2332_v46 = vpop.f32.mrb[71].mxu0 }
 0x233   : > { %v1895_v60 = vpop.f32.mrb[12].mxu1  ;;  %v7727_v46 = vld [vmem:[#allocation78_spill] sm:$0xff] }
 0x234   : > { %v2121_v6 = vadd.f32 %v6507_v19, %v1895_v60  ;;  %v1897_v16 = vpop.f32.mrb[13].mxu1  ;;  %2964 = vmatmul.mubr.f32.gmra.mrb[118].mxu1 %v7723_v40 }
 0x235   : > { %v2335_v57 = vpop.f32.mrb[72].mxu0  ;;  %2968 = vmatprep.mubr.f32.mxu1 %v7724_v8  ;;  %v7728_v16 = vld [vmem:[#allocation27_spill] sm:$0xff]  ;;  %v7730_v8 = vld [vmem:[#allocation26_spill] sm:$0xff] }
 0x236   : > { %v6689_v28 = vadd.f32 %v2335_v57, %v2111_v27  ;;  %v2337_v3 = vpop.f32.mrb[73].mxu0 }
 0x237   : > { %v1900_v52 = vpop.f32.mrb[14].mxu1 }
 0x238   : > { %v2126_v54 = vadd.f32 %v6502_v42, %v1900_v52  ;;  %v1902_v51 = vpop.f32.mrb[15].mxu1  ;;  %4008 = vmatmul.mubr.msk.f32.gmra.mrb[120].mxu1 %vm7725_vm11, %v6118_v9 }
 0x239   : > { %v2340_v39 = vpop.f32.mrb[74].mxu0  ;;  %2973 = vmatprep.mubr.f32.mxu1 %v7726_v50 }
 0x23a   : > { %v6696_v19 = vadd.f32 %v2340_v39, %v2116_v18  ;;  %v2342_v45 = vpop.f32.mrb[75].mxu0  ;;  %v7731_v39 = vld [vmem:[#allocation79_spill] sm:$0xff] }
 0x23b   : > { %v1905_v12 = vpop.f32.mrb[16].mxu1  ;;  %v7732_v45 = vld [vmem:[#allocation32_spill] sm:$0xff] }
 0x23c   : > { %v2131_v44 = vadd.f32 %v6526_v49, %v1905_v12  ;;  %v1907_v27 = vpop.f32.mrb[17].mxu1  ;;  %2974 = vmatmul.mubr.f32.gmra.mrb[122].mxu1 %v7727_v46 }
 0x23d   : > { %v2345_v60 = vpop.f32.mrb[76].mxu0  ;;  %2978 = vmatprep.mubr.f32.mxu1 %v7728_v16 }
 0x23e   : > { %v6701_v42 = vadd.f32 %v2345_v60, %v2121_v6  ;;  %v2347_v40 = vpop.f32.mrb[77].mxu0  ;;  %v7734_v60 = vld [vmem:[#allocation31_spill] sm:$0xff] }
 0x23f   : > { %v1910_v17 = vpop.f32.mrb[18].mxu1 }
 0x240   : > { %v2136_v9 = vadd.f32 %v6521_v30, %v1910_v17  ;;  %v1912_v57 = vpop.f32.mrb[19].mxu1  ;;  %4009 = vmatmul.mubr.msk.f32.gmra.mrb[124].mxu1 %vm7729_vm13, %v6143_v33  ;;  %v3397_v33 = vld [vmem:[%s7312_s3] sm:$0xff]  ;;  %v3399_v17 = vld [vmem:[%s7312_s3 + $0x10] sm:$0xff] }
 0x241   : > { %v2350_v18 = vpop.f32.mrb[78].mxu0  ;;  %2983 = vmatprep.mubr.f32.mxu1 %v7730_v8  ;;  %v4944_v27 = vpack.c.bf16 %v3398_v56, %v3397_v33  ;;  %v7735_v8 = vld [vmem:[#allocation80_spill] sm:$0xff] }
 0x242   : > { %v6708_v49 = vadd.f32 %v2350_v18, %v2126_v54  ;;  %v2352_v3 = vpop.f32.mrb[79].mxu0  ;;  %v7738_v56 = vld [vmem:[#allocation36_spill] sm:$0xff] }
 0x243   : > { %v1915_v52 = vpop.f32.mrb[20].mxu1  ;;  %4945 = vmatprep.subr.bf16.mxu0 %v4944_v27 }
 0x244   : > { %v2141_v51 = vadd.f32 %v6545_v0, %v1915_v52  ;;  %v1917_v6 = vpop.f32.mrb[21].mxu1  ;;  %2984 = vmatmul.mubr.f32.gmra.mrb[126].mxu1 %v7731_v39  ;;  %4947 = vmatpush3.bf16.msra.mxu0 %v4944_v27  ;;  %v3401_v39 = vld [vmem:[%s7312_s3 + $0x20] sm:$0xff] }
 0x245   : > { %v2355_v50 = vpop.f32.mrb[80].mxu0  ;;  %2988 = vmatprep.mubr.f32.mxu1 %v7732_v45 }
 0x246   : > { %v6713_v30 = vadd.f32 %v2355_v50, %v2131_v44  ;;  %v2357_v12 = vpop.f32.mrb[81].mxu0  ;;  %v3402_v50 = vld [vmem:[%s7312_s3 + $0x28] sm:$0xff] }
 0x247   : > { %v1920_v54 = vpop.f32.mrb[22].mxu1  ;;  %v4952_v45 = vpack.c.bf16 %v3402_v50, %v3401_v39 }
 0x248   : > { %v2146_v0 = vadd.f32 %v6540_v21, %v1920_v54  ;;  %v1922_v46 = vpop.f32.mrb[23].mxu1  ;;  %4010 = vmatmul.mubr.msk.f32.gmra.mrb[128].mxu1 %vm7733_vm12, %v6168_v55  ;;  %v3400_v21 = vld [vmem:[%s7312_s3 + $0x18] sm:$0xff] }
 0x249   : > { %v2360_v44 = vpop.f32.mrb[82].mxu0  ;;  %2993 = vmatprep.mubr.f32.mxu1 %v7734_v60  ;;  %v4948_v18 = vpack.c.bf16 %v3400_v21, %v3399_v17  ;;  %v3403_v46 = vld [vmem:[%s7312_s3 + $0x30] sm:$0xff] }
 0x24a   : > { %v6726_v16 = vadd.f32 %v2360_v44, %v2136_v9  ;;  %v2362_v40 = vpop.f32.mrb[83].mxu0  ;;  %v7736_v9 = vld [vmem:[#allocation37_spill] sm:$0xff] }
 0x24b   : > { %v1925_v57 = vpop.f32.mrb[24].mxu1  ;;  %4949 = vmatprep.subr.bf16.mxu0 %v4948_v18  ;;  %v7739_v40 = vld [vmem:[#allocation81_spill] sm:$0xff] }
 0x24c   : > { %v2151_v55 = vadd.f32 %v6564_v4, %v1925_v57  ;;  %v1927_v47 = vpop.f32.mrb[25].mxu1  ;;  %2994 = vmatmul.mubr.f32.gmra.mrb[130].mxu1 %v7735_v8  ;;  %4951 = vmatpush3.bf16.msra.mxu0 %v4948_v18  ;;  %v3405_v18 = vld [vmem:[%s7312_s3 + $0x40] sm:$0xff] }
 0x24d   : > { %v2365_v3 = vpop.f32.mrb[84].mxu0  ;;  %2998 = vmatprep.mubr.f32.mxu1 %v7736_v9  ;;  %4953 = vmatprep.subr.bf16.mxu0 %v4952_v45  ;;  %v3406_v47 = vld [vmem:[%s7312_s3 + $0x48] sm:$0xff] }
 0x24e   : > { %v6737_v52 = vadd.f32 %v2365_v3, %v2141_v51  ;;  %v2367_v6 = vpop.f32.mrb[85].mxu0  ;;  %v4960_v8 = vpack.c.bf16 %v3406_v47, %v3405_v18  ;;  %v7745_v18 = vld [vmem:[#allocation83_spill] sm:$0xff]  ;;  %v7746_v47 = vld [vmem:[#allocation50_spill] sm:$0xff] }
 0x24f   : > { %v1930_v4 = vpop.f32.mrb[26].mxu1  ;;  %v7742_v6 = vld [vmem:[#allocation41_spill] sm:$0xff] }
 0x250   : > { %v2156_v12 = vadd.f32 %v6559_v22, %v1930_v4  ;;  %v1932_v33 = vpop.f32.mrb[27].mxu1  ;;  %4011 = vmatmul.mubr.msk.f32.gmra.mrb[132].mxu1 %vm7737_vm1, %v6193_v24  ;;  %4955 = vmatpush3.bf16.msra.mxu0 %v4952_v45  ;;  %v3404_v22 = vld [vmem:[%s7312_s3 + $0x38] sm:$0xff]  ;;  %v3407_v4 = vld [vmem:[%s7312_s3 + $0x50] sm:$0xff] }
 0x251   : > { %v2370_v51 = vpop.f32.mrb[86].mxu0  ;;  %3003 = vmatprep.mubr.f32.mxu1 %v7738_v56  ;;  %v4956_v60 = vpack.c.bf16 %v3404_v22, %v3403_v46  ;;  %v3410_v46 = vld [vmem:[%s7312_s3 + $0x68] sm:$0xff] }
 0x252   : > { %v6750_v54 = vadd.f32 %v2370_v51, %v2146_v0  ;;  %v2372_v27 = vpop.f32.mrb[87].mxu0  ;;  %v7740_v0 = vld [vmem:[#allocation42_spill] sm:$0xff] }
 0x253   : > { %v1935_v44 = vpop.f32.mrb[28].mxu1  ;;  %4957 = vmatprep.subr.bf16.mxu0 %v4956_v60  ;;  %v3409_v27 = vld [vmem:[%s7312_s3 + $0x60] sm:$0xff] }
 0x254   : > { %v2161_v14 = vadd.f32 %v6582_v10, %v1935_v44  ;;  %v1937_v24 = vpop.f32.mrb[29].mxu1  ;;  %3004 = vmatmul.mubr.f32.gmra.mrb[134].mxu1 %v7739_v40  ;;  %4959 = vmatpush3.bf16.msra.mxu0 %v4956_v60  ;;  %v4968_v22 = vpack.c.bf16 %v3410_v46, %v3409_v27  ;;  %v3411_v40 = vld [vmem:[%s7312_s3 + $0x70] sm:$0xff]  ;;  %v7751_v27 = vld [vmem:[#allocation55_spill] sm:$0xff] }
 0x255   : > { %v2375_v17 = vpop.f32.mrb[88].mxu0  ;;  %3008 = vmatprep.mubr.f32.mxu1 %v7740_v0  ;;  %4961 = vmatprep.subr.bf16.mxu0 %v4960_v8 }
 0x256   : > { %v6761_v21 = vadd.f32 %v2375_v17, %v2151_v55  ;;  %v2377_v57 = vpop.f32.mrb[89].mxu0 }
 0x257   : > { %v1940_v10 = vpop.f32.mrb[30].mxu1 }
 0x258   : > { %v2166_v3 = vadd.f32 %v6577_v61, %v1940_v10  ;;  %v1942_v9 = vpop.f32.mrb[31].mxu1  ;;  %4012 = vmatmul.mubr.msk.f32.gmra.mrb[136].mxu1 %vm7741_vm2, %v6218_v53  ;;  %4963 = vmatpush3.bf16.msra.mxu0 %v4960_v8  ;;  %v3408_v61 = vld [vmem:[%s7312_s3 + $0x58] sm:$0xff] }
 0x259   : > { %v2380_v55 = vpop.f32.mrb[90].mxu0  ;;  %3013 = vmatprep.mubr.f32.mxu1 %v7742_v6  ;;  %v4964_v33 = vpack.c.bf16 %v3408_v61, %v3407_v4  ;;  %v7747_v6 = vld [vmem:[#allocation85_spill] sm:$0xff] }
 0x25a   : > { %v6774_v39 = vadd.f32 %v2380_v55, %v2156_v12  ;;  %v2382_v50 = vpop.f32.mrb[91].mxu0  ;;  %v7749_v4 = vld [vmem:[#allocation49_spill] sm:$0xff] }
 0x25b   : > { %v1945_v45 = vpop.f32.mrb[32].mxu1  ;;  %4965 = vmatprep.subr.bf16.mxu0 %v4964_v33  ;;  %v7759_v50 = vld [vmem:[#allocation59_spill] sm:$0xff] }
 0x25c   : > { %v2171_v36 = vadd.f32 %v6591_v2, %v1945_v45  ;;  %v1947_v53 = vpop.f32.mrb[33].mxu1  ;;  %3014 = vmatmul.mubr.f32.gmra.mrb[138].mxu1 %v6230_v48  ;;  %4967 = vmatpush3.bf16.msra.mxu0 %v4964_v33 }
 0x25d   : > { %v2385_v51 = vpop.f32.mrb[92].mxu0  ;;  %3018 = vmatprep.mubr.f32.mxu1 %v5673_v35  ;;  %v7743_v35 = vld [vmem:[#allocation82_spill] sm:$0xff]  ;;  %4969 = vmatprep.subr.bf16.mxu0 %v4968_v22 }
 0x25e   : > { %v6785_v12 = vadd.f32 %v2385_v51, %v2161_v14  ;;  %v2387_v56 = vpop.f32.mrb[93].mxu0  ;;  %vm7744_vm5 = vnez %v7743_v35  ;;  %v7750_v51 = vld [vmem:[#allocation86_spill] sm:$0xff]  ;;  %v7752_v35 = vld [vmem:[#allocation88_spill] sm:$0xff] }
 0x25f   : > { %v1950_v2 = vpop.f32.mrb[34].mxu1 }
 0x260   : > { %v2176_v48 = vadd.f32 %v6586_v62, %v1950_v2  ;;  %v1952_v44 = vpop.f32.mrb[35].mxu1  ;;  %4013 = vmatmul.mubr.msk.f32.gmra.mrb[140].mxu1 %vm7744_vm5, %v6243_v37  ;;  %4971 = vmatpush3.bf16.msra.mxu0 %v4968_v22  ;;  %v3412_v62 = vld [vmem:[%s7312_s3 + $0x78] sm:$0xff] }
 0x261   : > { %v2390_v60 = vpop.f32.mrb[94].mxu0  ;;  %3023 = vmatprep.mubr.f32.mxu1 %v5664_v7  ;;  %v4972_v0 = vpack.c.bf16 %v3412_v62, %v3411_v40 }
 0x262   : > { %v6798_v14 = vadd.f32 %v2390_v60, %v2166_v3  ;;  %v2392_v24 = vpop.f32.mrb[95].mxu0 }
 0x263   : > { %v1955_v17 = vpop.f32.mrb[36].mxu1  ;;  %4973 = vmatprep.subr.bf16.mxu0 %v4972_v0  ;;  %v7754_v24 = vld [vmem:[#allocation54_spill] sm:$0xff] }
 0x264   : > { %v2181_v37 = vadd.f32 %v6601_v1, %v1955_v17  ;;  %v1957_v57 = vpop.f32.mrb[37].mxu1  ;;  %3024 = vmatmul.mubr.f32.gmra.mrb[142].mxu1 %v7745_v18  ;;  %4975 = vmatpush3.bf16.msra.mxu0 %v4972_v0  ;;  %v7756_v18 = vld [vmem:[#allocation60_spill] sm:$0xff] }
 0x265   : > { %v2395_v7 = vpop.f32.mrb[96].mxu0  ;;  %3028 = vmatprep.mubr.f32.mxu1 %v7746_v47 }
 0x266   : > { %v6809_v10 = vadd.f32 %v2395_v7, %v2171_v36  ;;  %v2397_v8 = vpop.f32.mrb[97].mxu0 }
 0x267   : > { %v1960_v3 = vpop.f32.mrb[38].mxu1 }
 0x268   : > { %v2186_v9 = vadd.f32 %v6595_v5, %v1960_v3  ;;  %v1962_v55 = vpop.f32.mrb[39].mxu1  ;;  %4014 = vmatmul.mubr.msk.f32.gmra.mrb[144].mxu1 %vm6260_vm15, %v7747_v6 }
 0x269   : > { %v2400_v1 = vpop.f32.mrb[98].mxu0  ;;  %3033 = vmatprep.mubr.f32.mxu1 %v7749_v4  ;;  %v7757_v55 = vld [vmem:[#allocation91_spill] sm:$0xff] }
 0x26a   : > { %v6816_v61 = vadd.f32 %v2400_v1, %v2176_v48  ;;  %v2402_v45 = vpop.f32.mrb[99].mxu0 }
 0x26b   : > { %v1965_v33 = vpop.f32.mrb[40].mxu1 }
 0x26c   : > { %v2191_v36 = vadd.f32 %v6608_v26, %v1965_v33  ;;  %v1967_v53 = vpop.f32.mrb[41].mxu1  ;;  %3034 = vmatmul.mubr.f32.gmra.mrb[146].mxu1 %v7750_v51  ;;  %v7761_v51 = vmov 0.0  }
 0x26d   : > { %v2405_v56 = vpop.f32.mrb[100].mxu0  ;;  %3038 = vmatprep.mubr.f32.mxu1 %v7751_v27 }
 0x26e   : > { %v6821_v5 = vadd.f32 %v2405_v56, %v2181_v37  ;;  %v2407_v46 = vpop.f32.mrb[101].mxu0  ;;  %v7755_v37 = vld [vmem:[#allocation89_spill] sm:$0xff] }
 0x26f   : > { %v1970_v2 = vpop.f32.mrb[42].mxu1 }
 0x270   : > { %v2196_v22 = vadd.f32 %v6605_v43, %v1970_v2  ;;  %v1972_v44 = vpop.f32.mrb[43].mxu1  ;;  %4015 = vmatmul.mubr.msk.f32.gmra.mrb[148].mxu1 %vm6285_vm0, %v7752_v35 }
 0x271   : > { %v2410_v60 = vpop.f32.mrb[102].mxu0  ;;  %3043 = vmatprep.mubr.f32.mxu1 %v7754_v24 }
 0x272   : > { %v6828_v26 = vadd.f32 %v2410_v60, %v2186_v9  ;;  %v2412_v40 = vpop.f32.mrb[103].mxu0 }
 0x273   : > { %v1975_v62 = vpop.f32.mrb[44].mxu1  ;;  %v7762_v40 = vld [vmem:[#allocation57_spill] sm:$0xff] }
 0x274   : > { %v2201_v17 = vadd.f32 %v6618_v15, %v1975_v62  ;;  %v1977_v0 = vpop.f32.mrb[45].mxu1  ;;  %3044 = vmatmul.mubr.f32.gmra.mrb[150].mxu1 %v7755_v37 }
 0x275   : > { %v2415_v57 = vpop.f32.mrb[104].mxu0  ;;  %3048 = vmatprep.mubr.f32.mxu1 %v7756_v18 }
 0x276   : > { %v6833_v43 = vadd.f32 %v2415_v57, %v2191_v36  ;;  %v2417_v7 = vpop.f32.mrb[105].mxu0  ;;  %v7760_v36 = vld [vmem:[#allocation67_spill] sm:$0xff] }
 0x277   : > { %v1980_v47 = vpop.f32.mrb[46].mxu1 }
 0x278   : > { %v2206_v8 = vadd.f32 %v6613_v63, %v1980_v47  ;;  %v1982_v3 = vpop.f32.mrb[47].mxu1  ;;  %4016 = vmatmul.mubr.msk.f32.gmra.mrb[152].mxu1 %vm6309_vm14, %v7757_v55  ;;  %v7764_v55 = vld [vmem:[#allocation66_spill] sm:$0xff] }
 0x279   : > { %v2420_v6 = vpop.f32.mrb[106].mxu0  ;;  %3053 = vmatprep.mubr.f32.mxu1 %v7759_v50  ;;  %v7765_v50 = vld [vmem:[#allocation4_spill] sm:$0xff] }
 0x27a   : > { %v6840_v15 = vadd.f32 %v2420_v6, %v2196_v22  ;;  %v2422_v1 = vpop.f32.mrb[107].mxu0 }
 0x27b   : > { %v1985_v4 = vpop.f32.mrb[48].mxu1 }
 0x27c   : > { %v2211_v45 = vadd.f32 %v6626_v41, %v1985_v4  ;;  %v1987_v33 = vpop.f32.mrb[49].mxu1  ;;  %3054 = vmatmul.mubr.f32.gmra.mrb[154].mxu1 %v7760_v36  ;;  %v7766_v4 = vld [vmem:[#allocation64_spill] sm:$0xff] }
 0x27d   : > { %v2425_v53 = vpop.f32.mrb[108].mxu0  ;;  %3058 = vmatprep.mubr.f32.mxu1 %v7761_v51 }
 0x27e   : > { %v6845_v63 = vadd.f32 %v2425_v53, %v2201_v17  ;;  %v2427_v56 = vpop.f32.mrb[109].mxu0 }
 0x27f   : > { %v1990_v27 = vpop.f32.mrb[50].mxu1 }
 0x280   : > { %v2216_v46 = vadd.f32 %v6623_v23, %v1990_v27  ;;  %v1992_v2 = vpop.f32.mrb[51].mxu1  ;;  %3059 = vmatmul.mubr.f32.gmra.mrb[156].mxu1 %v7761_v51 }
 0x281   : > { %v2430_v22 = vpop.f32.mrb[110].mxu0  ;;  %3063 = vmatprep.mubr.f32.mxu1 %v7761_v51 }
 0x282   : > { %v6850_v44 = vadd.f32 %v2430_v22, %v2206_v8  ;;  %v2432_v41 = vpop.f32.mrb[111].mxu0  ;;  %v7769_v22 = vld [vmem:[#allocation8_spill] sm:$0xff] }
 0x283   : > { %v1995_v35 = vpop.f32.mrb[52].mxu1 }
 0x284   : > { %v2221_v48 = vadd.f32 %v6636_v38, %v1995_v35  ;;  %v1997_v60 = vpop.f32.mrb[53].mxu1  ;;  %3064 = vmatmul.mubr.f32.gmra.mrb[158].mxu1 %v7761_v51 }
 0x285   : > { %v2435_v24 = vpop.f32.mrb[112].mxu0  ;;  %4580 = vmatprep.mubr.f32.mxu1 %v7762_v40 }
 0x286   : > { %v6855_v62 = vadd.f32 %v2435_v24, %v2211_v45  ;;  %v2437_v23 = vpop.f32.mrb[113].mxu0  ;;  %v7767_v45 = vld [vmem:[#allocation68_spill] sm:$0xff] }
 0x287   : > { %v2000_v17 = vpop.f32.mrb[54].mxu1  ;;  %vm7768_vm15 = vnez %v7767_v45 }
 0x288   : > { %v2226_v0 = vadd.f32 %v6631_v11, %v2000_v17  ;;  %v2002_v37 = vpop.f32.mrb[55].mxu1  ;;  %4581 = vmatmul.mubr.msk.f32.vlgmr.msra.gmra.mrb[160].mxu1 %vm7694_vm3, %v7692_v29 }
 0x289   : > { %v2440_v18 = vpop.f32.mrb[114].mxu0  ;;  %4583 = vmatprep.mubr.f32.mxu1 %v7695_v58 }
 0x28a   : > { %v6862_v38 = vadd.f32 %v2440_v18, %v2216_v46  ;;  %v2442_v7 = vpop.f32.mrb[115].mxu0 }
 0x28b   : > { %v2005_v47 = vpop.f32.mrb[56].mxu1 }
 0x28c   : > { %v2231_v8 = vadd.f32 %v6647_v34, %v2005_v47  ;;  %v2007_v3 = vpop.f32.mrb[57].mxu1  ;;  %4584 = vmatmul.mubr.msk.f32.gmra.mrb[162].mxu1 %vm7698_vm4, %v7696_v59 }
 0x28d   : > { %v2445_v11 = vpop.f32.mrb[116].mxu0  ;;  %4586 = vmatprep.mubr.f32.mxu1 %v7764_v55 }
 0x28e   : > { %v6869_v9 = vadd.f32 %v2445_v11, %v2221_v48  ;;  %v2447_v29 = vpop.f32.mrb[117].mxu0 }
 0x28f   : > { %v2010_v6 = vpop.f32.mrb[58].mxu1 }
 0x290   : > { %v2236_v58 = vadd.f32 %v7765_v50, %v2010_v6  ;;  %v2012_v1 = vpop.f32.mrb[59].mxu1  ;;  %4587 = vmatmul.mubr.msk.f32.gmra.mrb[164].mxu1 %vm7768_vm15, %v7766_v4 }
 0x291   : > { %v2450_v34 = vpop.f32.mrb[118].mxu0  ;;  %4589 = vmatprep.mubr.f32.mxu1 %v7761_v51 }
 0x292   : > { %v6876_v33 = vadd.f32 %v2450_v34, %v2226_v0  ;;  %v2452_v20 = vpop.f32.mrb[119].mxu0  ;;  %v7770_v0 = vld [vmem:[#allocation5_spill] sm:$0xff] }
 0x293   : > { %v2015_v59 = vpop.f32.mrb[60].mxu1 }
 0x294   : > { %v2241_v36 = vadd.f32 %v6658_v32, %v2015_v59  ;;  %v2017_v53 = vpop.f32.mrb[61].mxu1  ;;  %4590 = vmatmul.mubr.f32.gmra.mrb[166].mxu1 %v7761_v51 }
 0x295   : > { %v2455_v56 = vpop.f32.mrb[120].mxu0 }
 0x296   : > { %v6880_v27 = vadd.f32 %v2455_v56, %v2231_v8  ;;  %v2457_v46 = vpop.f32.mrb[121].mxu0 }
 0x297   : > { %v2020_v2 = vpop.f32.mrb[62].mxu1 }
 0x298   : > { %v2246_v41 = vadd.f32 %v7769_v22, %v2020_v2  ;;  %v2022_v35 = vpop.f32.mrb[63].mxu1 }
 0x299   : > { %v2460_v48 = vpop.f32.mrb[122].mxu0 }
 0x29a   : > { %v6883_v60 = vadd.f32 %v2460_v48, %v2236_v58  ;;  %v2462_v24 = vpop.f32.mrb[123].mxu0 }
 0x29b   : > { %v4466_v40 = vpop.f32.mrb[64].mxu1 }
 0x29c   : > { %v6886_v23 = vadd.f32 %v4466_v40, %v6672_v13  ;;  %v2540_v32 = vpop.f32.mrb[65].mxu1 }
 0x29d   : > { %v2465_v17 = vpop.f32.mrb[124].mxu0  ;;  %v6889_v51 = vadd.f32 %v2540_v32, %v7770_v0 }
 0x29e   : > { %v6891_v37 = vadd.f32 %v2465_v17, %v2241_v36  ;;  %v2467_v57 = vpop.f32.mrb[125].mxu0 }
 0x29f   : > { %v4469_v18 = vpop.f32.mrb[66].mxu1 }
 0x2a0   : > { %v6894_v7 = vadd.f32 %v4469_v18, %v6684_v25  ;;  %v2550_v47 = vpop.f32.mrb[67].mxu1 }
 0x2a1   : > { %v2470_v8 = vpop.f32.mrb[126].mxu0  ;;  %v6897_v3 = vadd.f32 %v2550_v47, %v6677_v31 }
 0x2a2   : > { %v6899_v11 = vadd.f32 %v2470_v8, %v2246_v41  ;;  %v2472_v13 = vpop.f32.mrb[127].mxu0 }
 0x2a3   : > { %v4472_v55 = vpop.f32.mrb[68].mxu1 }
 0x2a4   : > { %v6902_v29 = vadd.f32 %v4472_v55, %v6696_v19  ;;  %v2560_v6 = vpop.f32.mrb[69].mxu1 }
 0x2a5   : > { %v6905_v50 = vadd.f32 %v2560_v6, %v6689_v28  ;;  %v6907_v58 = vpop.f32.mrb[128].mxu0 }
 0x2a6   : > { %v6909_v25 = vpop.f32.mrb[129].mxu0 }
 0x2a7   : > { %v4475_v1 = vpop.f32.mrb[70].mxu1 }
 0x2a8   : > { %v6912_v4 = vadd.f32 %v4475_v1, %v6708_v49  ;;  %v2570_v31 = vpop.f32.mrb[71].mxu1 }
 0x2a9   : > { %v6915_v45 = vadd.f32 %v2570_v31, %v6701_v42  ;;  %v6917_v34 = vpop.f32.mrb[130].mxu0 }
 0x2aa   : > { %v6919_v19 = vpop.f32.mrb[131].mxu0 }
 0x2ab   : > { %v4478_v20 = vpop.f32.mrb[72].mxu1 }
 0x2ac   : > { %v6922_v28 = vadd.f32 %v4478_v20, %v6726_v16  ;;  %v2580_v59 = vpop.f32.mrb[73].mxu1 }
 0x2ad   : > { %v6925_v36 = vadd.f32 %v2580_v59, %v6713_v30  ;;  %v6927_v53 = vpop.f32.mrb[132].mxu0 }
 0x2ae   : > { %v6929_v49 = vpop.f32.mrb[133].mxu0 }
 0x2af   : > { %v4481_v56 = vpop.f32.mrb[74].mxu1 }
 0x2b0   : > { %v6932_v42 = vadd.f32 %v4481_v56, %v6750_v54  ;;  %v2590_v46 = vpop.f32.mrb[75].mxu1 }
 0x2b1   : > { %v6935_v2 = vadd.f32 %v2590_v46, %v6737_v52  ;;  %v6937_v22 = vpop.f32.mrb[134].mxu0 }
 0x2b2   : > { %v6939_v16 = vpop.f32.mrb[135].mxu0 }
 0x2b3   : > { %v4484_v41 = vpop.f32.mrb[76].mxu1 }
 0x2b4   : > { %v6942_v30 = vadd.f32 %v4484_v41, %v6774_v39  ;;  %v2600_v35 = vpop.f32.mrb[77].mxu1 }
 0x2b5   : > { %v6945_v48 = vadd.f32 %v2600_v35, %v6761_v21  ;;  %v6947_v24 = vpop.f32.mrb[136].mxu0 }
 0x2b6   : > { %v6949_v54 = vpop.f32.mrb[137].mxu0 }
 0x2b7   : > { %v4487_v40 = vpop.f32.mrb[78].mxu1 }
 0x2b8   : > { %v6952_v52 = vadd.f32 %v4487_v40, %v6798_v14  ;;  %v2610_v32 = vpop.f32.mrb[79].mxu1 }
 0x2b9   : > { %v6955_v17 = vadd.f32 %v2610_v32, %v6785_v12  ;;  %v6957_v0 = vpop.f32.mrb[138].mxu0 }
 0x2ba   : > { %v6959_v39 = vpop.f32.mrb[139].mxu0 }
 0x2bb   : > { %v4490_v57 = vpop.f32.mrb[80].mxu1 }
 0x2bc   : > { %v6962_v21 = vadd.f32 %v4490_v57, %v6816_v61  ;;  %v2620_v18 = vpop.f32.mrb[81].mxu1 }
 0x2bd   : > { %v6965_v47 = vadd.f32 %v2620_v18, %v6809_v10  ;;  %v6967_v8 = vpop.f32.mrb[140].mxu0 }
 0x2be   : > { %v6969_v14 = vpop.f32.mrb[141].mxu0 }
 0x2bf   : > { %v4493_v13 = vpop.f32.mrb[82].mxu1 }
 0x2c0   : > { %v6972_v12 = vadd.f32 %v4493_v13, %v6828_v26  ;;  %v2630_v55 = vpop.f32.mrb[83].mxu1 }
 0x2c1   : > { %v6975_v6 = vadd.f32 %v2630_v55, %v6821_v5  ;;  %v6977_v1 = vpop.f32.mrb[142].mxu0 }
 0x2c2   : > { %v6979_v61 = vpop.f32.mrb[143].mxu0 }
 0x2c3   : > { %v4496_v31 = vpop.f32.mrb[84].mxu1 }
 0x2c4   : > { %v6982_v10 = vadd.f32 %v4496_v31, %v6840_v15  ;;  %v2640_v20 = vpop.f32.mrb[85].mxu1 }
 0x2c5   : > { %v6985_v59 = vadd.f32 %v2640_v20, %v6833_v43  ;;  %v6987_v56 = vpop.f32.mrb[144].mxu0 }
 0x2c6   : > { %v6989_v26 = vpop.f32.mrb[145].mxu0 }
 0x2c7   : > { %v4499_v46 = vpop.f32.mrb[86].mxu1 }
 0x2c8   : > { %v6992_v5 = vadd.f32 %v4499_v46, %v6850_v44  ;;  %v2650_v41 = vpop.f32.mrb[87].mxu1 }
 0x2c9   : > { %v6995_v35 = vadd.f32 %v2650_v41, %v6845_v63  ;;  %v6997_v40 = vpop.f32.mrb[146].mxu0 }
 0x2ca   : > { %v6999_v15 = vpop.f32.mrb[147].mxu0 }
 0x2cb   : > { %v4502_v32 = vpop.f32.mrb[88].mxu1 }
 0x2cc   : > { %v7002_v43 = vadd.f32 %v4502_v32, %v6862_v38  ;;  %v2660_v57 = vpop.f32.mrb[89].mxu1 }
 0x2cd   : > { %v7005_v18 = vadd.f32 %v2660_v57, %v6855_v62  ;;  %v7007_v13 = vpop.f32.mrb[148].mxu0 }
 0x2ce   : > { %v7009_v44 = vpop.f32.mrb[149].mxu0 }
 0x2cf   : > { %7771 = vst [vmem:[#allocation9_spill] sm:$0xff] %v7005_v18  ;;  %v4505_v55 = vpop.f32.mrb[90].mxu1 }
 0x2d0   : > { %v7012_v63 = vadd.f32 %v4505_v55, %v6876_v33  ;;  %v2670_v31 = vpop.f32.mrb[91].mxu1 }
 0x2d1   : > { %v7015_v20 = vadd.f32 %v2670_v31, %v6869_v9  ;;  %v7017_v46 = vpop.f32.mrb[150].mxu0 }
 0x2d2   : > { %7772 = vst [vmem:[#allocation13_spill] sm:$0xff] %v7012_v63  ;;  %v7019_v38 = vpop.f32.mrb[151].mxu0 }
 0x2d3   : > { %7773 = vst [vmem:[#allocation10_spill] sm:$0xff] %v7015_v20  ;;  %v4508_v41 = vpop.f32.mrb[92].mxu1 }
 0x2d4   : > { %v7022_v62 = vadd.f32 %v4508_v41, %v6883_v60  ;;  %v2680_v32 = vpop.f32.mrb[93].mxu1  ;;  %v7037_v60 = vld [vmem:[%s7314_s5] ss:$0 sm:$0xff] }
 0x2d5   : > { %v7025_v57 = vadd.f32 %v2680_v32, %v6880_v27 }
 0x2d7   : > { %7774 = vst [vmem:[#allocation14_spill] sm:$0xff] %v7025_v57  ;;  %v4511_v18 = vpop.f32.mrb[94].mxu1 }
 0x2d8   : > { %v7028_v33 = vadd.f32 %v4511_v18, %v6899_v11  ;;  %v2690_v55 = vpop.f32.mrb[95].mxu1 }
 0x2d9   : > { %v7031_v9 = vadd.f32 %v2690_v55, %v6891_v37 }
 0x2da   : > { %7775 = vst [vmem:[#allocation18_spill] sm:$0xff] %v7028_v33 }
 0x2db   : > { %7776 = vst [vmem:[#allocation15_spill] sm:$0xff] %v7031_v9  ;;  %v2910_v31 = vpop.f32.mrb[96].mxu1 }
 0x2dc   : > { %v3136_v20 = vadd.f32 %v6909_v25, %v2910_v31  ;;  %v2912_v63 = vpop.f32.mrb[97].mxu1 }
 0x2de   : > { %v3294_v27 = vadd.f32 %v3136_v20, %v6889_v51 }
 0x2df   : > { %v2915_v41 = vpop.f32.mrb[98].mxu1 }
 0x2e0   : > { %v3141_v32 = vadd.f32 %v6907_v58, %v2915_v41  ;;  %v2917_v11 = vpop.f32.mrb[99].mxu1  ;;  %v3333_v18 = vadd.f32 %v7037_v60, %v3294_v27 }
 0x2e2   : > { %v3295_v37 = vadd.f32 %v3141_v32, %v6886_v23  ;;  %v3365_v55 = vmax.f32 %v3333_v18, 0.0 }
 0x2e3   : > { %v2920_v9 = vpop.f32.mrb[100].mxu1 }
 0x2e4   : > { %v3334_v25 = vadd.f32 %v7037_v60, %v3295_v37  ;;  %v3146_v63 = vadd.f32 %v6919_v19, %v2920_v9  ;;  %v2922_v31 = vpop.f32.mrb[101].mxu1  ;;  %4624 = vmatprep.mubr.f32.mxu0 %v3365_v55 }
 0x2e6   : > { %v3366_v33 = vmax.f32 %v3334_v25, 0.0  ;;  %v3296_v57 = vadd.f32 %v3146_v63, %v6897_v3 }
 0x2e7   : > { %v2925_v51 = vpop.f32.mrb[102].mxu1 }
 0x2e8   : > { %v3151_v20 = vadd.f32 %v6917_v34, %v2925_v51  ;;  %v2927_v58 = vpop.f32.mrb[103].mxu1  ;;  %4625 = vmatmul.mubr.f32.vlgmr.msra.gmra.mrb[152].mxu0 %v3366_v33  ;;  %v3335_v27 = vadd.f32 %v7037_v60, %v3296_v57 }
 0x2ea   : > { %v3297_v23 = vadd.f32 %v3151_v20, %v6894_v7  ;;  %v3367_v41 = vmax.f32 %v3335_v27, 0.0 }
 0x2eb   : > { %v2930_v32 = vpop.f32.mrb[104].mxu1 }
 0x2ec   : > { %v3156_v11 = vadd.f32 %v6929_v49, %v2930_v32  ;;  %v2932_v18 = vpop.f32.mrb[105].mxu1  ;;  %4627 = vmatprep.mubr.f32.mxu0 %v3367_v41  ;;  %v3336_v19 = vadd.f32 %v7037_v60, %v3297_v23 }
 0x2ee   : > { %v3298_v9 = vadd.f32 %v3156_v11, %v6905_v50  ;;  %v3368_v3 = vmax.f32 %v3336_v19, 0.0 }
 0x2ef   : > { %v2935_v37 = vpop.f32.mrb[106].mxu1 }
 0x2f0   : > { %v3161_v34 = vadd.f32 %v6927_v53, %v2935_v37  ;;  %v2937_v55 = vpop.f32.mrb[107].mxu1  ;;  %4628 = vmatmul.mubr.f32.gmra.mrb[154].mxu0 %v3368_v3  ;;  %v3337_v57 = vadd.f32 %v7037_v60, %v3298_v9 }
 0x2f2   : > { %v3299_v7 = vadd.f32 %v3161_v34, %v6902_v29  ;;  %v3369_v33 = vmax.f32 %v3337_v57, 0.0 }
 0x2f3   : > { %v2940_v25 = vpop.f32.mrb[108].mxu1 }
 0x2f4   : > { %v3166_v49 = vadd.f32 %v6939_v16, %v2940_v25  ;;  %v2942_v63 = vpop.f32.mrb[109].mxu1  ;;  %4630 = vmatprep.mubr.f32.mxu0 %v3369_v33  ;;  %v3338_v31 = vadd.f32 %v7037_v60, %v3299_v7 }
 0x2f6   : > { %v3300_v50 = vadd.f32 %v3166_v49, %v6915_v45  ;;  %v3370_v51 = vmax.f32 %v3338_v31, 0.0 }
 0x2f7   : > { %v2945_v20 = vpop.f32.mrb[110].mxu1 }
 0x2f8   : > { %v3171_v53 = vadd.f32 %v6937_v22, %v2945_v20  ;;  %v2947_v58 = vpop.f32.mrb[111].mxu1  ;;  %4631 = vmatmul.mubr.f32.gmra.mrb[156].mxu0 %v3370_v51  ;;  %v3339_v27 = vadd.f32 %v7037_v60, %v3300_v50 }
 0x2fa   : > { %v3301_v29 = vadd.f32 %v3171_v53, %v6912_v4  ;;  %v3371_v23 = vmax.f32 %v3339_v27, 0.0 }
 0x2fb   : > { %v2950_v41 = vpop.f32.mrb[112].mxu1 }
 0x2fc   : > { %v3176_v16 = vadd.f32 %v6949_v54, %v2950_v41  ;;  %v2952_v32 = vpop.f32.mrb[113].mxu1  ;;  %4633 = vmatprep.mubr.f32.mxu0 %v3371_v23  ;;  %v3340_v11 = vadd.f32 %v7037_v60, %v3301_v29 }
 0x2fe   : > { %v3302_v45 = vadd.f32 %v3176_v16, %v6925_v36  ;;  %v3372_v18 = vmax.f32 %v3340_v11, 0.0 }
 0x2ff   : > { %v2955_v19 = vpop.f32.mrb[114].mxu1 }
 0x300   : > { %v3181_v22 = vadd.f32 %v6947_v24, %v2955_v19  ;;  %v2957_v9 = vpop.f32.mrb[115].mxu1  ;;  %4634 = vmatmul.mubr.f32.gmra.mrb[158].mxu0 %v3372_v18  ;;  %v3341_v3 = vadd.f32 %v7037_v60, %v3302_v45 }
 0x302   : > { %v3303_v4 = vadd.f32 %v3181_v22, %v6922_v28  ;;  %v3373_v37 = vmax.f32 %v3341_v3, 0.0 }
 0x303   : > { %v2960_v34 = vpop.f32.mrb[116].mxu1 }
 0x304   : > { %v3186_v54 = vadd.f32 %v6959_v39, %v2960_v34  ;;  %v2962_v55 = vpop.f32.mrb[117].mxu1  ;;  %4636 = vmatprep.mubr.f32.mxu0 %v3373_v37  ;;  %v3342_v57 = vadd.f32 %v7037_v60, %v3303_v4 }
 0x306   : > { %v3304_v36 = vadd.f32 %v3186_v54, %v6935_v2  ;;  %v3374_v7 = vmax.f32 %v3342_v57, 0.0 }
 0x307   : > { %v2965_v33 = vpop.f32.mrb[118].mxu1 }
 0x308   : > { %v3191_v24 = vadd.f32 %v6957_v0, %v2965_v33  ;;  %v2967_v25 = vpop.f32.mrb[119].mxu1  ;;  %4637 = vmatmul.mubr.f32.gmra.mrb[160].mxu0 %v3374_v7  ;;  %v3343_v49 = vadd.f32 %v7037_v60, %v3304_v36 }
 0x30a   : > { %v3305_v28 = vadd.f32 %v3191_v24, %v6932_v42  ;;  %v3375_v63 = vmax.f32 %v3343_v49, 0.0 }
 0x30b   : > { %v2970_v31 = vpop.f32.mrb[120].mxu1 }
 0x30c   : > { %v3196_v39 = vadd.f32 %v6969_v14, %v2970_v31  ;;  %v2972_v50 = vpop.f32.mrb[121].mxu1  ;;  %4639 = vmatprep.mubr.f32.mxu0 %v3375_v63  ;;  %v3344_v51 = vadd.f32 %v7037_v60, %v3305_v28 }
 0x30e   : > { %v3306_v2 = vadd.f32 %v3196_v39, %v6945_v48  ;;  %v3376_v20 = vmax.f32 %v3344_v51, 0.0 }
 0x30f   : > { %v2975_v53 = vpop.f32.mrb[122].mxu1 }
 0x310   : > { %v3201_v0 = vadd.f32 %v6967_v8, %v2975_v53  ;;  %v2977_v58 = vpop.f32.mrb[123].mxu1  ;;  %4640 = vmatmul.mubr.f32.gmra.mrb[162].mxu0 %v3376_v20  ;;  %v3345_v27 = vadd.f32 %v7037_v60, %v3306_v2 }
 0x312   : > { %v3307_v42 = vadd.f32 %v3201_v0, %v6942_v30  ;;  %v3377_v29 = vmax.f32 %v3345_v27, 0.0 }
 0x313   : > { %v2980_v23 = vpop.f32.mrb[124].mxu1 }
 0x314   : > { %v3206_v14 = vadd.f32 %v6979_v61, %v2980_v23  ;;  %v2982_v41 = vpop.f32.mrb[125].mxu1  ;;  %4642 = vmatprep.mubr.f32.mxu0 %v3377_v29  ;;  %v3346_v16 = vadd.f32 %v7037_v60, %v3307_v42 }
 0x316   : > { %v3308_v48 = vadd.f32 %v3206_v14, %v6955_v17  ;;  %v3378_v32 = vmax.f32 %v3346_v16, 0.0 }
 0x317   : > { %v2985_v11 = vpop.f32.mrb[126].mxu1 }
 0x318   : > { %v3211_v8 = vadd.f32 %v6977_v1, %v2985_v11  ;;  %v2987_v45 = vpop.f32.mrb[127].mxu1  ;;  %4643 = vmatmul.mubr.f32.gmra.mrb[164].mxu0 %v3378_v32  ;;  %v3347_v18 = vadd.f32 %v7037_v60, %v3308_v48 }
 0x31a   : > { %v3309_v30 = vadd.f32 %v3211_v8, %v6952_v52  ;;  %v3379_v19 = vmax.f32 %v3347_v18, 0.0 }
 0x31b   : > { %v2990_v22 = vpop.f32.mrb[128].mxu1 }
 0x31c   : > { %v3216_v61 = vadd.f32 %v6989_v26, %v2990_v22  ;;  %v2992_v9 = vpop.f32.mrb[129].mxu1  ;;  %4645 = vmatprep.mubr.f32.mxu0 %v3379_v19  ;;  %v3348_v3 = vadd.f32 %v7037_v60, %v3309_v30 }
 0x31e   : > { %v3310_v17 = vadd.f32 %v3216_v61, %v6965_v47  ;;  %v3380_v4 = vmax.f32 %v3348_v3, 0.0 }
 0x31f   : > { %v2995_v37 = vpop.f32.mrb[130].mxu1 }
 0x320   : > { %v3221_v1 = vadd.f32 %v6987_v56, %v2995_v37  ;;  %v2997_v34 = vpop.f32.mrb[131].mxu1  ;;  %4646 = vmatmul.mubr.f32.gmra.mrb[166].mxu0 %v3380_v4  ;;  %v3349_v54 = vadd.f32 %v7037_v60, %v3310_v17 }
 0x322   : > { %v3311_v52 = vadd.f32 %v3221_v1, %v6962_v21  ;;  %v3381_v55 = vmax.f32 %v3349_v54, 0.0 }
 0x323   : > { %v3000_v57 = vpop.f32.mrb[132].mxu1 }
 0x324   : > { %v3226_v26 = vadd.f32 %v6999_v15, %v3000_v57  ;;  %v3002_v36 = vpop.f32.mrb[133].mxu1  ;;  %4648 = vmatprep.mubr.f32.mxu0 %v3381_v55  ;;  %v3350_v7 = vadd.f32 %v7037_v60, %v3311_v52  ;;  %v7777_v52 = vld [vmem:[#allocation9_spill] sm:$0xff] }
 0x326   : > { %v3312_v47 = vadd.f32 %v3226_v26, %v6975_v6  ;;  %v3382_v33 = vmax.f32 %v3350_v7, 0.0 }
 0x327   : > { %v3005_v24 = vpop.f32.mrb[134].mxu1 }
 0x328   : > { %v3231_v56 = vadd.f32 %v6997_v40, %v3005_v24  ;;  %v3007_v25 = vpop.f32.mrb[135].mxu1  ;;  %4649 = vmatmul.mubr.f32.gmra.mrb[168].mxu0 %v3382_v33  ;;  %v3351_v49 = vadd.f32 %v7037_v60, %v3312_v47  ;;  %v7778_v24 = vld [vmem:[#allocation13_spill] sm:$0xff] }
 0x329   : > { %v7779_v25 = vld [vmem:[#allocation10_spill] sm:$0xff] }
 0x32a   : > { %v3313_v21 = vadd.f32 %v3231_v56, %v6972_v12  ;;  %v3383_v28 = vmax.f32 %v3351_v49, 0.0 }
 0x32b   : > { %v3010_v63 = vpop.f32.mrb[136].mxu1 }
 0x32c   : > { %v3236_v15 = vadd.f32 %v7009_v44, %v3010_v63  ;;  %v3012_v31 = vpop.f32.mrb[137].mxu1  ;;  %4651 = vmatprep.mubr.f32.mxu0 %v3383_v28  ;;  %v3352_v39 = vadd.f32 %v7037_v60, %v3313_v21 }
 0x32e   : > { %v3314_v6 = vadd.f32 %v3236_v15, %v6985_v59  ;;  %v3384_v50 = vmax.f32 %v3352_v39, 0.0 }
 0x32f   : > { %v3015_v51 = vpop.f32.mrb[138].mxu1 }
 0x330   : > { %v3241_v40 = vadd.f32 %v7007_v13, %v3015_v51  ;;  %v3017_v2 = vpop.f32.mrb[139].mxu1  ;;  %4652 = vmatmul.mubr.f32.gmra.mrb[170].mxu0 %v3384_v50  ;;  %v3353_v20 = vadd.f32 %v7037_v60, %v3314_v6  ;;  %v7780_v51 = vld [vmem:[#allocation14_spill] sm:$0xff] }
 0x332   : > { %v3315_v12 = vadd.f32 %v3241_v40, %v6982_v10  ;;  %v3385_v53 = vmax.f32 %v3353_v20, 0.0 }
 0x333   : > { %v3020_v0 = vpop.f32.mrb[140].mxu1 }
 0x334   : > { %v3246_v44 = vadd.f32 %v7019_v38, %v3020_v0  ;;  %v3022_v58 = vpop.f32.mrb[141].mxu1  ;;  %4654 = vmatprep.mubr.f32.mxu0 %v3385_v53  ;;  %v3354_v27 = vadd.f32 %v7037_v60, %v3315_v12 }
 0x336   : > { %v3316_v59 = vadd.f32 %v3246_v44, %v6995_v35  ;;  %v3386_v42 = vmax.f32 %v3354_v27, 0.0 }
 0x337   : > { %v3025_v29 = vpop.f32.mrb[142].mxu1 }
 0x338   : > { %v3251_v13 = vadd.f32 %v7017_v46, %v3025_v29  ;;  %v3027_v23 = vpop.f32.mrb[143].mxu1  ;;  %4655 = vmatmul.mubr.f32.gmra.mrb[172].mxu0 %v3386_v42  ;;  %v3355_v14 = vadd.f32 %v7037_v60, %v3316_v59  ;;  %v7781_v59 = vld [vmem:[#allocation18_spill] sm:$0xff]  ;;  %v7782_v29 = vld [vmem:[#allocation15_spill] sm:$0xff] }
 0x33a   : > { %v3317_v10 = vadd.f32 %v3251_v13, %v6992_v5  ;;  %v3387_v41 = vmax.f32 %v3355_v14, 0.0 }
 0x33b   : > { %v3030_v16 = vpop.f32.mrb[144].mxu1 }
 0x33c   : > { %v3032_v48 = vpop.f32.mrb[145].mxu1  ;;  %4657 = vmatprep.mubr.f32.mxu0 %v3387_v41  ;;  %v3356_v38 = vadd.f32 %v7037_v60, %v3317_v10 }
 0x33d   : > { %v7129_v48 = vld [vmem:[%s7315_s6] ss:$0 sm:$0xff] }
 0x33e   : > { %v3388_v32 = vmax.f32 %v3356_v38, 0.0 }
 0x33f   : > { %v3035_v11 = vpop.f32.mrb[146].mxu1 }
 0x340   : > { %v3037_v8 = vpop.f32.mrb[147].mxu1  ;;  %4658 = vmatmul.mubr.f32.gmra.mrb[174].mxu0 %v3388_v32 }
 0x341   : > { %v3645_v8 = vld [vmem:[%s5086_s18] sm:$0xff] }
 0x343   : > { %v3040_v35 = vpop.f32.mrb[148].mxu1 }
 0x344   : > { %v3042_v45 = vpop.f32.mrb[149].mxu1 }
 0x345   : > { %v3648_v45 = vld [vmem:[%s5086_s18 + $0x18] sm:$0xff] }
 0x347   : > { %v3045_v18 = vpop.f32.mrb[150].mxu1 }
 0x348   : > { %v3047_v46 = vpop.f32.mrb[151].mxu1 }
 0x349   : > { %v3650_v46 = vld [vmem:[%s5086_s18 + $0x28] sm:$0xff] }
 0x34b   : > { %v3050_v30 = vpop.f32.mrb[152].mxu1 }
 0x34c   : > { %v3052_v19 = vpop.f32.mrb[153].mxu1 }
 0x34d   : > { %v3652_v19 = vld [vmem:[%s5086_s18 + $0x38] sm:$0xff] }
 0x34f   : > { %v3055_v22 = vpop.f32.mrb[154].mxu1 }
 0x350   : > { %v3057_v61 = vpop.f32.mrb[155].mxu1 }
 0x351   : > { %v7142_v61 = vld [vmem:[%s5086_s18 + $0x48] sm:$0xff] }
 0x353   : > { %v3060_v9 = vpop.f32.mrb[156].mxu1 }
 0x354   : > { %v3062_v5 = vpop.f32.mrb[157].mxu1 }
 0x355   : > { %v7148_v5 = vld [vmem:[%s5086_s18 + $0x58] sm:$0xff] }
 0x357   : > { %v3065_v3 = vpop.f32.mrb[158].mxu1 }
 0x358   : > { %v3067_v17 = vpop.f32.mrb[159].mxu1 }
 0x359   : > { %v7154_v17 = vld [vmem:[%s5086_s18 + $0x68] sm:$0xff] }
 0x35b   : > { %v4582_v4 = vpop.f32.mrb[160].mxu1 }
 0x35c   : > { %v3261_v37 = vadd.f32 %v4582_v4, %v3035_v11  ;;  %v3255_v1 = vpop.f32.mrb[161].mxu1  ;;  %v7157_v4 = vld [vmem:[%s5086_s18 + $0x60] sm:$0xff] }
 0x35d   : > { %v3256_v34 = vadd.f32 %v3255_v1, %v3030_v16  ;;  %v7163_v1 = vld [vmem:[%s5086_s18 + $0x70] sm:$0xff] }
 0x35e   : > { %v3319_v54 = vadd.f32 %v3261_v37, %v7002_v43  ;;  %v7160_v37 = vld [vmem:[%s5086_s18 + $0x78] sm:$0xff] }
 0x35f   : > { %v3318_v55 = vadd.f32 %v3256_v34, %v7777_v52  ;;  %v4585_v57 = vpop.f32.mrb[162].mxu1  ;;  %v7166_v34 = vld [vmem:[%s5086_s18 + $0x88] sm:$0xff]  ;;  %v7172_v52 = vld [vmem:[%s5086_s18 + $0x98] sm:$0xff] }
 0x360   : > { %v3271_v26 = vadd.f32 %v4585_v57, %v3045_v18  ;;  %v3265_v36 = vpop.f32.mrb[163].mxu1  ;;  %v3358_v7 = vadd.f32 %v7037_v60, %v3319_v54  ;;  %v3647_v18 = vld [vmem:[%s5086_s18 + $0x10] sm:$0xff]  ;;  %v7169_v54 = vld [vmem:[%s5086_s18 + $0x80] sm:$0xff]  ;;  %v7178_v57 = vld [vmem:[%s5086_s18 + $0xa8] sm:$0xff] }
 0x361   : > { %v3266_v47 = vadd.f32 %v3265_v36, %v3040_v35  ;;  %v3357_v33 = vadd.f32 %v7037_v60, %v3318_v55  ;;  %v7175_v55 = vld [vmem:[%s5086_s18 + $0x90] sm:$0xff]  ;;  %v7184_v36 = vld [vmem:[%s5086_s18 + $0xb8] sm:$0xff] }
 0x362   : > { %v3321_v56 = vadd.f32 %v3271_v26, %v7778_v24  ;;  %v3390_v31 = vmax.f32 %v3358_v7, 0.0  ;;  %v7181_v26 = vld [vmem:[%s5086_s18 + $0xa0] sm:$0xff]  ;;  %v7187_v7 = vld [vmem:[%s5086_s18 + $0xb0] sm:$0xff] }
 0x363   : > { %v3320_v49 = vadd.f32 %v3266_v47, %v7779_v25  ;;  %v4588_v21 = vpop.f32.mrb[164].mxu1  ;;  %v3389_v28 = vmax.f32 %v3357_v33, 0.0  ;;  %v7190_v47 = vld [vmem:[%s5086_s18 + $0xc8] sm:$0xff]  ;;  %v7193_v33 = vld [vmem:[%s5086_s18 + $0xc0] sm:$0xff]  ;;  %v7199_v25 = vld [vmem:[%s5086_s18 + $0xd0] sm:$0xff] }
 0x364   : > { %v3281_v63 = vadd.f32 %v4588_v21, %v3055_v22  ;;  %v3275_v15 = vpop.f32.mrb[165].mxu1  ;;  %v3360_v43 = vadd.f32 %v7037_v60, %v3321_v56  ;;  %v3651_v22 = vld [vmem:[%s5086_s18 + $0x30] sm:$0xff]  ;;  %v7196_v56 = vld [vmem:[%s5086_s18 + $0xd8] sm:$0xff] }
 0x365   : > { %v3276_v39 = vadd.f32 %v3275_v15, %v3050_v30  ;;  %4660 = vmatprep.mubr.f32.mxu0 %v3389_v28  ;;  %v3359_v6 = vadd.f32 %v7037_v60, %v3320_v49  ;;  %v3649_v30 = vld [vmem:[%s5086_s18 + $0x20] sm:$0xff]  ;;  %v7202_v49 = vld [vmem:[%s5086_s18 + $0xe8] sm:$0xff]  ;;  %v7218_v15 = vld [vmem:[%s5086_s18 + $0xf0] sm:$0xff] }
 0x366   : > { %v3323_v50 = vadd.f32 %v3281_v63, %v7022_v62  ;;  %4661 = vmatmul.mubr.f32.gmra.mrb[176].mxu0 %v3390_v31  ;;  %v3392_v0 = vmax.f32 %v3360_v43, 0.0  ;;  %v7212_v28 = vld [vmem:[%s5086_s18 + $0xe0] sm:$0xff]  ;;  %v7215_v63 = vld [vmem:[%s5086_s18 + $0xf8] sm:$0xff] }
 0x367   : > { %v3322_v40 = vadd.f32 %v3276_v39, %v7780_v51  ;;  %v4591_v2 = vpop.f32.mrb[166].mxu1  ;;  %v3391_v20 = vmax.f32 %v3359_v6, 0.0 }
 0x368   : > { %v3291_v12 = vadd.f32 %v4591_v2, %v3065_v3  ;;  %v3285_v53 = vpop.f32.mrb[167].mxu1  ;;  %v3362_v44 = vadd.f32 %v7037_v60, %v3323_v50  ;;  %v7151_v3 = vld [vmem:[%s5086_s18 + $0x50] sm:$0xff] }
 0x369   : > { %v3286_v58 = vadd.f32 %v3285_v53, %v3060_v9  ;;  %4663 = vmatprep.mubr.f32.mxu0 %v3391_v20  ;;  %v3361_v27 = vadd.f32 %v7037_v60, %v3322_v40  ;;  %v7145_v9 = vld [vmem:[%s5086_s18 + $0x40] sm:$0xff] }
 0x36a   : > { %v3325_v42 = vadd.f32 %v3291_v12, %v7781_v59  ;;  %4664 = vmatmul.mubr.f32.gmra.mrb[178].mxu0 %v3392_v0  ;;  %v3394_v23 = vmax.f32 %v3362_v44, 0.0 }
 0x36b   : > { %v3324_v62 = vadd.f32 %v3286_v58, %v7782_v29  ;;  %v3393_v13 = vmax.f32 %v3361_v27, 0.0 }
 0x36c   : > { %v3364_v14 = vadd.f32 %v7037_v60, %v3325_v42 }
 0x36d   : > { %4666 = vmatprep.mubr.f32.mxu0 %v3393_v13  ;;  %v3363_v10 = vadd.f32 %v7037_v60, %v3324_v62  ;;  %v3646_v60 = vld [vmem:[%s5086_s18 + $0x8] sm:$0xff] }
 0x36e   : > { %4667 = vmatmul.mubr.f32.gmra.mrb[180].mxu0 %v3394_v23  ;;  %v3396_v16 = vmax.f32 %v3364_v14, 0.0 }
 0x36f   : > { %v3395_v41 = vmax.f32 %v3363_v10, 0.0 }
 0x371   : > { %4669 = vmatprep.mubr.f32.mxu0 %v3395_v41 }
 0x372   : > { %4670 = vmatmul.mubr.f32.gmra.mrb[182].mxu0 %v3396_v16 }
 0x3bb   : > { %v4626_v38 = vpop.f32.mrb[152].mxu0 }
 0x3bc   : > { %v3492_v32 = vadd.f32 %v4626_v38, %v7129_v48  ;;  %v3486_v11 = vpop.f32.mrb[153].mxu0 }
 0x3bd   : > { %v3487_v35 = vadd.f32 %v7129_v48, %v3486_v11 }
 0x3be   : > { %v3678_v24 = vadd.f32 %v3646_v60, %v3492_v32 }
 0x3bf   : > { %v3677_v21 = vadd.f32 %v3645_v8, %v3487_v35 }
 0x3c0   : > { %v3710_v31 = vmax.f32 %v3678_v24, 0.0 }
 0x3c1   : > { %v3709_v43 = vmax.f32 %v3677_v21, 0.0 }
 0x3c2   : > { %3742 = vst [vmem:[%s7209_s27 + $0x8] sm:$0xff] %v3710_v31 }
 0x3c3   : > { %v4629_v39 = vpop.f32.mrb[154].mxu0  ;;  %3741 = vst [vmem:[%s7209_s27] sm:$0xff] %v3709_v43 }
 0x3c4   : > { %v3502_v6 = vadd.f32 %v4629_v39, %v7129_v48  ;;  %v3496_v50 = vpop.f32.mrb[155].mxu0 }
 0x3c5   : > { %v3497_v51 = vadd.f32 %v7129_v48, %v3496_v50 }
 0x3c6   : > { %v3680_v40 = vadd.f32 %v3648_v45, %v3502_v6 }
 0x3c7   : > { %v3679_v2 = vadd.f32 %v3647_v18, %v3497_v51 }
 0x3c8   : > { %v3712_v20 = vmax.f32 %v3680_v40, 0.0 }
 0x3c9   : > { %v3711_v12 = vmax.f32 %v3679_v2, 0.0 }
 0x3ca   : > { %3744 = vst [vmem:[%s7209_s27 + $0x18] sm:$0xff] %v3712_v20 }
 0x3cb   : > { %v4632_v53 = vpop.f32.mrb[156].mxu0  ;;  %3743 = vst [vmem:[%s7209_s27 + $0x10] sm:$0xff] %v3711_v12 }
 0x3cc   : > { %v3512_v0 = vadd.f32 %v4632_v53, %v7129_v48  ;;  %v3506_v44 = vpop.f32.mrb[157].mxu0 }
 0x3cd   : > { %v3507_v58 = vadd.f32 %v7129_v48, %v3506_v44 }
 0x3ce   : > { %v3682_v27 = vadd.f32 %v3650_v46, %v3512_v0 }
 0x3cf   : > { %v3681_v59 = vadd.f32 %v3649_v30, %v3507_v58 }
 0x3d0   : > { %v3714_v42 = vmax.f32 %v3682_v27, 0.0 }
 0x3d1   : > { %v3713_v29 = vmax.f32 %v3681_v59, 0.0 }
 0x3d2   : > { %3746 = vst [vmem:[%s7209_s27 + $0x28] sm:$0xff] %v3714_v42 }
 0x3d3   : > { %v4635_v62 = vpop.f32.mrb[158].mxu0  ;;  %3745 = vst [vmem:[%s7209_s27 + $0x20] sm:$0xff] %v3713_v29 }
 0x3d4   : > { %v3522_v13 = vadd.f32 %v4635_v62, %v7129_v48  ;;  %v3516_v23 = vpop.f32.mrb[159].mxu0 }
 0x3d5   : > { %v3517_v14 = vadd.f32 %v7129_v48, %v3516_v23 }
 0x3d6   : > { %v3684_v10 = vadd.f32 %v3652_v19, %v3522_v13 }
 0x3d7   : > { %v3683_v41 = vadd.f32 %v3651_v22, %v3517_v14 }
 0x3d8   : > { %v3716_v16 = vmax.f32 %v3684_v10, 0.0 }
 0x3d9   : > { %v3715_v38 = vmax.f32 %v3683_v41, 0.0 }
 0x3da   : > { %3748 = vst [vmem:[%s7209_s27 + $0x38] sm:$0xff] %v3716_v16 }
 0x3db   : > { %v4638_v60 = vpop.f32.mrb[160].mxu0  ;;  %3747 = vst [vmem:[%s7209_s27 + $0x30] sm:$0xff] %v3715_v38 }
 0x3dc   : > { %v3532_v32 = vadd.f32 %v4638_v60, %v7129_v48  ;;  %v3526_v11 = vpop.f32.mrb[161].mxu0 }
 0x3dd   : > { %v3527_v8 = vadd.f32 %v7129_v48, %v3526_v11 }
 0x3de   : > { %v3686_v35 = vadd.f32 %v7142_v61, %v3532_v32 }
 0x3df   : > { %v3685_v45 = vadd.f32 %v7145_v9, %v3527_v8 }
 0x3e0   : > { %v3718_v18 = vmax.f32 %v3686_v35, 0.0 }
 0x3e1   : > { %v3717_v46 = vmax.f32 %v3685_v45, 0.0 }
 0x3e2   : > { %3750 = vst [vmem:[%s7209_s27 + $0x48] sm:$0xff] %v3718_v18 }
 0x3e3   : > { %v4641_v30 = vpop.f32.mrb[162].mxu0  ;;  %3749 = vst [vmem:[%s7209_s27 + $0x40] sm:$0xff] %v3717_v46 }
 0x3e4   : > { %v3542_v19 = vadd.f32 %v4641_v30, %v7129_v48  ;;  %v3536_v22 = vpop.f32.mrb[163].mxu0 }
 0x3e5   : > { %v3537_v24 = vadd.f32 %v7129_v48, %v3536_v22 }
 0x3e6   : > { %v3688_v21 = vadd.f32 %v7148_v5, %v3542_v19 }
 0x3e7   : > { %v3687_v31 = vadd.f32 %v7151_v3, %v3537_v24 }
 0x3e8   : > { %v3720_v61 = vmax.f32 %v3688_v21, 0.0 }
 0x3e9   : > { %v3719_v43 = vmax.f32 %v3687_v31, 0.0 }
 0x3ea   : > { %3752 = vst [vmem:[%s7209_s27 + $0x58] sm:$0xff] %v3720_v61 }
 0x3eb   : > { %v4644_v9 = vpop.f32.mrb[164].mxu0  ;;  %3751 = vst [vmem:[%s7209_s27 + $0x50] sm:$0xff] %v3719_v43 }
 0x3ec   : > { %v3552_v39 = vadd.f32 %v4644_v9, %v7129_v48  ;;  %v3546_v6 = vpop.f32.mrb[165].mxu0 }
 0x3ed   : > { %v3547_v50 = vadd.f32 %v7129_v48, %v3546_v6 }
 0x3ee   : > { %v3690_v51 = vadd.f32 %v7154_v17, %v3552_v39 }
 0x3ef   : > { %v3689_v40 = vadd.f32 %v7157_v4, %v3547_v50 }
 0x3f0   : > { %v3722_v5 = vmax.f32 %v3690_v51, 0.0 }
 0x3f1   : > { %v3721_v2 = vmax.f32 %v3689_v40, 0.0 }
 0x3f2   : > { %3754 = vst [vmem:[%s7209_s27 + $0x68] sm:$0xff] %v3722_v5 }
 0x3f3   : > { %v4647_v3 = vpop.f32.mrb[166].mxu0  ;;  %3753 = vst [vmem:[%s7209_s27 + $0x60] sm:$0xff] %v3721_v2 }
 0x3f4   : > { %v3562_v20 = vadd.f32 %v4647_v3, %v7129_v48  ;;  %v3556_v12 = vpop.f32.mrb[167].mxu0 }
 0x3f5   : > { %v3557_v53 = vadd.f32 %v7129_v48, %v3556_v12 }
 0x3f6   : > { %v3692_v0 = vadd.f32 %v7160_v37, %v3562_v20 }
 0x3f7   : > { %v3691_v44 = vadd.f32 %v7163_v1, %v3557_v53 }
 0x3f8   : > { %v3724_v17 = vmax.f32 %v3692_v0, 0.0 }
 0x3f9   : > { %v3723_v58 = vmax.f32 %v3691_v44, 0.0 }
 0x3fa   : > { %3756 = vst [vmem:[%s7209_s27 + $0x78] sm:$0xff] %v3724_v17 }
 0x3fb   : > { %v4650_v4 = vpop.f32.mrb[168].mxu0  ;;  %3755 = vst [vmem:[%s7209_s27 + $0x70] sm:$0xff] %v3723_v58 }
 0x3fc   : > { %v3572_v27 = vadd.f32 %v4650_v4, %v7129_v48  ;;  %v3566_v59 = vpop.f32.mrb[169].mxu0 }
 0x3fd   : > { %v3567_v42 = vadd.f32 %v7129_v48, %v3566_v59 }
 0x3fe   : > { %v3694_v29 = vadd.f32 %v7166_v34, %v3572_v27 }
 0x3ff   : > { %v3693_v62 = vadd.f32 %v7169_v54, %v3567_v42 }
 0x400   : > { %v3726_v37 = vmax.f32 %v3694_v29, 0.0 }
 0x401   : > { %v3725_v13 = vmax.f32 %v3693_v62, 0.0 }
 0x402   : > { %3758 = vst [vmem:[%s7209_s27 + $0x88] sm:$0xff] %v3726_v37 }
 0x403   : > { %v4653_v1 = vpop.f32.mrb[170].mxu0  ;;  %3757 = vst [vmem:[%s7209_s27 + $0x80] sm:$0xff] %v3725_v13 }
 0x404   : > { %v3582_v23 = vadd.f32 %v4653_v1, %v7129_v48  ;;  %v3576_v14 = vpop.f32.mrb[171].mxu0 }
 0x405   : > { %v3577_v10 = vadd.f32 %v7129_v48, %v3576_v14 }
 0x406   : > { %v3696_v41 = vadd.f32 %v7172_v52, %v3582_v23 }
 0x407   : > { %v3695_v16 = vadd.f32 %v7175_v55, %v3577_v10 }
 0x408   : > { %v3728_v34 = vmax.f32 %v3696_v41, 0.0 }
 0x409   : > { %v3727_v38 = vmax.f32 %v3695_v16, 0.0 }
 0x40a   : > { %3760 = vst [vmem:[%s7209_s27 + $0x98] sm:$0xff] %v3728_v34 }
 0x40b   : > { %v4656_v54 = vpop.f32.mrb[172].mxu0  ;;  %3759 = vst [vmem:[%s7209_s27 + $0x90] sm:$0xff] %v3727_v38 }
 0x40c   : > { %v3592_v60 = vadd.f32 %v4656_v54, %v7129_v48  ;;  %v3586_v32 = vpop.f32.mrb[173].mxu0 }
 0x40d   : > { %v3587_v11 = vadd.f32 %v7129_v48, %v3586_v32 }
 0x40e   : > { %v3698_v8 = vadd.f32 %v7178_v57, %v3592_v60 }
 0x40f   : > { %v3697_v35 = vadd.f32 %v7181_v26, %v3587_v11 }
 0x410   : > { %v3730_v52 = vmax.f32 %v3698_v8, 0.0 }
 0x411   : > { %v3729_v45 = vmax.f32 %v3697_v35, 0.0 }
 0x412   : > { %3762 = vst [vmem:[%s7209_s27 + $0xa8] sm:$0xff] %v3730_v52 }
 0x413   : > { %v4659_v55 = vpop.f32.mrb[174].mxu0  ;;  %3761 = vst [vmem:[%s7209_s27 + $0xa0] sm:$0xff] %v3729_v45 }
 0x414   : > { %v3602_v18 = vadd.f32 %v4659_v55, %v7129_v48  ;;  %v3596_v46 = vpop.f32.mrb[175].mxu0 }
 0x415   : > { %v3597_v30 = vadd.f32 %v7129_v48, %v3596_v46 }
 0x416   : > { %v3700_v19 = vadd.f32 %v7184_v36, %v3602_v18 }
 0x417   : > { %v3699_v22 = vadd.f32 %v7187_v7, %v3597_v30 }
 0x418   : > { %v3732_v24 = vmax.f32 %v3700_v19, 0.0 }
 0x419   : > { %v3731_v21 = vmax.f32 %v3699_v22, 0.0 }
 0x41a   : > { %3764 = vst [vmem:[%s7209_s27 + $0xb8] sm:$0xff] %v3732_v24 }
 0x41b   : > { %3763 = vst [vmem:[%s7209_s27 + $0xb0] sm:$0xff] %v3731_v21 }
 0x439   : > { %v4662_v57 = vpop.f32.mrb[176].mxu0 }
 0x43a   : > { %v3612_v26 = vadd.f32 %v4662_v57, %v7129_v48  ;;  %v3606_v31 = vpop.f32.mrb[177].mxu0 }
 0x43b   : > { %v3607_v61 = vadd.f32 %v7129_v48, %v3606_v31 }
 0x43c   : > { %v3702_v43 = vadd.f32 %v7190_v47, %v3612_v26 }
 0x43d   : > { %v3701_v9 = vadd.f32 %v7193_v33, %v3607_v61  ;;  %v4665_v39 = vpop.f32.mrb[178].mxu0 }
 0x43e   : > { %v3734_v36 = vmax.f32 %v3702_v43, 0.0  ;;  %v3622_v7 = vadd.f32 %v4665_v39, %v7129_v48  ;;  %v3616_v6 = vpop.f32.mrb[179].mxu0 }
 0x43f   : > { %v3733_v50 = vmax.f32 %v3701_v9, 0.0  ;;  %v3617_v51 = vadd.f32 %v7129_v48, %v3616_v6 }
 0x440   : > { %v3704_v40 = vadd.f32 %v7196_v56, %v3622_v7  ;;  %3766 = vst [vmem:[%s7209_s27 + $0xc8] sm:$0xff] %v3734_v36 }
 0x441   : > { %v3703_v5 = vadd.f32 %v7199_v25, %v3617_v51  ;;  %v4668_v2 = vpop.f32.mrb[180].mxu0  ;;  %3765 = vst [vmem:[%s7209_s27 + $0xc0] sm:$0xff] %v3733_v50 }
 0x442   : > { %v3736_v47 = vmax.f32 %v3704_v40, 0.0  ;;  %v3632_v33 = vadd.f32 %v4668_v2, %v7129_v48  ;;  %v3626_v3 = vpop.f32.mrb[181].mxu0 }
 0x443   : > { %v3735_v20 = vmax.f32 %v3703_v5, 0.0  ;;  %v3627_v12 = vadd.f32 %v7129_v48, %v3626_v3 }
 0x444   : > { %v3706_v53 = vadd.f32 %v7202_v49, %v3632_v33  ;;  %3768 = vst [vmem:[%s7209_s27 + $0xd8] sm:$0xff] %v3736_v47 }
 0x445   : > { %v3705_v56 = vadd.f32 %v7212_v28, %v3627_v12  ;;  %v4671_v0 = vpop.f32.mrb[182].mxu0  ;;  %3767 = vst [vmem:[%s7209_s27 + $0xd0] sm:$0xff] %v3735_v20 }
 0x446   : > { %v3738_v25 = vmax.f32 %v3706_v53, 0.0  ;;  %v3642_v44 = vadd.f32 %v4671_v0, %v7129_v48  ;;  %v3636_v17 = vpop.f32.mrb[183].mxu0 }
 0x447   : > { %v3737_v58 = vmax.f32 %v3705_v56, 0.0  ;;  %v3637_v4 = vadd.f32 %v7129_v48, %v3636_v17 }
 0x448   : > { %v3708_v27 = vadd.f32 %v7215_v63, %v3642_v44  ;;  %3770 = vst [vmem:[%s7209_s27 + $0xe8] sm:$0xff] %v3738_v25 }
 0x449   : > { %v3707_v59 = vadd.f32 %v7218_v15, %v3637_v4  ;;  %3769 = vst [vmem:[%s7209_s27 + $0xe0] sm:$0xff] %v3737_v58 }
 0x44a   : > { %v3740_v49 = vmax.f32 %v3708_v27, 0.0 }
 0x44b   : > { %v3739_v42 = vmax.f32 %v3707_v59, 0.0 }
 0x44c   : > { %3772 = vst [vmem:[%s7209_s27 + $0xf8] sm:$0xff] %v3740_v49 }
 0x44d   : > { %3771 = vst [vmem:[%s7209_s27 + $0xf0] sm:$0xff] %v3739_v42 }
 0x44e PF: > { %s17_s24 = sadd.s32 1, %s5008_s24  }
 0x44f   : > { %p14_p4 = scmp.ge.s32.totalorder %s17_s24, 4  }
 0x451   :  { %16 = sbr.rel (!%p14_p4) target bundleno = 1 (0x1), region = 80 }

</bundles_post_ra>
